<compile_context>
chip_gen: v6e
topology: v6e:2x2x1
jax: 0.10.0
libtpu: 0.0.40
codegen_flags: <defaults>
</compile_context>

<pallas_src>
import functools
import math

import jax
import jax.numpy as jnp
from jax.experimental import pallas as pl
from jax.experimental.pallas import tpu as pltpu


# ----------------------------- Pallas kernels ------------------------------


def decoder_layer_kernel(mask_ref, x_ref,
                         wqkv_ref, bqkv_ref, wo_ref, bo_ref,
                         g1_ref, be1_ref,
                         w1_ref, bf1_ref, w2_ref, bf2_ref,
                         g2_ref, be2_ref,
                         o_ref,
                         attn_buf,
                         *, num_heads):
    """One decoder layer for one tile of batch elements.

    grid = (nbt, L). o_ref's block index depends only on the batch-tile axis,
    so it is the VMEM-resident activation buffer across the whole layer sweep.
    attn_buf is a (bt*S, D) bf16 scratch collecting per-head outputs at their
    lane offsets so the output projection is a single full-D matmul.
    """
    l = pl.program_id(1)

    # Seed the resident activations from the embedded input at the first layer.
    @pl.when(l == 0)
    def _():
        o_ref[...] = x_ref[...]

    x = o_ref[...]                                    # (bt, S, D) f32
    bt, S, D = x.shape
    dk = D // num_heads
    scale = 1.0 / math.sqrt(dk)

    xb = x.astype(jnp.bfloat16)                       # cast once per layer

    # Fused QKV projection: one full-width (bt*S, D) @ (D, 3D) MXU matmul.
    qkv = jnp.dot(xb.reshape(bt * S, D), wqkv_ref[0],
                  preferred_element_type=jnp.float32) + bqkv_ref[0]
    qkv = qkv.reshape(bt, S, 3 * D)

    mask = mask_ref[...]                              # (S, S) additive causal mask

    # Per-head attention (static unroll; 128-aligned lane slices are free).
    for h in range(num_heads):
        q = qkv[:, :, h * dk:(h + 1) * dk].astype(jnp.bfloat16)
        k = qkv[:, :, D + h * dk:D + (h + 1) * dk].astype(jnp.bfloat16)
        v = qkv[:, :, 2 * D + h * dk:2 * D + (h + 1) * dk].astype(jnp.bfloat16)
        s = jnp.einsum('bqd,bkd->bqk', q, k,
                       preferred_element_type=jnp.float32) * scale
        s = s + mask[None]
        m = jnp.max(s, axis=-1, keepdims=True)
        p = jnp.exp(s - m)
        p = p * pl.reciprocal(jnp.sum(p, axis=-1, keepdims=True), approx=True)
        o_head = jnp.einsum('bqk,bkd->bqd', p.astype(jnp.bfloat16), v,
                            preferred_element_type=jnp.float32)   # (bt, S, dk)
        attn_buf[:, h * dk:(h + 1) * dk] = (
            o_head.reshape(bt * S, dk).astype(jnp.bfloat16))

    # Output projection: one (bt*S, D) @ (D, D) matmul over all heads.
    attn = jnp.dot(attn_buf[...], wo_ref[0],
                   preferred_element_type=jnp.float32) + bo_ref[0]
    attn = attn.reshape(bt, S, D)

    def layer_norm(y, gamma, beta):
        mu = jnp.mean(y, axis=-1, keepdims=True)
        var = jnp.mean(jnp.square(y - mu), axis=-1, keepdims=True)
        return (y - mu) * jax.lax.rsqrt(var + 1e-5) * gamma + beta

    y = layer_norm(x + attn, g1_ref[0], be1_ref[0])

    # Feed-forward (full-extent w1/w2 blocks are fine at these sizes).
    # TODO(synk): for large d_ff / long S, add a d_ff reduction grid axis and a
    # query-tile axis with online softmax, and drop the x input residency.
    yb = y.astype(jnp.bfloat16).reshape(bt * S, D)
    h1 = jnp.dot(yb, w1_ref[0], preferred_element_type=jnp.float32) + bf1_ref[0]
    h1 = jnp.maximum(h1, 0.0)
    ff = jnp.dot(h1.astype(jnp.bfloat16), w2_ref[0],
                 preferred_element_type=jnp.float32) + bf2_ref[0]

    o_ref[...] = layer_norm(y + ff.reshape(bt, S, D), g2_ref[0], be2_ref[0])


def final_proj_kernel(x_ref, w_ref, b_ref, o_ref):
    """One (vocab-tile, M-tile) block of the final Linear (lane-dense store)."""
    o_ref[...] = (jnp.dot(x_ref[...].astype(jnp.bfloat16), w_ref[...],
                          preferred_element_type=jnp.float32) + b_ref[...])


# ----------------------------- Pallas wrappers ------------------------------


def decoder_stack_pallas(x, st, num_heads, *, nbt=None):
    """Run the fused decoder stack. `st` maps name -> (L, ...) stacked params."""
    B, S, D = x.shape
    L, _, F = st['w1'].shape
    assert D % num_heads == 0
    dk = D // num_heads
    assert dk % 128 == 0, "d_model / num_heads must be a multiple of 128"
    assert S % 8 == 0

    if nbt is None:
        nbt = 2 if (B >= 2 and B % 2 == 0) else 1      # parallel axis for megacore
    assert B % nbt == 0
    bt = B // nbt                                       # batch elements per tile

    bf = jnp.bfloat16
    wqkv = st['wqkv'].astype(bf)
    wo = st['wo'].astype(bf)
    w1 = st['w1'].astype(bf)
    w2 = st['w2'].astype(bf)

    # Additive causal mask, built once and DMA'd to a resident block.
    row = jax.lax.broadcasted_iota(jnp.int32, (S, S), 0)
    col = jax.lax.broadcasted_iota(jnp.int32, (S, S), 1)
    mask = jnp.where(row >= col, 0.0, -1e30).astype(jnp.float32)

    def vec(n):
        return pl.BlockSpec((1, 1, n), lambda bo, l: (l, 0, 0))

    in_specs = [
        pl.BlockSpec((S, S), lambda bo, l: (0, 0)),            # causal mask (resident)
        pl.BlockSpec((bt, S, D), lambda bo, l: (bo, 0, 0)),    # x (read at l == 0)
        pl.BlockSpec((1, D, 3 * D), lambda bo, l: (l, 0, 0)),  # wqkv
        vec(3 * D),                                            # bqkv
        pl.BlockSpec((1, D, D), lambda bo, l: (l, 0, 0)),      # wo
        vec(D),                                                # bo
        vec(D), vec(D),                                        # g1, be1
        pl.BlockSpec((1, D, F), lambda bo, l: (l, 0, 0)),      # w1
        vec(F),                                                # bf1
        pl.BlockSpec((1, F, D), lambda bo, l: (l, 0, 0)),      # w2
        vec(D),                                                # bf2
        vec(D), vec(D),                                        # g2, be2
    ]

    return pl.pallas_call(
        functools.partial(decoder_layer_kernel, num_heads=num_heads),
        out_shape=jax.ShapeDtypeStruct((B, S, D), jnp.float32),
        grid=(nbt, L),
        in_specs=in_specs,
        out_specs=pl.BlockSpec((bt, S, D), lambda bo, l: (bo, 0, 0)),
        scratch_shapes=[pltpu.VMEM((bt * S, D), jnp.bfloat16)],   # per-head outputs
        compiler_params=pltpu.CompilerParams(
            dimension_semantics=("parallel", "arbitrary"),
            vmem_limit_bytes=48 * 1024 * 1024),
    )(mask, x, wqkv, st['bqkv'], wo, st['bo'],
      st['g1'], st['be1'], w1, st['bf1'], w2, st['bf2'], st['g2'], st['be2'])


def final_proj_pallas(x, wfc, bfc, *, tile_m=64, tile_v=512):
    B, S, D = x.shape
    V = wfc.shape[1]
    M = B * S
    x2 = x.reshape(M, D)                     # fold B and S into one M dimension
    tile_v = min(tile_v, V)
    tile_m = min(tile_m, M)
    assert V % tile_v == 0 and V % 128 == 0
    assert M % tile_m == 0 and tile_m % 8 == 0

    out = pl.pallas_call(
        final_proj_kernel,
        out_shape=jax.ShapeDtypeStruct((M, V), jnp.float32),
        grid=(V // tile_v, M // tile_m),     # weight tile resident across M sweep
        in_specs=[pl.BlockSpec((tile_m, D), lambda j, i: (i, 0)),
                  pl.BlockSpec((D, tile_v), lambda j, i: (0, j)),
                  pl.BlockSpec((1, tile_v), lambda j, i: (0, j))],
        out_specs=pl.BlockSpec((tile_m, tile_v), lambda j, i: (i, j)),
        compiler_params=pltpu.CompilerParams(
            dimension_semantics=("parallel", "parallel")),
    )(x2, wfc.astype(jnp.bfloat16), bfc)
    return out.reshape(B, S, V)


# ----------------------------- parameter setup ------------------------------


def init_params(key, vocab, d_model, num_layers, d_ff, max_seq_len):
    keys = jax.random.split(key, 2 + num_layers)
    params = {}
    params['embed'] = (jax.random.normal(keys[0], (vocab, d_model), jnp.float32)
                       * 0.02)

    # sinusoidal positional encoding (same construction as the PyTorch module)
    pos = jnp.arange(max_seq_len, dtype=jnp.float32)[:, None]
    div = jnp.exp(jnp.arange(0, d_model, 2, dtype=jnp.float32)
                  * (-math.log(10000.0) / d_model))
    pe = jnp.zeros((max_seq_len, d_model), jnp.float32)
    pe = pe.at[:, 0::2].set(jnp.sin(pos * div))
    pe = pe.at[:, 1::2].set(jnp.cos(pos * div))
    params['pe'] = pe

    def linear(k, din, dout):
        kw, kb = jax.random.split(k)
        w = jax.random.normal(kw, (din, dout), jnp.float32) / math.sqrt(din)
        b = jax.random.normal(kb, (1, dout), jnp.float32) * 0.01
        return w, b

    layers = []
    for li in range(num_layers):
        lk = jax.random.split(keys[2 + li], 6)
        lp = {}
        lp['wq'], lp['bq'] = linear(lk[0], d_model, d_model)
        lp['wk'], lp['bk'] = linear(lk[1], d_model, d_model)
        lp['wv'], lp['bv'] = linear(lk[2], d_model, d_model)
        lp['wo'], lp['bo'] = linear(lk[3], d_model, d_model)
        lp['w1'], lp['bf1'] = linear(lk[4], d_model, d_ff)
        lp['w2'], lp['bf2'] = linear(lk[5], d_ff, d_model)
        lp['g1'] = jnp.ones((1, d_model), jnp.float32)
        lp['be1'] = jnp.zeros((1, d_model), jnp.float32)
        lp['g2'] = jnp.ones((1, d_model), jnp.float32)
        lp['be2'] = jnp.zeros((1, d_model), jnp.float32)
        layers.append(lp)
    params['layers'] = layers

    kfc = jax.random.split(keys[1])[0]
    params['wfc'], params['bfc'] = linear(kfc, d_model, vocab)
    return params


def _stack_layers(layers):
    st = {k: jnp.stack([lp[k] for lp in layers], axis=0) for k in layers[0]}
    # Fused QKV weight/bias: (L, D, 3D) / (L, 1, 3D).
    st['wqkv'] = jnp.concatenate([st['wq'], st['wk'], st['wv']], axis=-1)
    st['bqkv'] = jnp.concatenate([st['bq'], st['bk'], st['bv']], axis=-1)
    return st


# ----------------------------- full forward ------------------------------


def transformer_forward(tokens, params, num_heads):
    # TODO(synk): embedding lookup (data-dependent gather) stays in plain JAX glue.
    x = jnp.take(params['embed'], tokens, axis=0)              # (B, S, D)
    S = tokens.shape[1]
    x = x + params['pe'][None, :S, :]                          # positional encoding
    # dropout: identity (eval mode)
    st = _stack_layers(params['layers'])                       # (L, ...) stacks
    x = decoder_stack_pallas(x, st, num_heads)                 # fused decoder stack
    return final_proj_pallas(x, params['wfc'], params['bfc'])


# ----------------------------- pure-JAX reference ------------------------------
# Same bf16-operand / f32-accumulation policy as the kernels so the check
# isolates kernel structure (only mask form + approx reciprocal differ).


def reference_forward(tokens, params, num_heads):
    bf16, f32 = jnp.bfloat16, jnp.float32
    x = jnp.take(params['embed'], tokens, axis=0)
    S = tokens.shape[1]
    x = x + params['pe'][None, :S, :]

    def ln(y, g, b):
        mu = jnp.mean(y, axis=-1, keepdims=True)
        var = jnp.mean((y - mu) ** 2, axis=-1, keepdims=True)
        return (y - mu) * jax.lax.rsqrt(var + 1e-5) * g + b

    def mm(a, w):
        return jnp.dot(a.astype(bf16), w.astype(bf16), preferred_element_type=f32)

    B, S, D = x.shape
    dk = D // num_heads
    scale = 1.0 / math.sqrt(dk)
    mask = jnp.tril(jnp.ones((S, S), bool))
    for lp in params['layers']:
        q = mm(x, lp['wq']) + lp['bq']
        k = mm(x, lp['wk']) + lp['bk']
        v = mm(x, lp['wv']) + lp['bv']
        q = q.reshape(B, S, num_heads, dk).transpose(0, 2, 1, 3)
        k = k.reshape(B, S, num_heads, dk).transpose(0, 2, 1, 3)
        v = v.reshape(B, S, num_heads, dk).transpose(0, 2, 1, 3)
        s = jnp.einsum('bhqd,bhkd->bhqk', q.astype(bf16), k.astype(bf16),
                       preferred_element_type=f32) * scale
        s = jnp.where(mask[None, None], s, -1e30)
        p = jax.nn.softmax(s, axis=-1)
        a = jnp.einsum('bhqk,bhkd->bhqd', p.astype(bf16), v.astype(bf16),
                       preferred_element_type=f32)
        a = a.transpose(0, 2, 1, 3).reshape(B, S, D)
        a = mm(a, lp['wo']) + lp['bo']
        x = ln(x + a, lp['g1'], lp['be1'])
        h1 = jnp.maximum(mm(x, lp['w1']) + lp['bf1'], 0.0)
        ff = mm(h1, lp['w2']) + lp['bf2']
        x = ln(x + ff, lp['g2'], lp['be2'])
    return mm(x, params['wfc']) + params['bfc']


# ----------------------------- main ------------------------------


if __name__ == "__main__":
    # Small but lane-aligned shapes (D, d_ff, V multiples of 128, d_k == 128,
    # S a multiple of 8).
    B, S = 2, 64
    VOCAB, D_MODEL, NUM_HEADS, NUM_LAYERS, D_FF, MAX_SEQ = 384, 256, 2, 2, 512, 128

    key = jax.random.PRNGKey(0)
    kp, kt = jax.random.split(key)
    params = init_params(kp, VOCAB, D_MODEL, NUM_LAYERS, D_FF, MAX_SEQ)
    tokens = jax.random.randint(kt, (B, S), 0, VOCAB, dtype=jnp.int32)

    fwd = jax.jit(transformer_forward, static_argnums=(2,))
    out = jax.block_until_ready(fwd(tokens, params, NUM_HEADS))

    ref = reference_forward(tokens, params, NUM_HEADS)
    assert out.shape == (B, S, VOCAB), out.shape
    max_err = float(jnp.max(jnp.abs(out - ref)))
    assert jnp.allclose(out, ref, atol=2e-2, rtol=2e-2), max_err

    print("KERNEL_OK")
</pallas_src>

<mosaic_0001>
module attributes {stable_mosaic.version = 11 : i64} {
  func.func @decoder_layer_kernel(%arg0: i32, %arg1: i32, %arg2: memref<64x64xf32, #tpu.memory_space<vmem>>, %arg3: memref<1x64x256xf32, #tpu.memory_space<vmem>>, %arg4: memref<1x256x768xbf16, #tpu.memory_space<vmem>>, %arg5: memref<1x1x768xf32, #tpu.memory_space<vmem>>, %arg6: memref<1x256x256xbf16, #tpu.memory_space<vmem>>, %arg7: memref<1x1x256xf32, #tpu.memory_space<vmem>>, %arg8: memref<1x1x256xf32, #tpu.memory_space<vmem>>, %arg9: memref<1x1x256xf32, #tpu.memory_space<vmem>>, %arg10: memref<1x256x512xbf16, #tpu.memory_space<vmem>>, %arg11: memref<1x1x512xf32, #tpu.memory_space<vmem>>, %arg12: memref<1x512x256xbf16, #tpu.memory_space<vmem>>, %arg13: memref<1x1x256xf32, #tpu.memory_space<vmem>>, %arg14: memref<1x1x256xf32, #tpu.memory_space<vmem>>, %arg15: memref<1x1x256xf32, #tpu.memory_space<vmem>>, %arg16: memref<1x64x256xf32, #tpu.memory_space<vmem>>, %arg17: memref<64x256xbf16, #tpu.memory_space<vmem>>) attributes {dimension_semantics = [#tpu.dimension_semantics<parallel>, #tpu.dimension_semantics<arbitrary>], iteration_bounds = array<i64: 2, 2>, scalar_prefetch = 0 : i64, scratch_operands = 1 : i64, tpu.core_type = #tpu.core_type<tc>, window_params = [{pipeline_mode = #tpu.pipeline_mode<synchronous>, transform_indices = @transform_0, window_bounds = array<i64: 64, 64>}, {transform_indices = @transform_1, window_bounds = array<i64: 1, 64, 256>}, {transform_indices = @transform_2, window_bounds = array<i64: 1, 256, 768>}, {transform_indices = @transform_3, window_bounds = array<i64: 1, 1, 768>}, {transform_indices = @transform_4, window_bounds = array<i64: 1, 256, 256>}, {transform_indices = @transform_5, window_bounds = array<i64: 1, 1, 256>}, {transform_indices = @transform_6, window_bounds = array<i64: 1, 1, 256>}, {transform_indices = @transform_7, window_bounds = array<i64: 1, 1, 256>}, {transform_indices = @transform_8, window_bounds = array<i64: 1, 256, 512>}, {transform_indices = @transform_9, window_bounds = array<i64: 1, 1, 512>}, {transform_indices = @transform_10, window_bounds = array<i64: 1, 512, 256>}, {transform_indices = @transform_11, window_bounds = array<i64: 1, 1, 256>}, {transform_indices = @transform_12, window_bounds = array<i64: 1, 1, 256>}, {transform_indices = @transform_13, window_bounds = array<i64: 1, 1, 256>}, {transform_indices = @transform_14, window_bounds = array<i64: 1, 64, 256>}]} {
    %c0_i32 = arith.constant 0 : i32
    %0 = arith.cmpi eq, %arg1, %c0_i32 : i32
    %1 = arith.extui %0 : i1 to i32
    %c0_i32_0 = arith.constant 0 : i32
    %2 = arith.cmpi ne, %1, %c0_i32_0 : i32
    scf.if %2 {
      %c0_73 = arith.constant 0 : index
      %c0_74 = arith.constant 0 : index
      %c0_75 = arith.constant 0 : index
      %155 = vector.load %arg3[%c0_73, %c0_74, %c0_75] : memref<1x64x256xf32, #tpu.memory_space<vmem>>, vector<1x64x256xf32>
      %c0_76 = arith.constant 0 : index
      %c0_77 = arith.constant 0 : index
      %c0_78 = arith.constant 0 : index
      %156 = vector.load %arg16[%c0_76, %c0_77, %c0_78] : memref<1x64x256xf32, #tpu.memory_space<vmem>>, vector<1x64x256xf32>
      tpu.vector_store %arg16[%c0_76, %c0_77, %c0_78], %155 {strides = array<i32>} : memref<1x64x256xf32, #tpu.memory_space<vmem>>, vector<1x64x256xf32>,
    } else {
    }
    %c0 = arith.constant 0 : index
    %c0_1 = arith.constant 0 : index
    %c0_2 = arith.constant 0 : index
    %3 = vector.load %arg16[%c0, %c0_1, %c0_2] : memref<1x64x256xf32, #tpu.memory_space<vmem>>, vector<1x64x256xf32>
    %4 = arith.truncf %3 : vector<1x64x256xf32> to vector<1x64x256xbf16>
    %5 = vector.shape_cast %4 : vector<1x64x256xbf16> to vector<64x256xbf16>
    %c0_3 = arith.constant 0 : index
    %c0_4 = arith.constant 0 : index
    %c0_5 = arith.constant 0 : index
    %6 = vector.load %arg4[%c0_3, %c0_4, %c0_5] : memref<1x256x768xbf16, #tpu.memory_space<vmem>>, vector<1x256x768xbf16>
    %7 = vector.shape_cast %6 : vector<1x256x768xbf16> to vector<256x768xbf16>
    %cst = arith.constant dense<0.000000e+00> : vector<64x768xf32>
    %8 = tpu.matmul %5, %7, %cst {dimension_numbers = #tpu.dot_dimension_numbers<[1], [0], [0], [1], [0, 0, 1, 1], [], []>} : vector<64x256xbf16>, vector<256x768xbf16>, vector<64x768xf32> -> vector<64x768xf32>
    %c0_6 = arith.constant 0 : index
    %c0_7 = arith.constant 0 : index
    %c0_8 = arith.constant 0 : index
    %9 = vector.load %arg5[%c0_6, %c0_7, %c0_8] : memref<1x1x768xf32, #tpu.memory_space<vmem>>, vector<1x1x768xf32>
    %10 = vector.shape_cast %9 : vector<1x1x768xf32> to vector<1x768xf32>
    %11 = vector.broadcast %10 : vector<1x768xf32> to vector<64x768xf32>
    %12 = arith.addf %8, %11 : vector<64x768xf32>
    %13 = vector.shape_cast %12 : vector<64x768xf32> to vector<1x64x768xf32>
    %c0_9 = arith.constant 0 : index
    %c0_10 = arith.constant 0 : index
    %14 = vector.load %arg2[%c0_9, %c0_10] : memref<64x64xf32, #tpu.memory_space<vmem>>, vector<64x64xf32>
    %15 = vector.extract_strided_slice %13 {offsets = [0, 0, 0], sizes = [1, 64, 128], strides = [1, 1, 1]} : vector<1x64x768xf32> to vector<1x64x128xf32>
    %16 = arith.truncf %15 : vector<1x64x128xf32> to vector<1x64x128xbf16>
    %17 = vector.extract_strided_slice %13 {offsets = [0, 0, 256], sizes = [1, 64, 128], strides = [1, 1, 1]} : vector<1x64x768xf32> to vector<1x64x128xf32>
    %18 = arith.truncf %17 : vector<1x64x128xf32> to vector<1x64x128xbf16>
    %19 = vector.extract_strided_slice %13 {offsets = [0, 0, 512], sizes = [1, 64, 128], strides = [1, 1, 1]} : vector<1x64x768xf32> to vector<1x64x128xf32>
    %20 = arith.truncf %19 : vector<1x64x128xf32> to vector<1x64x128xbf16>
    "tpu.trace_start"() <{level = 10 : i32, message = "bqd,bkd->bqk"}> : () -> ()
    %cst_11 = arith.constant dense<0.000000e+00> : vector<1x64x64xf32>
    %21 = tpu.matmul %16, %18, %cst_11 {dimension_numbers = #tpu.dot_dimension_numbers<[2], [2], [1], [1], [0, 0, 0, 1, 1, 1], [0], [0]>} : vector<1x64x128xbf16>, vector<1x64x128xbf16>, vector<1x64x64xf32> -> vector<1x64x64xf32>
    "tpu.trace_stop"() : () -> ()
    %cst_12 = arith.constant 0.0883883461 : f32
    %22 = vector.broadcast %cst_12 : f32 to vector<1x64x64xf32>
    %23 = arith.mulf %21, %22 : vector<1x64x64xf32>
    %24 = vector.shape_cast %14 : vector<64x64xf32> to vector<1x64x64xf32>
    %25 = arith.addf %23, %24 : vector<1x64x64xf32>
    %cst_13 = arith.constant dense<0xFF800000> : vector<1x64xf32>
    %26 = vector.multi_reduction <maximumf>, %25, %cst_13 [2] : vector<1x64x64xf32> to vector<1x64xf32>
    %27 = vector.shape_cast %26 : vector<1x64xf32> to vector<1x64x1xf32>
    %28 = vector.broadcast %27 : vector<1x64x1xf32> to vector<1x64x64xf32>
    %29 = arith.subf %25, %28 : vector<1x64x64xf32>
    %30 = math.exp %29 : vector<1x64x64xf32>
    %cst_14 = arith.constant dense<0.000000e+00> : vector<1x64xf32>
    %31 = vector.multi_reduction <add>, %30, %cst_14 [2] : vector<1x64x64xf32> to vector<1x64xf32>
    %32 = vector.shape_cast %31 : vector<1x64xf32> to vector<1x64x1xf32>
    %33 = tpu.reciprocal %32 {approx = true} : vector<1x64x1xf32> -> vector<1x64x1xf32>
    %34 = vector.broadcast %33 : vector<1x64x1xf32> to vector<1x64x64xf32>
    %35 = arith.mulf %30, %34 : vector<1x64x64xf32>
    %36 = arith.truncf %35 : vector<1x64x64xf32> to vector<1x64x64xbf16>
    "tpu.trace_start"() <{level = 10 : i32, message = "bqk,bkd->bqd"}> : () -> ()
    %cst_15 = arith.constant dense<0.000000e+00> : vector<1x64x128xf32>
    %37 = tpu.matmul %36, %20, %cst_15 {dimension_numbers = #tpu.dot_dimension_numbers<[2], [1], [1], [2], [0, 0, 0, 1, 1, 2], [0], [0]>} : vector<1x64x64xbf16>, vector<1x64x128xbf16>, vector<1x64x128xf32> -> vector<1x64x128xf32>
    "tpu.trace_stop"() : () -> ()
    %38 = vector.shape_cast %37 : vector<1x64x128xf32> to vector<64x128xf32>
    %39 = arith.truncf %38 : vector<64x128xf32> to vector<64x128xbf16>
    %c0_16 = arith.constant 0 : index
    %c0_17 = arith.constant 0 : index
    %40 = vector.load %arg17[%c0_16, %c0_17] : memref<64x256xbf16, #tpu.memory_space<vmem>>, vector<64x128xbf16>
    tpu.vector_store %arg17[%c0_16, %c0_17], %39 {strides = array<i32>} : memref<64x256xbf16, #tpu.memory_space<vmem>>, vector<64x128xbf16>,
    %41 = vector.extract_strided_slice %13 {offsets = [0, 0, 128], sizes = [1, 64, 128], strides = [1, 1, 1]} : vector<1x64x768xf32> to vector<1x64x128xf32>
    %42 = arith.truncf %41 : vector<1x64x128xf32> to vector<1x64x128xbf16>
    %43 = vector.extract_strided_slice %13 {offsets = [0, 0, 384], sizes = [1, 64, 128], strides = [1, 1, 1]} : vector<1x64x768xf32> to vector<1x64x128xf32>
    %44 = arith.truncf %43 : vector<1x64x128xf32> to vector<1x64x128xbf16>
    %45 = vector.extract_strided_slice %13 {offsets = [0, 0, 640], sizes = [1, 64, 128], strides = [1, 1, 1]} : vector<1x64x768xf32> to vector<1x64x128xf32>
    %46 = arith.truncf %45 : vector<1x64x128xf32> to vector<1x64x128xbf16>
    "tpu.trace_start"() <{level = 10 : i32, message = "bqd,bkd->bqk"}> : () -> ()
    %cst_18 = arith.constant dense<0.000000e+00> : vector<1x64x64xf32>
    %47 = tpu.matmul %42, %44, %cst_18 {dimension_numbers = #tpu.dot_dimension_numbers<[2], [2], [1], [1], [0, 0, 0, 1, 1, 1], [0], [0]>} : vector<1x64x128xbf16>, vector<1x64x128xbf16>, vector<1x64x64xf32> -> vector<1x64x64xf32>
    "tpu.trace_stop"() : () -> ()
    %cst_19 = arith.constant 0.0883883461 : f32
    %48 = vector.broadcast %cst_19 : f32 to vector<1x64x64xf32>
    %49 = arith.mulf %47, %48 : vector<1x64x64xf32>
    %50 = vector.shape_cast %14 : vector<64x64xf32> to vector<1x64x64xf32>
    %51 = arith.addf %49, %50 : vector<1x64x64xf32>
    %cst_20 = arith.constant dense<0xFF800000> : vector<1x64xf32>
    %52 = vector.multi_reduction <maximumf>, %51, %cst_20 [2] : vector<1x64x64xf32> to vector<1x64xf32>
    %53 = vector.shape_cast %52 : vector<1x64xf32> to vector<1x64x1xf32>
    %54 = vector.broadcast %53 : vector<1x64x1xf32> to vector<1x64x64xf32>
    %55 = arith.subf %51, %54 : vector<1x64x64xf32>
    %56 = math.exp %55 : vector<1x64x64xf32>
    %cst_21 = arith.constant dense<0.000000e+00> : vector<1x64xf32>
    %57 = vector.multi_reduction <add>, %56, %cst_21 [2] : vector<1x64x64xf32> to vector<1x64xf32>
    %58 = vector.shape_cast %57 : vector<1x64xf32> to vector<1x64x1xf32>
    %59 = tpu.reciprocal %58 {approx = true} : vector<1x64x1xf32> -> vector<1x64x1xf32>
    %60 = vector.broadcast %59 : vector<1x64x1xf32> to vector<1x64x64xf32>
    %61 = arith.mulf %56, %60 : vector<1x64x64xf32>
    %62 = arith.truncf %61 : vector<1x64x64xf32> to vector<1x64x64xbf16>
    "tpu.trace_start"() <{level = 10 : i32, message = "bqk,bkd->bqd"}> : () -> ()
    %cst_22 = arith.constant dense<0.000000e+00> : vector<1x64x128xf32>
    %63 = tpu.matmul %62, %46, %cst_22 {dimension_numbers = #tpu.dot_dimension_numbers<[2], [1], [1], [2], [0, 0, 0, 1, 1, 2], [0], [0]>} : vector<1x64x64xbf16>, vector<1x64x128xbf16>, vector<1x64x128xf32> -> vector<1x64x128xf32>
    "tpu.trace_stop"() : () -> ()
    %64 = vector.shape_cast %63 : vector<1x64x128xf32> to vector<64x128xf32>
    %65 = arith.truncf %64 : vector<64x128xf32> to vector<64x128xbf16>
    %c0_23 = arith.constant 0 : index
    %c128 = arith.constant 128 : index
    %66 = vector.load %arg17[%c0_23, %c128] : memref<64x256xbf16, #tpu.memory_space<vmem>>, vector<64x128xbf16>
    tpu.vector_store %arg17[%c0_23, %c128], %65 {strides = array<i32>} : memref<64x256xbf16, #tpu.memory_space<vmem>>, vector<64x128xbf16>,
    %c0_24 = arith.constant 0 : index
    %c0_25 = arith.constant 0 : index
    %67 = vector.load %arg17[%c0_24, %c0_25] : memref<64x256xbf16, #tpu.memory_space<vmem>>, vector<64x256xbf16>
    %c0_26 = arith.constant 0 : index
    %c0_27 = arith.constant 0 : index
    %c0_28 = arith.constant 0 : index
    %68 = vector.load %arg6[%c0_26, %c0_27, %c0_28] : memref<1x256x256xbf16, #tpu.memory_space<vmem>>, vector<1x256x256xbf16>
    %69 = vector.shape_cast %68 : vector<1x256x256xbf16> to vector<256x256xbf16>
    %cst_29 = arith.constant dense<0.000000e+00> : vector<64x256xf32>
    %70 = tpu.matmul %67, %69, %cst_29 {dimension_numbers = #tpu.dot_dimension_numbers<[1], [0], [0], [1], [0, 0, 1, 1], [], []>} : vector<64x256xbf16>, vector<256x256xbf16>, vector<64x256xf32> -> vector<64x256xf32>
    %c0_30 = arith.constant 0 : index
    %c0_31 = arith.constant 0 : index
    %c0_32 = arith.constant 0 : index
    %71 = vector.load %arg7[%c0_30, %c0_31, %c0_32] : memref<1x1x256xf32, #tpu.memory_space<vmem>>, vector<1x1x256xf32>
    %72 = vector.shape_cast %71 : vector<1x1x256xf32> to vector<1x256xf32>
    %73 = vector.broadcast %72 : vector<1x256xf32> to vector<64x256xf32>
    %74 = arith.addf %70, %73 : vector<64x256xf32>
    %75 = vector.shape_cast %74 : vector<64x256xf32> to vector<1x64x256xf32>
    %76 = arith.addf %3, %75 : vector<1x64x256xf32>
    %c0_33 = arith.constant 0 : index
    %c0_34 = arith.constant 0 : index
    %c0_35 = arith.constant 0 : index
    %77 = vector.load %arg8[%c0_33, %c0_34, %c0_35] : memref<1x1x256xf32, #tpu.memory_space<vmem>>, vector<1x1x256xf32>
    %78 = vector.shape_cast %77 : vector<1x1x256xf32> to vector<1x256xf32>
    %c0_36 = arith.constant 0 : index
    %c0_37 = arith.constant 0 : index
    %c0_38 = arith.constant 0 : index
    %79 = vector.load %arg9[%c0_36, %c0_37, %c0_38] : memref<1x1x256xf32, #tpu.memory_space<vmem>>, vector<1x1x256xf32>
    %80 = vector.shape_cast %79 : vector<1x1x256xf32> to vector<1x256xf32>
    %cst_39 = arith.constant dense<0.000000e+00> : vector<1x64xf32>
    %81 = vector.multi_reduction <add>, %76, %cst_39 [2] : vector<1x64x256xf32> to vector<1x64xf32>
    %82 = vector.shape_cast %81 : vector<1x64xf32> to vector<1x64x1xf32>
    %cst_40 = arith.constant 2.560000e+02 : f32
    %83 = vector.broadcast %cst_40 : f32 to vector<1x64x1xf32>
    %84 = arith.divf %82, %83 : vector<1x64x1xf32>
    %85 = vector.broadcast %84 : vector<1x64x1xf32> to vector<1x64x256xf32>
    %86 = arith.subf %76, %85 : vector<1x64x256xf32>
    %87 = arith.mulf %86, %86 : vector<1x64x256xf32>
    %cst_41 = arith.constant dense<0.000000e+00> : vector<1x64xf32>
    %88 = vector.multi_reduction <add>, %87, %cst_41 [2] : vector<1x64x256xf32> to vector<1x64xf32>
    %89 = vector.shape_cast %88 : vector<1x64xf32> to vector<1x64x1xf32>
    %cst_42 = arith.constant 2.560000e+02 : f32
    %90 = vector.broadcast %cst_42 : f32 to vector<1x64x1xf32>
    %91 = arith.divf %89, %90 : vector<1x64x1xf32>
    %92 = vector.broadcast %84 : vector<1x64x1xf32> to vector<1x64x256xf32>
    %93 = arith.subf %76, %92 : vector<1x64x256xf32>
    %cst_43 = arith.constant 9.99999974E-6 : f32
    %94 = vector.broadcast %cst_43 : f32 to vector<1x64x1xf32>
    %95 = arith.addf %91, %94 : vector<1x64x1xf32>
    %96 = math.rsqrt %95 : vector<1x64x1xf32>
    %97 = vector.broadcast %96 : vector<1x64x1xf32> to vector<1x64x256xf32>
    %98 = arith.mulf %93, %97 : vector<1x64x256xf32>
    %99 = vector.shape_cast %78 : vector<1x256xf32> to vector<1x1x256xf32>
    %100 = vector.broadcast %99 : vector<1x1x256xf32> to vector<1x64x256xf32>
    %101 = arith.mulf %98, %100 : vector<1x64x256xf32>
    %102 = vector.shape_cast %80 : vector<1x256xf32> to vector<1x1x256xf32>
    %103 = vector.broadcast %102 : vector<1x1x256xf32> to vector<1x64x256xf32>
    %104 = arith.addf %101, %103 : vector<1x64x256xf32>
    %105 = arith.truncf %104 : vector<1x64x256xf32> to vector<1x64x256xbf16>
    %106 = vector.shape_cast %105 : vector<1x64x256xbf16> to vector<64x256xbf16>
    %c0_44 = arith.constant 0 : index
    %c0_45 = arith.constant 0 : index
    %c0_46 = arith.constant 0 : index
    %107 = vector.load %arg10[%c0_44, %c0_45, %c0_46] : memref<1x256x512xbf16, #tpu.memory_space<vmem>>, vector<1x256x512xbf16>
    %108 = vector.shape_cast %107 : vector<1x256x512xbf16> to vector<256x512xbf16>
    %cst_47 = arith.constant dense<0.000000e+00> : vector<64x512xf32>
    %109 = tpu.matmul %106, %108, %cst_47 {dimension_numbers = #tpu.dot_dimension_numbers<[1], [0], [0], [1], [0, 0, 1, 1], [], []>} : vector<64x256xbf16>, vector<256x512xbf16>, vector<64x512xf32> -> vector<64x512xf32>
    %c0_48 = arith.constant 0 : index
    %c0_49 = arith.constant 0 : index
    %c0_50 = arith.constant 0 : index
    %110 = vector.load %arg11[%c0_48, %c0_49, %c0_50] : memref<1x1x512xf32, #tpu.memory_space<vmem>>, vector<1x1x512xf32>
    %111 = vector.shape_cast %110 : vector<1x1x512xf32> to vector<1x512xf32>
    %112 = vector.broadcast %111 : vector<1x512xf32> to vector<64x512xf32>
    %113 = arith.addf %109, %112 : vector<64x512xf32>
    %cst_51 = arith.constant 0.000000e+00 : f32
    %114 = vector.broadcast %cst_51 : f32 to vector<64x512xf32>
    %115 = arith.maximumf %113, %114 : vector<64x512xf32>
    %116 = arith.truncf %115 : vector<64x512xf32> to vector<64x512xbf16>
    %c0_52 = arith.constant 0 : index
    %c0_53 = arith.constant 0 : index
    %c0_54 = arith.constant 0 : index
    %117 = vector.load %arg12[%c0_52, %c0_53, %c0_54] : memref<1x512x256xbf16, #tpu.memory_space<vmem>>, vector<1x512x256xbf16>
    %118 = vector.shape_cast %117 : vector<1x512x256xbf16> to vector<512x256xbf16>
    %cst_55 = arith.constant dense<0.000000e+00> : vector<64x256xf32>
    %119 = tpu.matmul %116, %118, %cst_55 {dimension_numbers = #tpu.dot_dimension_numbers<[1], [0], [0], [1], [0, 0, 1, 1], [], []>} : vector<64x512xbf16>, vector<512x256xbf16>, vector<64x256xf32> -> vector<64x256xf32>
    %c0_56 = arith.constant 0 : index
    %c0_57 = arith.constant 0 : index
    %c0_58 = arith.constant 0 : index
    %120 = vector.load %arg13[%c0_56, %c0_57, %c0_58] : memref<1x1x256xf32, #tpu.memory_space<vmem>>, vector<1x1x256xf32>
    %121 = vector.shape_cast %120 : vector<1x1x256xf32> to vector<1x256xf32>
    %122 = vector.broadcast %121 : vector<1x256xf32> to vector<64x256xf32>
    %123 = arith.addf %119, %122 : vector<64x256xf32>
    %124 = vector.shape_cast %123 : vector<64x256xf32> to vector<1x64x256xf32>
    %125 = arith.addf %104, %124 : vector<1x64x256xf32>
    %c0_59 = arith.constant 0 : index
    %c0_60 = arith.constant 0 : index
    %c0_61 = arith.constant 0 : index
    %126 = vector.load %arg14[%c0_59, %c0_60, %c0_61] : memref<1x1x256xf32, #tpu.memory_space<vmem>>, vector<1x1x256xf32>
    %127 = vector.shape_cast %126 : vector<1x1x256xf32> to vector<1x256xf32>
    %c0_62 = arith.constant 0 : index
    %c0_63 = arith.constant 0 : index
    %c0_64 = arith.constant 0 : index
    %128 = vector.load %arg15[%c0_62, %c0_63, %c0_64] : memref<1x1x256xf32, #tpu.memory_space<vmem>>, vector<1x1x256xf32>
    %129 = vector.shape_cast %128 : vector<1x1x256xf32> to vector<1x256xf32>
    %cst_65 = arith.constant dense<0.000000e+00> : vector<1x64xf32>
    %130 = vector.multi_reduction <add>, %125, %cst_65 [2] : vector<1x64x256xf32> to vector<1x64xf32>
    %131 = vector.shape_cast %130 : vector<1x64xf32> to vector<1x64x1xf32>
    %cst_66 = arith.constant 2.560000e+02 : f32
    %132 = vector.broadcast %cst_66 : f32 to vector<1x64x1xf32>
    %133 = arith.divf %131, %132 : vector<1x64x1xf32>
    %134 = vector.broadcast %133 : vector<1x64x1xf32> to vector<1x64x256xf32>
    %135 = arith.subf %125, %134 : vector<1x64x256xf32>
    %136 = arith.mulf %135, %135 : vector<1x64x256xf32>
    %cst_67 = arith.constant dense<0.000000e+00> : vector<1x64xf32>
    %137 = vector.multi_reduction <add>, %136, %cst_67 [2] : vector<1x64x256xf32> to vector<1x64xf32>
    %138 = vector.shape_cast %137 : vector<1x64xf32> to vector<1x64x1xf32>
    %cst_68 = arith.constant 2.560000e+02 : f32
    %139 = vector.broadcast %cst_68 : f32 to vector<1x64x1xf32>
    %140 = arith.divf %138, %139 : vector<1x64x1xf32>
    %141 = vector.broadcast %133 : vector<1x64x1xf32> to vector<1x64x256xf32>
    %142 = arith.subf %125, %141 : vector<1x64x256xf32>
    %cst_69 = arith.constant 9.99999974E-6 : f32
    %143 = vector.broadcast %cst_69 : f32 to vector<1x64x1xf32>
    %144 = arith.addf %140, %143 : vector<1x64x1xf32>
    %145 = math.rsqrt %144 : vector<1x64x1xf32>
    %146 = vector.broadcast %145 : vector<1x64x1xf32> to vector<1x64x256xf32>
    %147 = arith.mulf %142, %146 : vector<1x64x256xf32>
    %148 = vector.shape_cast %127 : vector<1x256xf32> to vector<1x1x256xf32>
    %149 = vector.broadcast %148 : vector<1x1x256xf32> to vector<1x64x256xf32>
    %150 = arith.mulf %147, %149 : vector<1x64x256xf32>
    %151 = vector.shape_cast %129 : vector<1x256xf32> to vector<1x1x256xf32>
    %152 = vector.broadcast %151 : vector<1x1x256xf32> to vector<1x64x256xf32>
    %153 = arith.addf %150, %152 : vector<1x64x256xf32>
    %c0_70 = arith.constant 0 : index
    %c0_71 = arith.constant 0 : index
    %c0_72 = arith.constant 0 : index
    %154 = vector.load %arg16[%c0_70, %c0_71, %c0_72] : memref<1x64x256xf32, #tpu.memory_space<vmem>>, vector<1x64x256xf32>
    tpu.vector_store %arg16[%c0_70, %c0_71, %c0_72], %153 {strides = array<i32>} : memref<1x64x256xf32, #tpu.memory_space<vmem>>, vector<1x64x256xf32>,
    return
  }
  func.func @transform_0(%arg0: i32, %arg1: i32) -> (i32, i32) {
    %c0_i32 = arith.constant 0 : i32
    %c0_i32_0 = arith.constant 0 : i32
    %c0_i32_1 = arith.constant 0 : i32
    return %c0_i32, %c0_i32_0 : i32, i32
  }
  func.func @transform_1(%arg0: i32, %arg1: i32) -> (i32, i32, i32) {
    %c0_i32 = arith.constant 0 : i32
    %c0_i32_0 = arith.constant 0 : i32
    %c0_i32_1 = arith.constant 0 : i32
    return %arg0, %c0_i32, %c0_i32_0 : i32, i32, i32
  }
  func.func @transform_2(%arg0: i32, %arg1: i32) -> (i32, i32, i32) {
    %c0_i32 = arith.constant 0 : i32
    %c0_i32_0 = arith.constant 0 : i32
    %c0_i32_1 = arith.constant 0 : i32
    return %arg1, %c0_i32, %c0_i32_0 : i32, i32, i32
  }
  func.func @transform_3(%arg0: i32, %arg1: i32) -> (i32, i32, i32) {
    %c0_i32 = arith.constant 0 : i32
    %c0_i32_0 = arith.constant 0 : i32
    %c0_i32_1 = arith.constant 0 : i32
    return %arg1, %c0_i32, %c0_i32_0 : i32, i32, i32
  }
  func.func @transform_4(%arg0: i32, %arg1: i32) -> (i32, i32, i32) {
    %c0_i32 = arith.constant 0 : i32
    %c0_i32_0 = arith.constant 0 : i32
    %c0_i32_1 = arith.constant 0 : i32
    return %arg1, %c0_i32, %c0_i32_0 : i32, i32, i32
  }
  func.func @transform_5(%arg0: i32, %arg1: i32) -> (i32, i32, i32) {
    %c0_i32 = arith.constant 0 : i32
    %c0_i32_0 = arith.constant 0 : i32
    %c0_i32_1 = arith.constant 0 : i32
    return %arg1, %c0_i32, %c0_i32_0 : i32, i32, i32
  }
  func.func @transform_6(%arg0: i32, %arg1: i32) -> (i32, i32, i32) {
    %c0_i32 = arith.constant 0 : i32
    %c0_i32_0 = arith.constant 0 : i32
    %c0_i32_1 = arith.constant 0 : i32
    return %arg1, %c0_i32, %c0_i32_0 : i32, i32, i32
  }
  func.func @transform_7(%arg0: i32, %arg1: i32) -> (i32, i32, i32) {
    %c0_i32 = arith.constant 0 : i32
    %c0_i32_0 = arith.constant 0 : i32
    %c0_i32_1 = arith.constant 0 : i32
    return %arg1, %c0_i32, %c0_i32_0 : i32, i32, i32
  }
  func.func @transform_8(%arg0: i32, %arg1: i32) -> (i32, i32, i32) {
    %c0_i32 = arith.constant 0 : i32
    %c0_i32_0 = arith.constant 0 : i32
    %c0_i32_1 = arith.constant 0 : i32
    return %arg1, %c0_i32, %c0_i32_0 : i32, i32, i32
  }
  func.func @transform_9(%arg0: i32, %arg1: i32) -> (i32, i32, i32) {
    %c0_i32 = arith.constant 0 : i32
    %c0_i32_0 = arith.constant 0 : i32
    %c0_i32_1 = arith.constant 0 : i32
    return %arg1, %c0_i32, %c0_i32_0 : i32, i32, i32
  }
  func.func @transform_10(%arg0: i32, %arg1: i32) -> (i32, i32, i32) {
    %c0_i32 = arith.constant 0 : i32
    %c0_i32_0 = arith.constant 0 : i32
    %c0_i32_1 = arith.constant 0 : i32
    return %arg1, %c0_i32, %c0_i32_0 : i32, i32, i32
  }
  func.func @transform_11(%arg0: i32, %arg1: i32) -> (i32, i32, i32) {
    %c0_i32 = arith.constant 0 : i32
    %c0_i32_0 = arith.constant 0 : i32
    %c0_i32_1 = arith.constant 0 : i32
    return %arg1, %c0_i32, %c0_i32_0 : i32, i32, i32
  }
  func.func @transform_12(%arg0: i32, %arg1: i32) -> (i32, i32, i32) {
    %c0_i32 = arith.constant 0 : i32
    %c0_i32_0 = arith.constant 0 : i32
    %c0_i32_1 = arith.constant 0 : i32
    return %arg1, %c0_i32, %c0_i32_0 : i32, i32, i32
  }
  func.func @transform_13(%arg0: i32, %arg1: i32) -> (i32, i32, i32) {
    %c0_i32 = arith.constant 0 : i32
    %c0_i32_0 = arith.constant 0 : i32
    %c0_i32_1 = arith.constant 0 : i32
    return %arg1, %c0_i32, %c0_i32_0 : i32, i32, i32
  }
  func.func @transform_14(%arg0: i32, %arg1: i32) -> (i32, i32, i32) {
    %c0_i32 = arith.constant 0 : i32
    %c0_i32_0 = arith.constant 0 : i32
    %c0_i32_1 = arith.constant 0 : i32
    return %arg0, %c0_i32, %c0_i32_0 : i32, i32, i32
  }
}

module attributes {stable_mosaic.version = 11 : i64} {
  func.func @final_proj_kernel(%arg0: i32, %arg1: i32, %arg2: memref<64x256xf32, #tpu.memory_space<vmem>>, %arg3: memref<256x384xbf16, #tpu.memory_space<vmem>>, %arg4: memref<1x384xf32, #tpu.memory_space<vmem>>, %arg5: memref<64x384xf32, #tpu.memory_space<vmem>>) attributes {dimension_semantics = [#tpu.dimension_semantics<parallel>, #tpu.dimension_semantics<parallel>], iteration_bounds = array<i64: 1, 2>, scalar_prefetch = 0 : i64, scratch_operands = 0 : i64, tpu.core_type = #tpu.core_type<tc>, window_params = [{transform_indices = @transform_0, window_bounds = array<i64: 64, 256>}, {transform_indices = @transform_1, window_bounds = array<i64: 256, 384>}, {transform_indices = @transform_2, window_bounds = array<i64: 1, 384>}, {transform_indices = @transform_3, window_bounds = array<i64: 64, 384>}]} {
    %c0 = arith.constant 0 : index
    %c0_0 = arith.constant 0 : index
    %0 = vector.load %arg2[%c0, %c0_0] : memref<64x256xf32, #tpu.memory_space<vmem>>, vector<64x256xf32>
    %1 = arith.truncf %0 : vector<64x256xf32> to vector<64x256xbf16>
    %c0_1 = arith.constant 0 : index
    %c0_2 = arith.constant 0 : index
    %2 = vector.load %arg3[%c0_1, %c0_2] : memref<256x384xbf16, #tpu.memory_space<vmem>>, vector<256x384xbf16>
    %cst = arith.constant dense<0.000000e+00> : vector<64x384xf32>
    %3 = tpu.matmul %1, %2, %cst {dimension_numbers = #tpu.dot_dimension_numbers<[1], [0], [0], [1], [0, 0, 1, 1], [], []>} : vector<64x256xbf16>, vector<256x384xbf16>, vector<64x384xf32> -> vector<64x384xf32>
    %c0_3 = arith.constant 0 : index
    %c0_4 = arith.constant 0 : index
    %4 = vector.load %arg4[%c0_3, %c0_4] : memref<1x384xf32, #tpu.memory_space<vmem>>, vector<1x384xf32>
    %5 = vector.broadcast %4 : vector<1x384xf32> to vector<64x384xf32>
    %6 = arith.addf %3, %5 : vector<64x384xf32>
    %c0_5 = arith.constant 0 : index
    %c0_6 = arith.constant 0 : index
    %7 = vector.load %arg5[%c0_5, %c0_6] : memref<64x384xf32, #tpu.memory_space<vmem>>, vector<64x384xf32>
    tpu.vector_store %arg5[%c0_5, %c0_6], %6 {strides = array<i32>} : memref<64x384xf32, #tpu.memory_space<vmem>>, vector<64x384xf32>,
    return
  }
  func.func @transform_0(%arg0: i32, %arg1: i32) -> (i32, i32) {
    %c0_i32 = arith.constant 0 : i32
    %c0_i32_0 = arith.constant 0 : i32
    return %arg1, %c0_i32 : i32, i32
  }
  func.func @transform_1(%arg0: i32, %arg1: i32) -> (i32, i32) {
    %c0_i32 = arith.constant 0 : i32
    %c0_i32_0 = arith.constant 0 : i32
    return %c0_i32, %arg0 : i32, i32
  }
  func.func @transform_2(%arg0: i32, %arg1: i32) -> (i32, i32) {
    %c0_i32 = arith.constant 0 : i32
    %c0_i32_0 = arith.constant 0 : i32
    return %c0_i32, %arg0 : i32, i32
  }
  func.func @transform_3(%arg0: i32, %arg1: i32) -> (i32, i32) {
    %c0_i32 = arith.constant 0 : i32
    return %arg1, %arg0 : i32, i32
  }
}

</mosaic_0001>

<bundles_post_ra>
// kernel: transformer_forward.3
= control target key start
LH: loop header
LB: loop body
LE: loop exit
PB: predicated region body
PF: predicated region fallthrough
CT: control target
= control target key end

     0   :  { %8 = vsyncpa [#allocation3], 0  ;;  %s1529_s0 = inlined_call_operand.vmem [shape: f32[128,256], index: 0, kind: input, shape index: {}]   ;;  %s1530_s1 = inlined_call_operand.vmem [shape: bf16[256,384], index: 1, kind: input, shape index: {}]   ;;  %s1531_s2 = inlined_call_operand.vmem [shape: f32[1,384], index: 2, kind: input, shape index: {}]   ;;  %s1532_s3 = inlined_call_operand.hbm [shape: f32[128,384], index: 3, kind: output, shape index: {}]  }
   0x1   :  { %10 = vsyncpa [#allocation3 + $0x1], 0  ;;  %s1200_s12 = smov 0   ;;  %s1202_s13 = smov 0  }
   0x2   :  { %s1204_s14 = smov 0   ;;  %s1206_s15 = smov 0  }
   0x3   :  { %s1208_s16 = smov 0   ;;  %s1210_s17 = smov 0  }
   0x4 LB: > { %s872_s18 = sadd.s32 4294967295, %s1175_s17   ;;  %s873_s19 = sadd.s32 4294967294, %s1175_s17   ;;  %s1175_s17 = sphi %s1210_s17, %s16_s17   ;;  %s1171_s16 = sphi %s1208_s16, %s1539_s16   ;;  %s1167_s15 = sphi %s1206_s15, %s1538_s15   ;;  %s1163_s14 = sphi %s1204_s14, %s1537_s14   ;;  %s1159_s13 = sphi %s1202_s13, %s1536_s13   ;;  %s1155_s12 = sphi %s1200_s12, %s1535_s12  }
   0x5   : > { %s25_s20 = sadd.s32 1, %s1171_s16  ;;  %s115_s21 = sadd.s32 1, %s1163_s14 }
   0x6   : > { %p26_p0 = scmp.ge.s32.totalorder %s25_s20, 2  ;;  %p125_p1 = scmp.ne.s32.totalorder %s1163_s14, %s1159_s13 }
   0x7   : > { %p126_p2 = scmp.eq.s32.totalorder %s872_s18, 1  ;;  %p131_p3 = scmp.ne.s32.totalorder %s1159_s13, %s1155_s12 }
   0x8   : > { %s1541_s20 = smov (%p26_p0, %s25_s20), 0  ;;  %p132_p5 = scmp.eq.s32.totalorder %s873_s19, 1 }
   0x9   : > { %p1240_p4 = por %p126_p2, %p125_p1  ;;  %s110_s23 = ssub.s32 %s1171_s16, %s1541_s20 }
   0xa   : > { %p878_p6 = scmp.ge.s32.totalorder %s1175_s17, 1  ;;  %p113_p7 = scmp.eq.s32.totalorder %s110_s23, 0 }
   0xb   : > { %p1247_p8 = por %p132_p5, %p131_p3  ;;  %p177_p9 = scmp.lt.s32.totalorder %s1175_s17, 3 }
   0xc   : > { %s1253_s25 = scalar_select %p113_p7, %s1163_s14, %s115_s21  }
   0xd   : > { %p178_p10 = pnand %p878_p6, %p177_p9 }
   0xe   : > { %s879_s10 = sshll.u32 (!%p178_p10), %s1167_s15, 3  ;;  %s208_s28 = sand.u32 (!%p178_p10), 1, %s1159_s13  }
   0xf   : > { %181 = sbr.rel (%p178_p10) target bundleno = 324 (0x144), region = 32  ;;  %p212_p11 = scmp.lt.s32.totalorder (!%p178_p10), %s879_s10, 15 }
  0x10   : > { %s977_s5 = smul.u32 (!%p178_p10), 3072, %s1167_s15  ;;  %s1484_s15 = scalar_lea.sflag (!%p178_p10), [#allocation3], %s208_s28 }
  0x11   : > { %s1177_s18 = smov (!%p178_p10), [#allocation2]  }
  0x12   : > { %s1475_s9 = scalar_lea.hbm (!%p178_p10), %s1532_s3, %s977_s5  ;;  %s1103_s19 = sshll.u32 (!%p178_p10), %s1177_s18, 4  ;;  %s1104_s19 = int_to_ptr.vmem [resolvable:$false] %s1103_s19 }
  0x13   : > { %s1105_s21 = scalar_lea.vmem (!%p178_p10), %s1104_s19, 6144 }
  0x14   : > { %v1035_v0 = vld [vmem:[%s1530_s1 + $0xac] ss:$12 sps:$4 sm:$0xff]   ;;  %v1037_v1 = vld [vmem:[%s1530_s1 + $0xa8] ss:$12 sps:$4 sm:$0xff]   ;;  %v1040_v3 = vld [vmem:[%s1530_s1 + $0x90] ss:$12 sps:$4 sm:$0xff]  }
  0x15   : > { %593 = vmatprep.subr.bf16.mxu0 %v1035_v0  ;;  %v1038_v2 = vld [vmem:[%s1530_s1 + $0x94] ss:$12 sps:$4 sm:$0xff]   ;;  %v1041_v4 = vld [vmem:[%s1530_s1 + $0x7c] ss:$12 sps:$4 sm:$0xff]   ;;  %v1043_v5 = vld [vmem:[%s1530_s1 + $0x78] ss:$12 sps:$4 sm:$0xff]  }
  0x16   : > { %594 = vmatpush1.bf16.msra.mxu0 %v1037_v1  ;;  %v1044_v6 = vld [vmem:[%s1530_s1 + $0x64] ss:$12 sps:$4 sm:$0xff]   ;;  %v1046_v8 = vld [vmem:[%s1530_s1 + $0x60] ss:$12 sps:$4 sm:$0xff]   ;;  %v1049_v13 = vld [vmem:[%s1530_s1 + $0x48] ss:$12 sps:$4 sm:$0xff]  }
  0x17   : > { %595 = vmatprep.subr.bf16.mxu0 %v1038_v2  ;;  %v1055_v7 = vld [vmem:[%s1530_s1 + $0x170] ss:$12 sps:$4 sm:$0xff]   ;;  %v1047_v10 = vld [vmem:[%s1530_s1 + $0x4c] ss:$12 sps:$4 sm:$0xff]   ;;  %v1050_v14 = vld [vmem:[%s1530_s1 + $0x34] ss:$12 sps:$4 sm:$0xff]  }
  0x18   : > { %936 = vmatprep.subr.bf16.mxu1 %v1055_v7  ;;  %v1057_v9 = vld [vmem:[%s1530_s1 + $0xb0] ss:$12 sps:$4 sm:$0xff]   ;;  %v1060_v11 = vld [vmem:[%s1530_s1 + $0x158] ss:$12 sps:$4 sm:$0xff]   ;;  %v1065_v15 = vld [vmem:[%s1530_s1 + $0x140] ss:$12 sps:$4 sm:$0xff]  }
  0x19   : > { %937 = vmatpush3.bf16.msra.mxu1 %v1057_v9  ;;  %v1062_v12 = vld [vmem:[%s1530_s1 + $0x98] ss:$12 sps:$4 sm:$0xff]   ;;  %v1067_v16 = vld [vmem:[%s1530_s1 + $0x80] ss:$12 sps:$4 sm:$0xff]   ;;  %v1052_v17 = vld [vmem:[%s1530_s1 + $0x30] ss:$12 sps:$4 sm:$0xff]  }
  0x1a   : > { %596 = vmatpush1.bf16.msra.mxu0 %v1040_v3  ;;  %938 = vmatprep.subr.bf16.mxu1 %v1060_v11  ;;  %v1070_v18 = vld [vmem:[%s1530_s1 + $0x128] ss:$12 sps:$4 sm:$0xff]   ;;  %v1056_v21 = vld [vmem:[%s1530_s1 + $0x18] ss:$12 sps:$4 sm:$0xff]   ;;  %v1075_v22 = vld [vmem:[%s1530_s1 + $0x110] ss:$12 sps:$4 sm:$0xff]  }
  0x1b   : > { %597 = vmatprep.subr.bf16.mxu0 %v1041_v4  ;;  %v1053_v19 = vld [vmem:[%s1530_s1 + $0x1c] ss:$12 sps:$4 sm:$0xff]   ;;  %v1058_v23 = vld [vmem:[%s1530_s1 + $0x4] ss:$12 sps:$4 sm:$0xff]   ;;  %s1543_s10 = smov (!%p212_p11, %s879_s10), 15 }
  0x1c   : > { %v1072_v20 = vld [vmem:[%s1530_s1 + $0x68] ss:$12 sps:$4 sm:$0xff]   ;;  %v1077_v24 = vld [vmem:[%s1530_s1 + $0x50] ss:$12 sps:$4 sm:$0xff]   ;;  %v1080_v25 = vld [vmem:[%s1530_s1 + $0xf8] ss:$12 sps:$4 sm:$0xff]  }
  0x1d   : > { %939 = vmatpush3.bf16.msra.mxu1 %v1062_v12  ;;  %v1061_v26 = vld [vmem:[%s1530_s1] ss:$12 sps:$4 sm:$0xff]   ;;  %s935_s6 = sshll.u32 %s1543_s10, 4  ;;  %v1082_v28 = vld [vmem:[%s1530_s1 + $0x38] ss:$12 sps:$4 sm:$0xff]  }
  0x1e   : > { %598 = vmatpush1.bf16.msra.mxu0 %v1043_v5  ;;  %940 = vmatprep.subr.bf16.mxu1 %v1065_v15  ;;  %v1063_v27 = vld [vmem:[%s1530_s1 + $0x16c] ss:$12 sps:$4 sm:$0xff]   ;;  %v1066_v30 = vld [vmem:[%s1530_s1 + $0x168] ss:$12 sps:$4 sm:$0xff]   ;;  %s1352_s26 = scalar_lea.vmem %s1529_s0, %s935_s6  ;;  %v1071_v32 = vld [vmem:[%s1530_s1 + $0x150] ss:$12 sps:$4 sm:$0xff]  }
  0x1f   : > { %599 = vmatprep.subr.bf16.mxu0 %v1044_v6  ;;  %v1085_v29 = vld [vmem:[%s1530_s1 + $0xe0] ss:$12 sps:$4 sm:$0xff]   ;;  %v1090_v34 = vld [vmem:[%s1530_s1 + $0xc8] ss:$12 sps:$4 sm:$0xff]   ;;  %v235_v36 = vld [vmem:[%s1352_s26 + $0x18] sm:$0xff] }
  0x20   : > { %v1068_v31 = vld [vmem:[%s1530_s1 + $0x154] ss:$12 sps:$4 sm:$0xff]   ;;  %v233_v35 = vld [vmem:[%s1352_s26 + $0x8] sm:$0xff]  ;;  %v1076_v43 = vld [vmem:[%s1530_s1 + $0x138] ss:$12 sps:$4 sm:$0xff]  }
  0x21   : > { %941 = vmatpush3.bf16.msra.mxu1 %v1067_v16  ;;  %v1087_v33 = vld [vmem:[%s1530_s1 + $0x20] ss:$12 sps:$4 sm:$0xff]   ;;  %v1073_v37 = vld [vmem:[%s1530_s1 + $0x13c] ss:$12 sps:$4 sm:$0xff]   ;;  %v249_v39 = vpack.c.bf16 %v235_v36, %v233_v35  ;;  %v234_v41 = vld [vmem:[%s1352_s26 + $0x10] sm:$0xff] }
  0x22   : > { %600 = vmatpush1.bf16.msra.mxu0 %v1046_v8  ;;  %942 = vmatprep.subr.bf16.mxu1 %v1070_v18  ;;  %v1092_v38 = vld [vmem:[%s1530_s1 + $0x8] ss:$12 sps:$4 sm:$0xff]   ;;  %v232_v40 = vld [vmem:[%s1352_s26] sm:$0xff]  ;;  %v239_v44 = vld [vmem:[%s1352_s26 + $0x38] sm:$0xff]  ;;  %v322_v8 = vlaneseq }
  0x23   : > { %601 = vmatprep.subr.bf16.mxu0 %v1047_v10  ;;  %698 = vmatprep.mubr.bf16.mxu1 %v249_v39  ;;  %v237_v42 = vld [vmem:[%s1352_s26 + $0x28] sm:$0xff]  ;;  %v1078_v45 = vld [vmem:[%s1530_s1 + $0x124] ss:$12 sps:$4 sm:$0xff]   ;;  %v248_v46 = vpack.c.bf16 %v234_v41, %v232_v40  ;;  %v243_v53 = vld [vmem:[%s1352_s26 + $0x58] sm:$0xff] }
  0x24   : > { %625 = vmatprep.mubr.bf16.mxu0 %v249_v39  ;;  %v251_v47 = vpack.c.bf16 %v239_v44, %v237_v42  ;;  %v1081_v48 = vld [vmem:[%s1530_s1 + $0x120] ss:$12 sps:$4 sm:$0xff]   ;;  %v238_v51 = vld [vmem:[%s1352_s26 + $0x30] sm:$0xff]  ;;  %v1093_v59 = vld [vmem:[%s1530_s1 + $0xdc] ss:$12 sps:$4 sm:$0xff]   ;;  %v323_v9 = vshrl.u32 %v322_v8, 7 }
  0x25   : > { %943 = vmatpush3.bf16.msra.mxu1 %v1072_v20  ;;  %v1083_v49 = vld [vmem:[%s1530_s1 + $0x10c] ss:$12 sps:$4 sm:$0xff]   ;;  %v236_v50 = vld [vmem:[%s1352_s26 + $0x20] sm:$0xff]  ;;  %v1086_v54 = vld [vmem:[%s1530_s1 + $0x108] ss:$12 sps:$4 sm:$0xff]  }
  0x26   : > { %602 = vmatpush1.bf16.msra.mxu0 %v1049_v13  ;;  %944 = vmatprep.subr.bf16.mxu1 %v1075_v22  ;;  %v241_v52 = vld [vmem:[%s1352_s26 + $0x48] sm:$0xff]  ;;  %v1088_v55 = vld [vmem:[%s1530_s1 + $0xf4] ss:$12 sps:$4 sm:$0xff]   ;;  %v250_v56 = vpack.c.bf16 %v238_v51, %v236_v50  ;;  %v1091_v58 = vld [vmem:[%s1530_s1 + $0xf0] ss:$12 sps:$4 sm:$0xff]   ;;  %v332_v10 = vsub.s32 2, %v323_v9 }
  0x27   : > { %603 = vmatprep.subr.bf16.mxu0 %v1050_v14  ;;  %v253_v57 = vpack.c.bf16 %v243_v53, %v241_v52  ;;  %v240_v60 = vld [vmem:[%s1352_s26 + $0x40] sm:$0xff]  ;;  %v242_v61 = vld [vmem:[%s1352_s26 + $0x50] sm:$0xff]  ;;  %v245_v62 = vld [vmem:[%s1352_s26 + $0x68] sm:$0xff] }
  0x28   : > { %v247_v63 = vld [vmem:[%s1352_s26 + $0x78] sm:$0xff]  ;;  %v1096_v1 = vld [vmem:[%s1530_s1 + $0xc4] ss:$12 sps:$4 sm:$0xff]   ;;  %v252_v2 = vpack.c.bf16 %v242_v61, %v240_v60  ;;  %v1098_v4 = vld [vmem:[%s1530_s1 + $0xc0] ss:$12 sps:$4 sm:$0xff]  }
  0x29   : > { %945 = vmatpush3.bf16.msra.mxu1 %v1077_v24  ;;  %v1095_v0 = vld [vmem:[%s1530_s1 + $0xd8] ss:$12 sps:$4 sm:$0xff]   ;;  %v255_v3 = vpack.c.bf16 %v247_v63, %v245_v62  ;;  %v246_v6 = vld [vmem:[%s1352_s26 + $0x70] sm:$0xff]  ;;  %v320_v11 = vld [vmem:[%s1531_s2] sm:$0x7] }
  0x2a   : > { %604 = vmatpush1.bf16.msra.mxu0 %v1052_v17  ;;  %946 = vmatprep.subr.bf16.mxu1 %v1080_v25  ;;  %v244_v5 = vld [vmem:[%s1352_s26 + $0x60] sm:$0xff]  ;;  %s976_s26 = smul.u32 192, %s208_s28  ;;  %v333_v13 = vrot.slane %v320_v11, %v332_v10 }
  0x2b   : > { %605 = vmatprep.subr.bf16.mxu0 %v1053_v19  ;;  %v254_v7 = vpack.c.bf16 %v246_v6, %v244_v5 }
  0x2c   : > { %s1427_s4 = scalar_lea.vmem [#allocation2], %s976_s26 }
  0x2d   : > { %947 = vmatpush3.bf16.msra.mxu1 %v1082_v28  ;;  %s772_s6 = sshll.u32 %s1427_s4, 4  ;;  %s1477_s6 = int_to_ptr.vmem [resolvable:$true] %s772_s6 }
  0x2e   : > { %606 = vmatpush1.bf16.msra.mxu0 %v1056_v21  ;;  %948 = vmatprep.subr.bf16.mxu1 %v1085_v29  ;;  %s1099_s11 = scalar_lea.vmem %s1477_s6, 3072  ;;  %p1106_p1 = scmp.lt.s32.totalorder %s1477_s6, %s1104_s19 }
  0x2f   : > { %607 = vmatprep.subr.bf16.mxu0 %v1058_v23  ;;  %p1100_p12 = scmp.ne.s32.totalorder %s1477_s6, %s1099_s11  ;;  %p1107_p2 = scmp.lt.s32.totalorder %s1105_s21, %s1099_s11 }
  0x31   : > { %949 = vmatpush3.bf16.msra.mxu1 %v1087_v33  ;;  %p1101_p13 = pnand %p1100_p12, %p1240_p4  ;;  %p1108_p3 = por %p1107_p2, %p1106_p1 }
  0x32   : > { %608 = vmatpush1.bf16.msra.mxu0 %v1061_v26  ;;  %950 = vmatprep.subr.bf16.mxu1 %v1090_v34 }
  0x33   : > { %609 = vmatprep.subr.bf16.mxu0 %v1063_v27  ;;  %v324_v27 = vsub.s32 0, %v323_v9  ;;  %p1102_p0 = pneg %p1101_p13 }
  0x35   : > { %951 = vmatpush3.bf16.msra.mxu1 %v1092_v38  ;;  %v1432_v33 = vrot.slane %v320_v11, %v324_v27  ;;  %p1109_p5 = pnand %p1108_p3, %p1102_p0 }
  0x36   : > { %610 = vmatpush2.bf16.msra.mxu0 %v1066_v30  ;;  %v328_v30 = vsub.s32 1, %v323_v9 }
  0x37   : > { %611 = vmatprep.subr.bf16.mxu0 %v1068_v31 }
  0x38   : > { %699 = vmatmul.mubr.bf16.vlgmr.msra.gmra.mxu1 %v248_v46  ;;  %v1435_v36 = vrot.slane %v320_v11, %v328_v30 }
  0x39   : > { %706 = vmatprep.mubr.bf16.mxu1 %v251_v47 }
  0x3a   : > { %612 = vmatpush2.bf16.msra.mxu0 %v1071_v32 }
  0x3b   : > { %613 = vmatprep.subr.bf16.mxu0 %v1073_v37 }
  0x3e   : > { %614 = vmatpush2.bf16.msra.mxu0 %v1076_v43 }
  0x3f   : > { %615 = vmatprep.subr.bf16.mxu0 %v1078_v45 }
  0x40   : > { %707 = vmatmul.mubr.bf16.gmra.mxu1 %v250_v56 }
  0x41   : > { %714 = vmatprep.mubr.bf16.mxu1 %v253_v57 }
  0x42   : > { %616 = vmatpush2.bf16.msra.mxu0 %v1081_v48 }
  0x43   : > { %617 = vmatprep.subr.bf16.mxu0 %v1083_v49 }
  0x46   : > { %618 = vmatpush2.bf16.msra.mxu0 %v1086_v54 }
  0x47   : > { %619 = vmatprep.subr.bf16.mxu0 %v1088_v55 }
  0x48   : > { %715 = vmatmul.mubr.bf16.gmra.mxu1 %v252_v2 }
  0x49   : > { %722 = vmatprep.mubr.bf16.mxu1 %v255_v3 }
  0x4a   : > { %620 = vmatpush2.bf16.msra.mxu0 %v1091_v58 }
  0x4b   : > { %621 = vmatprep.subr.bf16.mxu0 %v1093_v59 }
  0x4e   : > { %622 = vmatpush2.bf16.msra.mxu0 %v1095_v0 }
  0x4f   : > { %623 = vmatprep.subr.bf16.mxu0 %v1096_v1 }
  0x50   : > { %723 = vmatmul.mubr.bf16.gmra.mxu1 %v254_v7 }
  0x52   : > { %624 = vmatpush2.bf16.msra.mxu0 %v1098_v4 }
  0x55   : > { %626 = vmatmul.mubr.bf16.vlgmr.msra.gmra.mxu0 %v248_v46 }
  0x56   : > { %635 = vmatprep.mubr.bf16.mxu0 %v251_v47 }
  0x5d   : > { %636 = vmatmul.mubr.bf16.gmra.mxu0 %v250_v56 }
  0x5e   : > { %645 = vmatprep.mubr.bf16.mxu0 %v253_v57 }
  0x65   : > { %646 = vmatmul.mubr.bf16.gmra.mxu0 %v252_v2 }
  0x66   : > { %655 = vmatprep.mubr.bf16.mxu0 %v255_v3 }
  0x6d   : > { %656 = vmatmul.mubr.bf16.gmra.mxu0 %v254_v7 }
  0xf8   : > { %v952_v12 = vpop.f32.mrf.mxu1 }
  0xfa   : > { %v953_v14 = vpop.f32.mrf.mxu1 }
  0xfb   : > { %v954_v15 = vadd.f32 %v953_v14, %v952_v12 }
  0xfc   : > { %v955_v16 = vpop.f32.mrf.mxu1 }
  0xfd   : > { %v701_v17 = vadd.f32 %v954_v15, %v333_v13 }
  0xfe   : > { %v956_v18 = vpop.f32.mrf.mxu1 }
  0xff   : > { %733 = vst [vmem:[%s1427_s4 + $0x10] sm:$0xff] %v701_v17  ;;  %v957_v19 = vadd.f32 %v956_v18, %v955_v16 }
 0x100   : > { %v958_v20 = vpop.f32.mrf.mxu1 }
 0x101   : > { %v704_v21 = vadd.f32 %v957_v19, %v333_v13 }
 0x102   : > { %v959_v22 = vpop.f32.mrf.mxu1 }
 0x103   : > { %736 = vst [vmem:[%s1427_s4 + $0x28] sm:$0xff] %v704_v21  ;;  %v960_v23 = vadd.f32 %v959_v22, %v958_v20 }
 0x104   : > { %v961_v24 = vpop.f32.mrf.mxu1 }
 0x105   : > { %v709_v25 = vadd.f32 %v960_v23, %v333_v13 }
 0x106   : > { %v962_v26 = vpop.f32.mrf.mxu1 }
 0x107   : > { %739 = vst [vmem:[%s1427_s4 + $0x40] sm:$0xff] %v709_v25  ;;  %v963_v28 = vadd.f32 %v962_v26, %v961_v24 }
 0x108   : > { %v964_v29 = vpop.f32.mrf.mxu1 }
 0x109   : > { %v712_v31 = vadd.f32 %v963_v28, %v333_v13 }
 0x10a   : > { %v965_v32 = vpop.f32.mrf.mxu1 }
 0x10b   : > { %742 = vst [vmem:[%s1427_s4 + $0x58] sm:$0xff] %v712_v31  ;;  %v966_v34 = vadd.f32 %v965_v32, %v964_v29 }
 0x10c   : > { %v967_v35 = vpop.f32.mrf.mxu1 }
 0x10d   : > { %v717_v37 = vadd.f32 %v966_v34, %v333_v13 }
 0x10e   : > { %v968_v39 = vpop.f32.mrf.mxu1 }
 0x10f   : > { %745 = vst [vmem:[%s1427_s4 + $0x70] sm:$0xff] %v717_v37  ;;  %v969_v41 = vadd.f32 %v968_v39, %v967_v35 }
 0x110   : > { %v970_v43 = vpop.f32.mrf.mxu1 }
 0x111   : > { %v720_v45 = vadd.f32 %v969_v41, %v333_v13 }
 0x112   : > { %v971_v47 = vpop.f32.mrf.mxu1 }
 0x113   : > { %748 = vst [vmem:[%s1427_s4 + $0x88] sm:$0xff] %v720_v45  ;;  %v972_v49 = vadd.f32 %v971_v47, %v970_v43 }
 0x114   : > { %v973_v51 = vpop.f32.mrf.mxu1 }
 0x115   : > { %v627_v38 = vpop.f32.mrf.mxu0  ;;  %v725_v53 = vadd.f32 %v972_v49, %v333_v13 }
 0x116   : > { %v628_v40 = vadd.f32 %v627_v38, %v1432_v33  ;;  %v974_v55 = vpop.f32.mrf.mxu1 }
 0x117   : > { %v629_v42 = vpop.f32.mrf.mxu0  ;;  %751 = vst [vmem:[%s1427_s4 + $0xa0] sm:$0xff] %v725_v53  ;;  %v975_v57 = vadd.f32 %v974_v55, %v973_v51 }
 0x118   : > { %731 = vst [vmem:[%s1427_s4] sm:$0xff] %v628_v40  ;;  %v630_v44 = vadd.f32 %v629_v42, %v1435_v36 }
 0x119   : > { %v631_v46 = vpop.f32.mrf.mxu0  ;;  %v728_v60 = vadd.f32 %v975_v57, %v333_v13 }
 0x11a   : > { %732 = vst [vmem:[%s1427_s4 + $0x8] sm:$0xff] %v630_v44  ;;  %v632_v48 = vadd.f32 %v631_v46, %v1432_v33 }
 0x11b   : > { %v633_v50 = vpop.f32.mrf.mxu0  ;;  %754 = vst [vmem:[%s1427_s4 + $0xb8] sm:$0xff] %v728_v60 }
 0x11c   : > { %734 = vst [vmem:[%s1427_s4 + $0x18] sm:$0xff] %v632_v48  ;;  %v634_v52 = vadd.f32 %v633_v50, %v1435_v36 }
 0x11d   : > { %v637_v54 = vpop.f32.mrf.mxu0 }
 0x11e   : > { %735 = vst [vmem:[%s1427_s4 + $0x20] sm:$0xff] %v634_v52  ;;  %v638_v56 = vadd.f32 %v637_v54, %v1432_v33 }
 0x11f   : > { %v639_v58 = vpop.f32.mrf.mxu0 }
 0x120   : > { %737 = vst [vmem:[%s1427_s4 + $0x30] sm:$0xff] %v638_v56  ;;  %v640_v59 = vadd.f32 %v639_v58, %v1435_v36 }
 0x121   : > { %v641_v61 = vpop.f32.mrf.mxu0 }
 0x122   : > { %738 = vst [vmem:[%s1427_s4 + $0x38] sm:$0xff] %v640_v59  ;;  %v642_v62 = vadd.f32 %v641_v61, %v1432_v33 }
 0x123   : > { %v643_v63 = vpop.f32.mrf.mxu0 }
 0x124   : > { %740 = vst [vmem:[%s1427_s4 + $0x48] sm:$0xff] %v642_v62  ;;  %v644_v0 = vadd.f32 %v643_v63, %v1435_v36 }
 0x125   : > { %v647_v1 = vpop.f32.mrf.mxu0 }
 0x126   : > { %741 = vst [vmem:[%s1427_s4 + $0x50] sm:$0xff] %v644_v0  ;;  %v648_v2 = vadd.f32 %v647_v1, %v1432_v33 }
 0x127   : > { %v649_v3 = vpop.f32.mrf.mxu0 }
 0x128   : > { %743 = vst [vmem:[%s1427_s4 + $0x60] sm:$0xff] %v648_v2  ;;  %v650_v4 = vadd.f32 %v649_v3, %v1435_v36 }
 0x129   : > { %v651_v5 = vpop.f32.mrf.mxu0 }
 0x12a   : > { %744 = vst [vmem:[%s1427_s4 + $0x68] sm:$0xff] %v650_v4  ;;  %v652_v6 = vadd.f32 %v651_v5, %v1432_v33 }
 0x12b   : > { %v653_v7 = vpop.f32.mrf.mxu0 }
 0x12c   : > { %746 = vst [vmem:[%s1427_s4 + $0x78] sm:$0xff] %v652_v6  ;;  %v654_v8 = vadd.f32 %v653_v7, %v1435_v36 }
 0x12d   : > { %v657_v9 = vpop.f32.mrf.mxu0 }
 0x12e   : > { %747 = vst [vmem:[%s1427_s4 + $0x80] sm:$0xff] %v654_v8  ;;  %v658_v10 = vadd.f32 %v657_v9, %v1432_v33 }
 0x12f   : > { %v659_v11 = vpop.f32.mrf.mxu0 }
 0x130   : > { %749 = vst [vmem:[%s1427_s4 + $0x90] sm:$0xff] %v658_v10  ;;  %v660_v12 = vadd.f32 %v659_v11, %v1435_v36 }
 0x131   : > { %v661_v13 = vpop.f32.mrf.mxu0 }
 0x132   : > { %750 = vst [vmem:[%s1427_s4 + $0x98] sm:$0xff] %v660_v12  ;;  %v662_v14 = vadd.f32 %v661_v13, %v1432_v33 }
 0x133   : > { %v663_v15 = vpop.f32.mrf.mxu0 }
 0x134   : > { %752 = vst [vmem:[%s1427_s4 + $0xa8] sm:$0xff] %v662_v14  ;;  %v664_v16 = vadd.f32 %v663_v15, %v1435_v36 }
 0x136   : > { %753 = vst [vmem:[%s1427_s4 + $0xb0] sm:$0xff] %v664_v16 }
 0x137   : > { %1112 = shalt.err (!%p1109_p5)
}
 0x138   : > { %s1113_s23 = scalar_lea.hbm %s1475_s9, 3072  ;;  %s1117_s28 = scalar_lea.hbm %s1532_s3, 6144 }
 0x139   : > { %p1114_p6 = scmp.ne.s32.totalorder %s1475_s9, %s1113_s23  ;;  %p1118_p10 = scmp.lt.s32.totalorder %s1475_s9, %s1532_s3 }
 0x13a   : > { %p1119_p11 = scmp.lt.s32.totalorder %s1117_s28, %s1113_s23 }
 0x13b   : > { %p1115_p7 = pnand %p1114_p6, %p1240_p4 }
 0x13c   : > { %p1120_p12 = por %p1119_p11, %p1118_p10 }
 0x13d   : > { %p1116_p9 = pneg %p1115_p7 }
 0x13f   : > { %p1121_p13 = pnand %p1120_p12, %p1116_p9 }
 0x141   : > { %1124 = shalt.err (!%p1121_p13)
}
 0x142   : > { %s1178_s26 = smov 384   ;;  %s1179_s4 = smov 24  }
 0x143   : > { %978 = dma.vmem_to_hbm [thread:$0]  (%p1240_p4), %s1477_s6, 3072, %s1475_s9, %s1484_s15, %s1178_s26, %s1178_s26, %s1179_s4  }
 0x144 PF: > { %p984_p0 = scmp.ge.s32.totalorder %s1175_s17, 2  ;;  %s787_s5 = sand.u32 1, %s1155_s12  }
 0x145   : > { %s788_s7 = scalar_lea.sflag [#allocation3], %s787_s5 }
 0x146   : > { %p981_p1 = pnand %p984_p0, %p1247_p8 }
 0x148   : > { %p982_p2 = pneg %p981_p1 }
 0x14a   : > { %1150 = dma.done.wait (%p982_p2), %s788_s7, 3072  }
 0x14b   : > { %1152 = vsyncadd (%p982_p2), %s788_s7, 4294964224  ;;  %s16_s17 = sadd.s32 1, %s1175_s17   ;;  %s1535_s12 = smov %s1159_s13 }
 0x14c   : > { %p13_p3 = scmp.ge.s32.totalorder %s16_s17, 4   ;;  %s1536_s13 = smov %s1163_s14 }
 0x14d   : > { %s1537_s14 = smov %s1253_s25  ;;  %s1538_s15 = smov %s1171_s16 }
 0x14e   : > { %s1539_s16 = smov %s1541_s20  ;;  %15 = sbr.rel (!%p13_p3) target bundleno = 4 (0x4), region = 73 }
 0x153   :  { %793 = vsyncpa [#allocation3], 1 }
 0x154   :  { %795 = vsyncpa [#allocation3 + $0x1], 1 }

// kernel: transformer_forward.2
= control target key start
LH: loop header
LB: loop body
LE: loop exit
PB: predicated region body
PF: predicated region fallthrough
CT: control target
= control target key end

     0   :  { %s5395_s29 = smov 0   ;;  %s5397_s30 = smov 0   ;;  %s6683_s0 = inlined_call_operand.vmem [shape: f32[64,64], index: 0, kind: input, shape index: {}]   ;;  %s6684_s1 = inlined_call_operand.vmem [shape: f32[2,64,256], index: 1, kind: input, shape index: {}]   ;;  %s6685_s2 = inlined_call_operand.vmem [shape: bf16[2,256,768], index: 2, kind: input, shape index: {}]   ;;  %s6686_s3 = inlined_call_operand.vmem [shape: f32[2,1,768], index: 3, kind: input, shape index: {}]   ;;  %s6687_s4 = inlined_call_operand.vmem [shape: bf16[2,256,256], index: 4, kind: input, shape index: {}]   ;;  %s6688_s5 = inlined_call_operand.vmem [shape: f32[2,1,256], index: 5, kind: input, shape index: {}]   ;;  %s6689_s6 = inlined_call_operand.vmem [shape: f32[2,1,256], index: 6, kind: input, shape index: {}]   ;;  %s6690_s7 = inlined_call_operand.vmem [shape: f32[2,1,256], index: 7, kind: input, shape index: {}]   ;;  %s6691_s8 = inlined_call_operand.vmem [shape: bf16[2,256,512], index: 8, kind: input, shape index: {}]   ;;  %s6692_s9 = inlined_call_operand.vmem [shape: f32[2,1,512], index: 9, kind: input, shape index: {}]   ;;  %s6693_s10 = inlined_call_operand.vmem [shape: bf16[2,512,256], index: 10, kind: input, shape index: {}]   ;;  %s6694_s11 = inlined_call_operand.vmem [shape: f32[2,1,256], index: 11, kind: input, shape index: {}]   ;;  %s6695_s12 = inlined_call_operand.vmem [shape: f32[2,1,256], index: 12, kind: input, shape index: {}]   ;;  %s6696_s13 = inlined_call_operand.vmem [shape: f32[2,1,256], index: 13, kind: input, shape index: {}]   ;;  %s6697_s14 = inlined_call_operand.vmem [shape: f32[2,64,256], index: 14, kind: output, shape index: {}]  }
   0x1   :  { %6704 = sst [smem:[#allocation10_spill]] %s6683_s0  ;;  %s5399_s15 = smov 0  }
   0x2   :  { %6705 = sst [smem:[#allocation11_spill]] %s6684_s1  ;;  %s5401_s16 = smov 0  }
   0x3   :  { %6706 = sst [smem:[#allocation12_spill]] %s6685_s2  ;;  %s5403_s17 = smov 0  }
   0x4   :  { %6707 = sst [smem:[#allocation13_spill]] %s6686_s3 }
   0x5   :  { %6708 = sst [smem:[#allocation14_spill]] %s6687_s4 }
   0x6   :  { %6709 = sst [smem:[#allocation15_spill]] %s6688_s5 }
   0x7   :  { %6710 = sst [smem:[#allocation16_spill]] %s6691_s8 }
   0x8 LB: > { %6711 = sst [smem:[#allocation3_spill]] %s5302_s29  ;;  %s33_s18 = sadd.s32 1, %s5310_s15  ;;  %s5318_s17 = sphi %s5403_s17, %s24_s17   ;;  %s5314_s16 = sphi %s5401_s16, %s6735_s16   ;;  %s5310_s15 = sphi %s5399_s15, %s6734_s15   ;;  %s5306_s30 = sphi %s5397_s30, %s6733_s30   ;;  %s5302_s29 = sphi %s5395_s29, %s6732_s29  }
   0x9   : > { %6712 = sst [smem:[#allocation4_spill]] %s5310_s15  ;;  %s36_s19 = sadd.s32 1, %s5314_s16 }
   0xa   : > { %6713 = sst [smem:[#allocation5_spill]] %s5314_s16  ;;  %p34_p0 = scmp.ge.s32.totalorder %s33_s18, 2 }
   0xb   : > { %6714 = sst [smem:[#allocation6_spill]] %s5318_s17  ;;  %p4303_p1 = scmp.ge.s32.totalorder %s5318_s17, 1 }
   0xc   : > { %p536_p2 = scmp.lt.s32.totalorder %s5318_s17, 5  ;;  %s6737_s18 = smov (%p34_p0, %s33_s18), 0 }
   0xd   : > { %6715 = sst [smem:[#allocation7_spill]] %s6737_s18  ;;  %s6739_s19 = smov (!%p34_p0, %s36_s19), %s5314_s16 }
   0xe   : > { %p537_p3 = pnand %p4303_p1, %p536_p2  ;;  %p38_p4 = scmp.ge.s32.totalorder %s6739_s19, 2 }
  0x10   : > { %s6741_s19 = smov (%p38_p4, %s6739_s19), 0  ;;  %540 = sbr.rel (%p537_p3) target bundleno = 2383 (0x94f), region = 76 }
  0x11   : > { %6716 = sst [smem:[#allocation8_spill]] %s6741_s19 }
  0x15   : > { %p634_p5 = scmp.lt.s32.totalorder %s5306_s30, 1  ;;  %p639_p6 = scmp.lt.s32.totalorder %s5302_s29, 1 }
  0x16   : > { %s6717_s1 = sld [smem:[#allocation11_spill]] }
  0x17   : > { %s6743_s30 = smov (!%p634_p5, %s5306_s30), 1  ;;  %s6718_s2 = sld [smem:[#allocation12_spill]] }
  0x18   : > { %s640_s20 = scalar_select %p639_p6, %s5302_s29, 1 }
  0x19   : > { %s4613_s21 = sshll.u32 %s6743_s30, 7  ;;  %s6719_s4 = sld [smem:[#allocation14_spill]] }
  0x1a   : > { %s4730_s25 = smul.u32 768, %s640_s20  ;;  %s4614_s27 = sshll.u32 %s640_s20, 8 }
  0x1b   : > { %s4731_s26 = smul.u32 6, %s640_s20  ;;  %s6721_s3 = sld [smem:[#allocation13_spill]] }
  0x1c   : > { %s5432_s24 = scalar_lea.vmem %s6717_s1, %s4613_s21  ;;  %s5449_s22 = sshll.u32 %s640_s20, 1 }
  0x1d   : > { %s5437_s19 = scalar_lea.vmem %s6718_s2, %s4730_s25  ;;  %s4615_s28 = sshll.u32 %s640_s20, 9 }
  0x1e   : > { %s6723_s8 = sld [smem:[#allocation16_spill]]  ;;  %s4314_s1 = sshll.u32 %s640_s20, 2 }
  0x1f   : > { %s5442_s17 = scalar_lea.vmem %s6719_s4, %s4614_s27  ;;  %s5476_s15 = scalar_lea.vmem %s6693_s10, %s4615_s28 }
  0x20   : > { %6720 = sst [smem:[#allocation9_spill]] %s5442_s17  ;;  %s5471_s17 = scalar_lea.vmem %s6692_s9, %s4314_s1 }
  0x21   : > { %s5447_s29 = scalar_lea.vmem %s6721_s3, %s4731_s26  ;;  %s682_s0 = scalar_lea.vmem %s6694_s11, %s5449_s22 }
  0x22   : > { %s686_s2 = scalar_lea.vmem %s6695_s12, %s5449_s22  ;;  %s5493_s23 = scalar_lea.vmem %s6697_s14, %s4613_s21 }
  0x23   : > { %s6724_s5 = sld [smem:[#allocation3_spill]] }
  0x24   : > { %s5466_s3 = scalar_lea.vmem %s6723_s8, %s4615_s28  ;;  %s690_s8 = scalar_lea.vmem %s6696_s13, %s5449_s22 }
  0x29   : > { %p4322_p7 = scmp.ne.s32.totalorder %s6724_s5, 0 }
  0x2b   : > { %700 = sbr.rel (%p4322_p7) target bundleno = 57 (0x39), region = 80 }
  0x30   : > { %v701_v0 = vld [vmem:[%s5432_s24] sm:$0xff]  ;;  %v702_v1 = vld [vmem:[%s5432_s24 + $0x8] sm:$0xff]  ;;  %v703_v2 = vld [vmem:[%s5432_s24 + $0x10] sm:$0xff] }
  0x31   : > { %717 = vst [vmem:[%s5493_s23] sm:$0xff] %v701_v0  ;;  %718 = vst [vmem:[%s5493_s23 + $0x8] sm:$0xff] %v702_v1  ;;  %v704_v3 = vld [vmem:[%s5432_s24 + $0x18] sm:$0xff]  ;;  %v705_v4 = vld [vmem:[%s5432_s24 + $0x20] sm:$0xff] }
  0x32   : > { %719 = vst [vmem:[%s5493_s23 + $0x10] sm:$0xff] %v703_v2  ;;  %v706_v5 = vld [vmem:[%s5432_s24 + $0x28] sm:$0xff]  ;;  %720 = vst [vmem:[%s5493_s23 + $0x18] sm:$0xff] %v704_v3  ;;  %v707_v6 = vld [vmem:[%s5432_s24 + $0x30] sm:$0xff] }
  0x33   : > { %721 = vst [vmem:[%s5493_s23 + $0x20] sm:$0xff] %v705_v4  ;;  %722 = vst [vmem:[%s5493_s23 + $0x28] sm:$0xff] %v706_v5  ;;  %v708_v7 = vld [vmem:[%s5432_s24 + $0x38] sm:$0xff]  ;;  %v709_v8 = vld [vmem:[%s5432_s24 + $0x40] sm:$0xff] }
  0x34   : > { %723 = vst [vmem:[%s5493_s23 + $0x30] sm:$0xff] %v707_v6  ;;  %724 = vst [vmem:[%s5493_s23 + $0x38] sm:$0xff] %v708_v7  ;;  %v710_v9 = vld [vmem:[%s5432_s24 + $0x48] sm:$0xff]  ;;  %v711_v10 = vld [vmem:[%s5432_s24 + $0x50] sm:$0xff] }
  0x35   : > { %725 = vst [vmem:[%s5493_s23 + $0x40] sm:$0xff] %v709_v8  ;;  %v712_v11 = vld [vmem:[%s5432_s24 + $0x58] sm:$0xff]  ;;  %726 = vst [vmem:[%s5493_s23 + $0x48] sm:$0xff] %v710_v9  ;;  %v713_v12 = vld [vmem:[%s5432_s24 + $0x60] sm:$0xff] }
  0x36   : > { %727 = vst [vmem:[%s5493_s23 + $0x50] sm:$0xff] %v711_v10  ;;  %728 = vst [vmem:[%s5493_s23 + $0x58] sm:$0xff] %v712_v11  ;;  %v714_v13 = vld [vmem:[%s5432_s24 + $0x68] sm:$0xff]  ;;  %v715_v14 = vld [vmem:[%s5432_s24 + $0x70] sm:$0xff] }
  0x37   : > { %729 = vst [vmem:[%s5493_s23 + $0x60] sm:$0xff] %v713_v12  ;;  %730 = vst [vmem:[%s5493_s23 + $0x68] sm:$0xff] %v714_v13  ;;  %v716_v15 = vld [vmem:[%s5432_s24 + $0x78] sm:$0xff] }
  0x38   : > { %731 = vst [vmem:[%s5493_s23 + $0x70] sm:$0xff] %v715_v14  ;;  %732 = vst [vmem:[%s5493_s23 + $0x78] sm:$0xff] %v716_v15 }
  0x39 PF: > { %v4772_v16 = vld [vmem:[%s5437_s19 + $0x15c] ss:$24 sps:$4 sm:$0xff]   ;;  %v4774_v17 = vld [vmem:[%s5437_s19 + $0x158] ss:$24 sps:$4 sm:$0xff]   ;;  %v4775_v18 = vld [vmem:[%s5437_s19 + $0x12c] ss:$24 sps:$4 sm:$0xff]   ;;  %s6729_s27 = scalar_lea.vmem %s6689_s6, %s5449_s22  ;;  %s6730_s4 = scalar_lea.vmem %s6690_s7, %s5449_s22 }
  0x3a   : > { %1438 = vmatprep.subr.bf16.mxu1 %v4772_v16  ;;  %v4777_v19 = vld [vmem:[%s5437_s19 + $0x128] ss:$24 sps:$4 sm:$0xff]   ;;  %v4778_v20 = vld [vmem:[%s5437_s19 + $0xfc] ss:$24 sps:$4 sm:$0xff]   ;;  %v4780_v21 = vld [vmem:[%s5437_s19 + $0xf8] ss:$24 sps:$4 sm:$0xff]  }
  0x3b   : > { %1439 = vmatpush1.bf16.msra.mxu1 %v4774_v17  ;;  %v4781_v22 = vld [vmem:[%s5437_s19 + $0xcc] ss:$24 sps:$4 sm:$0xff]   ;;  %v4783_v23 = vld [vmem:[%s5437_s19 + $0xc8] ss:$24 sps:$4 sm:$0xff]   ;;  %v4784_v24 = vld [vmem:[%s5437_s19 + $0x9c] ss:$24 sps:$4 sm:$0xff]  }
  0x3c   : > { %1440 = vmatprep.subr.bf16.mxu1 %v4775_v18  ;;  %v4786_v25 = vld [vmem:[%s5437_s19 + $0x98] ss:$24 sps:$4 sm:$0xff]   ;;  %v4804_v26 = vld [vmem:[%s5437_s19 + $0x154] ss:$24 sps:$4 sm:$0xff]   ;;  %v4810_v29 = vld [vmem:[%s5437_s19 + $0x124] ss:$24 sps:$4 sm:$0xff]  }
  0x3d   : > { %v4807_v27 = vld [vmem:[%s5437_s19 + $0x150] ss:$24 sps:$4 sm:$0xff]   ;;  %v4787_v28 = vld [vmem:[%s5437_s19 + $0x6c] ss:$24 sps:$4 sm:$0xff]   ;;  %1365 = vmatprep.subr.bf16.mxu0 %v4804_v26  ;;  %v4813_v30 = vld [vmem:[%s5437_s19 + $0x120] ss:$24 sps:$4 sm:$0xff]  }
  0x3e   : > { %1366 = vmatpush1.bf16.msra.mxu0 %v4807_v27  ;;  %v4789_v31 = vld [vmem:[%s5437_s19 + $0x68] ss:$24 sps:$4 sm:$0xff]   ;;  %v4790_v32 = vld [vmem:[%s5437_s19 + $0x3c] ss:$24 sps:$4 sm:$0xff]   ;;  %v4792_v35 = vld [vmem:[%s5437_s19 + $0x38] ss:$24 sps:$4 sm:$0xff]  }
  0x3f   : > { %1441 = vmatpush1.bf16.msra.mxu1 %v4777_v19  ;;  %1367 = vmatprep.subr.bf16.mxu0 %v4810_v29  ;;  %v4816_v33 = vld [vmem:[%s5437_s19 + $0xf4] ss:$24 sps:$4 sm:$0xff]   ;;  %v4819_v34 = vld [vmem:[%s5437_s19 + $0xf0] ss:$24 sps:$4 sm:$0xff]   ;;  %v4822_v36 = vld [vmem:[%s5437_s19 + $0xc4] ss:$24 sps:$4 sm:$0xff]  }
  0x40   : > { %1442 = vmatprep.subr.bf16.mxu1 %v4778_v20  ;;  %v4793_v37 = vld [vmem:[%s5437_s19 + $0xc] ss:$24 sps:$4 sm:$0xff]   ;;  %v4795_v38 = vld [vmem:[%s5437_s19 + $0x8] ss:$24 sps:$4 sm:$0xff]   ;;  %v4796_v41 = vld [vmem:[%s5437_s19 + $0x2dc] ss:$24 sps:$4 sm:$0xff]  }
  0x41   : > { %v4825_v39 = vld [vmem:[%s5437_s19 + $0xc0] ss:$24 sps:$4 sm:$0xff]   ;;  %v4828_v40 = vld [vmem:[%s5437_s19 + $0x94] ss:$24 sps:$4 sm:$0xff]   ;;  %v4831_v44 = vld [vmem:[%s5437_s19 + $0x90] ss:$24 sps:$4 sm:$0xff]  }
  0x42   : > { %1368 = vmatpush1.bf16.msra.mxu0 %v4813_v30  ;;  %v734_v42 = vld [vmem:[%s5493_s23 + $0x8] sm:$0xff]  ;;  %v736_v43 = vld [vmem:[%s5493_s23 + $0x18] sm:$0xff]  ;;  %v733_v10 = vld [vmem:[%s5493_s23] sm:$0xff]  ;;  %s6725_s21 = sld [smem:[#allocation10_spill]]  ;;  %vm1685_vm0 = vcmask 523264  }
  0x43   : > { %1443 = vmatpush1.bf16.msra.mxu1 %v4780_v21  ;;  %1369 = vmatprep.subr.bf16.mxu0 %v4816_v33  ;;  %v5557_v45 = vpack.c.bf16 %v736_v43, %v734_v42  ;;  %v4798_v46 = vld [vmem:[%s5437_s19 + $0x2d8] ss:$24 sps:$4 sm:$0xff]   ;;  %v4834_v47 = vld [vmem:[%s5437_s19 + $0x64] ss:$24 sps:$4 sm:$0xff]   ;;  %v4801_v50 = vld [vmem:[%s5437_s19 + $0x2a8] ss:$24 sps:$4 sm:$0xff]  }
  0x44   : > { %1444 = vmatprep.subr.bf16.mxu1 %v4781_v22  ;;  %v4799_v48 = vld [vmem:[%s5437_s19 + $0x2ac] ss:$24 sps:$4 sm:$0xff]   ;;  %v4837_v49 = vld [vmem:[%s5437_s19 + $0x60] ss:$24 sps:$4 sm:$0xff]   ;;  %v4802_v52 = vld [vmem:[%s5437_s19 + $0x27c] ss:$24 sps:$4 sm:$0xff]  }
  0x45   : > { %1470 = vmatprep.mubr.bf16.mxu1 %v5557_v45  ;;  %1397 = vmatprep.mubr.bf16.mxu0 %v5557_v45  ;;  %v4838_v51 = vld [vmem:[%s5437_s19 + $0x34] ss:$24 sps:$4 sm:$0xff]   ;;  %v4840_v53 = vld [vmem:[%s5437_s19 + $0x30] ss:$24 sps:$4 sm:$0xff]   ;;  %v4841_v55 = vld [vmem:[%s5437_s19 + $0x4] ss:$24 sps:$4 sm:$0xff]  }
  0x46   : > { %1370 = vmatpush1.bf16.msra.mxu0 %v4819_v34  ;;  %v4806_v54 = vld [vmem:[%s5437_s19 + $0x278] ss:$24 sps:$4 sm:$0xff]   ;;  %v4808_v56 = vld [vmem:[%s5437_s19 + $0x24c] ss:$24 sps:$4 sm:$0xff]   ;;  %v4812_v58 = vld [vmem:[%s5437_s19 + $0x248] ss:$24 sps:$4 sm:$0xff]  }
  0x47   : > { %1445 = vmatpush1.bf16.msra.mxu1 %v4783_v23  ;;  %1371 = vmatprep.subr.bf16.mxu0 %v4822_v36  ;;  %v4843_v57 = vld [vmem:[%s5437_s19] ss:$24 sps:$4 sm:$0xff]   ;;  %v4844_v59 = vld [vmem:[%s5437_s19 + $0x2d4] ss:$24 sps:$4 sm:$0xff]   ;;  %v4846_v61 = vld [vmem:[%s5437_s19 + $0x2d0] ss:$24 sps:$4 sm:$0xff]  }
  0x48   : > { %1446 = vmatprep.subr.bf16.mxu1 %v4784_v24  ;;  %v4814_v60 = vld [vmem:[%s5437_s19 + $0x21c] ss:$24 sps:$4 sm:$0xff]   ;;  %v4818_v62 = vld [vmem:[%s5437_s19 + $0x218] ss:$24 sps:$4 sm:$0xff]   ;;  %v4820_v0 = vld [vmem:[%s5437_s19 + $0x1ec] ss:$24 sps:$4 sm:$0xff]  }
  0x49   : > { %v4847_v63 = vld [vmem:[%s5437_s19 + $0x2a4] ss:$24 sps:$4 sm:$0xff]   ;;  %v4849_v1 = vld [vmem:[%s5437_s19 + $0x2a0] ss:$24 sps:$4 sm:$0xff]   ;;  %v4850_v3 = vld [vmem:[%s5437_s19 + $0x274] ss:$24 sps:$4 sm:$0xff]  }
  0x4a   : > { %1372 = vmatpush1.bf16.msra.mxu0 %v4825_v39  ;;  %v4824_v2 = vld [vmem:[%s5437_s19 + $0x1e8] ss:$24 sps:$4 sm:$0xff]   ;;  %v4826_v4 = vld [vmem:[%s5437_s19 + $0x1bc] ss:$24 sps:$4 sm:$0xff]   ;;  %v4830_v6 = vld [vmem:[%s5437_s19 + $0x1b8] ss:$24 sps:$4 sm:$0xff]  }
  0x4b   : > { %1447 = vmatpush1.bf16.msra.mxu1 %v4786_v25  ;;  %1373 = vmatprep.subr.bf16.mxu0 %v4828_v40  ;;  %v4852_v5 = vld [vmem:[%s5437_s19 + $0x270] ss:$24 sps:$4 sm:$0xff]   ;;  %v4853_v7 = vld [vmem:[%s5437_s19 + $0x244] ss:$24 sps:$4 sm:$0xff]   ;;  %v4855_v12 = vld [vmem:[%s5437_s19 + $0x240] ss:$24 sps:$4 sm:$0xff]  }
  0x4c   : > { %1448 = vmatprep.subr.bf16.mxu1 %v4787_v28  ;;  %v4832_v8 = vld [vmem:[%s5437_s19 + $0x18c] ss:$24 sps:$4 sm:$0xff]   ;;  %v4836_v9 = vld [vmem:[%s5437_s19 + $0x188] ss:$24 sps:$4 sm:$0xff]   ;;  %v735_v11 = vld [vmem:[%s5493_s23 + $0x10] sm:$0xff]  ;;  %s6726_s24 = sld [smem:[#allocation9_spill]] }
  0x4d   : > { %v738_v13 = vld [vmem:[%s5493_s23 + $0x28] sm:$0xff]  ;;  %v740_v15 = vld [vmem:[%s5493_s23 + $0x38] sm:$0xff]  ;;  %v5595_v16 = vpack.c.bf16 %v735_v11, %v733_v10  ;;  %v737_v20 = vld [vmem:[%s5493_s23 + $0x20] sm:$0xff]  ;;  %v855_v10 = vlaneseq  ;;  %s6727_s26 = sld [smem:[#allocation15_spill]] }
  0x4e   : > { %1374 = vmatpush1.bf16.msra.mxu0 %v4831_v44  ;;  %v4856_v14 = vld [vmem:[%s5437_s19 + $0x214] ss:$24 sps:$4 sm:$0xff]   ;;  %v4858_v17 = vld [vmem:[%s5437_s19 + $0x210] ss:$24 sps:$4 sm:$0xff]   ;;  %v5598_v18 = vpack.c.bf16 %v740_v15, %v738_v13  ;;  %v4859_v19 = vld [vmem:[%s5437_s19 + $0x1e4] ss:$24 sps:$4 sm:$0xff]  }
  0x4f   : > { %1449 = vmatpush1.bf16.msra.mxu1 %v4789_v31  ;;  %1375 = vmatprep.subr.bf16.mxu0 %v4834_v47  ;;  %v739_v21 = vld [vmem:[%s5493_s23 + $0x30] sm:$0xff]  ;;  %v4861_v22 = vld [vmem:[%s5437_s19 + $0x1e0] ss:$24 sps:$4 sm:$0xff]   ;;  %v742_v23 = vld [vmem:[%s5493_s23 + $0x48] sm:$0xff]  ;;  %v5688_v13 = vshrl.u32 %v855_v10, 7 }
  0x50   : > { %1450 = vmatprep.subr.bf16.mxu1 %v4790_v32  ;;  %v4862_v24 = vld [vmem:[%s5437_s19 + $0x1b4] ss:$24 sps:$4 sm:$0xff]   ;;  %v744_v25 = vld [vmem:[%s5493_s23 + $0x58] sm:$0xff]  ;;  %v4864_v26 = vld [vmem:[%s5437_s19 + $0x1b0] ss:$24 sps:$4 sm:$0xff]   ;;  %v5611_v28 = vpack.c.bf16 %v739_v21, %v737_v20 }
  0x51   : > { %v4865_v27 = vld [vmem:[%s5437_s19 + $0x184] ss:$24 sps:$4 sm:$0xff]   ;;  %v5613_v29 = vpack.c.bf16 %v744_v25, %v742_v23  ;;  %v4867_v30 = vld [vmem:[%s5437_s19 + $0x180] ss:$24 sps:$4 sm:$0xff]   ;;  %v743_v32 = vld [vmem:[%s5493_s23 + $0x50] sm:$0xff] }
  0x52   : > { %1376 = vmatpush1.bf16.msra.mxu0 %v4837_v49  ;;  %v741_v31 = vld [vmem:[%s5493_s23 + $0x40] sm:$0xff]  ;;  %v746_v34 = vld [vmem:[%s5493_s23 + $0x68] sm:$0xff] }
  0x53   : > { %1451 = vmatpush1.bf16.msra.mxu1 %v4792_v35  ;;  %1377 = vmatprep.subr.bf16.mxu0 %v4838_v51  ;;  %v4870_v33 = vld [vmem:[%s5437_s19 + $0x164] ss:$24 sps:$4 sm:$0xff]   ;;  %v4868_v36 = vld [vmem:[%s5437_s19 + $0x160] ss:$24 sps:$4 sm:$0xff]   ;;  %v4871_v42 = vld [vmem:[%s5437_s19 + $0x130] ss:$24 sps:$4 sm:$0xff]   ;;  %s6728_s28 = scalar_lea.vmem %s6727_s26, %s5449_s22 }
  0x54   : > { %1452 = vmatprep.subr.bf16.mxu1 %v4793_v37  ;;  %v748_v35 = vld [vmem:[%s5493_s23 + $0x78] sm:$0xff]  ;;  %v5624_v37 = vpack.c.bf16 %v743_v32, %v741_v31  ;;  %v745_v40 = vld [vmem:[%s5493_s23 + $0x60] sm:$0xff]  ;;  %v4879_v47 = vld [vmem:[%s5437_s19 + $0xd4] ss:$24 sps:$4 sm:$0xff]  }
  0x55   : > { %v5627_v39 = vpack.c.bf16 %v748_v35, %v746_v34  ;;  %v4876_v43 = vld [vmem:[%s5437_s19 + $0x104] ss:$24 sps:$4 sm:$0xff]   ;;  %v4874_v44 = vld [vmem:[%s5437_s19 + $0x100] ss:$24 sps:$4 sm:$0xff]   ;;  %v4885_v51 = vld [vmem:[%s5437_s19 + $0x74] ss:$24 sps:$4 sm:$0xff]  }
  0x56   : > { %1378 = vmatpush1.bf16.msra.mxu0 %v4840_v53  ;;  %v4882_v49 = vld [vmem:[%s5437_s19 + $0xa4] ss:$24 sps:$4 sm:$0xff]  }
  0x57   : > { %1453 = vmatpush1.bf16.msra.mxu1 %v4795_v38  ;;  %1379 = vmatprep.subr.bf16.mxu0 %v4841_v55  ;;  %v4873_v38 = vld [vmem:[%s5437_s19 + $0x134] ss:$24 sps:$4 sm:$0xff]   ;;  %v4888_v53 = vld [vmem:[%s5437_s19 + $0x44] ss:$24 sps:$4 sm:$0xff]  }
  0x58   : > { %1454 = vmatprep.subr.bf16.mxu1 %v4796_v41  ;;  %v747_v41 = vld [vmem:[%s5493_s23 + $0x70] sm:$0xff] }
  0x59   : > { %v4891_v55 = vld [vmem:[%s5437_s19 + $0x14] ss:$24 sps:$4 sm:$0xff]  }
  0x5a   : > { %1380 = vmatpush1.bf16.msra.mxu0 %v4843_v57  ;;  %v4894_v57 = vld [vmem:[%s5437_s19 + $0x2e4] ss:$24 sps:$4 sm:$0xff]  }
  0x5b   : > { %1455 = vmatpush2.bf16.msra.mxu1 %v4798_v46  ;;  %1381 = vmatprep.subr.bf16.mxu0 %v4844_v59  ;;  %v5638_v46 = vpack.c.bf16 %v747_v41, %v745_v40  ;;  %v4897_v59 = vld [vmem:[%s5437_s19 + $0x2b4] ss:$24 sps:$4 sm:$0xff]   ;;  %v869_v40 = vsub.s32 3, %v5688_v13 }
  0x5c   : > { %1456 = vmatprep.subr.bf16.mxu1 %v4799_v48  ;;  %v4877_v48 = vld [vmem:[%s5437_s19 + $0xd0] ss:$24 sps:$4 sm:$0xff]  }
  0x5e   : > { %1382 = vmatpush2.bf16.msra.mxu0 %v4846_v61  ;;  %v4900_v61 = vld [vmem:[%s5437_s19 + $0x284] ss:$24 sps:$4 sm:$0xff]  }
  0x5f   : > { %1457 = vmatpush2.bf16.msra.mxu1 %v4801_v50  ;;  %1383 = vmatprep.subr.bf16.mxu0 %v4847_v63  ;;  %v4880_v50 = vld [vmem:[%s5437_s19 + $0xa0] ss:$24 sps:$4 sm:$0xff]   ;;  %v4903_v63 = vld [vmem:[%s5437_s19 + $0x254] ss:$24 sps:$4 sm:$0xff]  }
  0x60   : > { %1458 = vmatprep.subr.bf16.mxu1 %v4802_v52  ;;  %v4883_v52 = vld [vmem:[%s5437_s19 + $0x70] ss:$24 sps:$4 sm:$0xff]  }
  0x62   : > { %1384 = vmatpush2.bf16.msra.mxu0 %v4849_v1  ;;  %v4904_v1 = vld [vmem:[%s5437_s19 + $0x220] ss:$24 sps:$4 sm:$0xff]  }
  0x63   : > { %1459 = vmatpush2.bf16.msra.mxu1 %v4806_v54  ;;  %1385 = vmatprep.subr.bf16.mxu0 %v4850_v3  ;;  %v4886_v54 = vld [vmem:[%s5437_s19 + $0x40] ss:$24 sps:$4 sm:$0xff]   ;;  %v4907_v3 = vld [vmem:[%s5437_s19 + $0x1f0] ss:$24 sps:$4 sm:$0xff]  }
  0x64   : > { %1460 = vmatprep.subr.bf16.mxu1 %v4808_v56  ;;  %v4889_v56 = vld [vmem:[%s5437_s19 + $0x10] ss:$24 sps:$4 sm:$0xff]  }
  0x66   : > { %1386 = vmatpush2.bf16.msra.mxu0 %v4852_v5  ;;  %v4910_v5 = vld [vmem:[%s5437_s19 + $0x1c0] ss:$24 sps:$4 sm:$0xff]  }
  0x67   : > { %1461 = vmatpush2.bf16.msra.mxu1 %v4812_v58  ;;  %1387 = vmatprep.subr.bf16.mxu0 %v4853_v7  ;;  %v4892_v58 = vld [vmem:[%s5437_s19 + $0x2e0] ss:$24 sps:$4 sm:$0xff]   ;;  %v4913_v7 = vld [vmem:[%s5437_s19 + $0x190] ss:$24 sps:$4 sm:$0xff]  }
  0x68   : > { %1462 = vmatprep.subr.bf16.mxu1 %v4814_v60  ;;  %v4895_v60 = vld [vmem:[%s5437_s19 + $0x2b0] ss:$24 sps:$4 sm:$0xff]  }
  0x6a   : > { %1388 = vmatpush2.bf16.msra.mxu0 %v4855_v12 }
  0x6b   : > { %1463 = vmatpush2.bf16.msra.mxu1 %v4818_v62  ;;  %1389 = vmatprep.subr.bf16.mxu0 %v4856_v14  ;;  %v4898_v62 = vld [vmem:[%s5437_s19 + $0x280] ss:$24 sps:$4 sm:$0xff]  }
  0x6c   : > { %1464 = vmatprep.subr.bf16.mxu1 %v4820_v0  ;;  %v4906_v0 = vld [vmem:[%s5437_s19 + $0x224] ss:$24 sps:$4 sm:$0xff]  }
  0x6e   : > { %1390 = vmatpush2.bf16.msra.mxu0 %v4858_v17 }
  0x6f   : > { %1465 = vmatpush2.bf16.msra.mxu1 %v4824_v2  ;;  %1391 = vmatprep.subr.bf16.mxu0 %v4859_v19  ;;  %v4909_v2 = vld [vmem:[%s5437_s19 + $0x1f4] ss:$24 sps:$4 sm:$0xff]   ;;  %v5697_v19 = vld [vmem:[%s5447_s29] sm:$0x3f] }
  0x70   : > { %1466 = vmatprep.subr.bf16.mxu1 %v4826_v4  ;;  %v4912_v4 = vld [vmem:[%s5437_s19 + $0x1c4] ss:$24 sps:$4 sm:$0xff]  }
  0x72   : > { %1392 = vmatpush2.bf16.msra.mxu0 %v4861_v22 }
  0x73   : > { %1467 = vmatpush2.bf16.msra.mxu1 %v4830_v6  ;;  %1393 = vmatprep.subr.bf16.mxu0 %v4862_v24  ;;  %v4915_v6 = vld [vmem:[%s5437_s19 + $0x194] ss:$24 sps:$4 sm:$0xff]  }
  0x74   : > { %1468 = vmatprep.subr.bf16.mxu1 %v4832_v8 }
  0x76   : > { %1394 = vmatpush2.bf16.msra.mxu0 %v4864_v26 }
  0x77   : > { %1469 = vmatpush2.bf16.msra.mxu1 %v4836_v9  ;;  %1395 = vmatprep.subr.bf16.mxu0 %v4865_v27 }
  0x7a   : > { %1471 = vmatmul.mubr.bf16.vlgmr.msra.gmra.mxu1 %v5595_v16  ;;  %1396 = vmatpush2.bf16.msra.mxu0 %v4867_v30 }
  0x7b   : > { %1480 = vmatprep.mubr.bf16.mxu1 %v5598_v18  ;;  %1511 = vmatprep.subr.bf16.mxu0 %v4870_v33 }
  0x7d   : > { %1398 = vmatmul.mubr.bf16.vlgmr.msra.gmra.mxu0 %v5595_v16 }
  0x7e   : > { %1407 = vmatprep.mubr.bf16.mxu0 %v5598_v18  ;;  %1512 = vmatpush1.bf16.msra.mxu0 %v4868_v36  ;;  %v865_v36 = vsub.s32 2, %v5688_v13 }
  0x7f   : > { %1513 = vmatprep.subr.bf16.mxu0 %v4873_v38 }
  0x82   : > { %1481 = vmatmul.mubr.bf16.gmra.mxu1 %v5611_v28  ;;  %1514 = vmatpush1.bf16.msra.mxu0 %v4871_v42 }
  0x83   : > { %1490 = vmatprep.mubr.bf16.mxu1 %v5613_v29  ;;  %1515 = vmatprep.subr.bf16.mxu0 %v4876_v43  ;;  %v866_v43 = vrot.slane %v5697_v19, %v865_v36 }
  0x85   : > { %1408 = vmatmul.mubr.bf16.gmra.mxu0 %v5611_v28 }
  0x86   : > { %1417 = vmatprep.mubr.bf16.mxu0 %v5613_v29  ;;  %1516 = vmatpush1.bf16.msra.mxu0 %v4874_v44 }
  0x87   : > { %1517 = vmatprep.subr.bf16.mxu0 %v4879_v47  ;;  %v870_v47 = vrot.slane %v5697_v19, %v869_v40 }
  0x8a   : > { %1491 = vmatmul.mubr.bf16.gmra.mxu1 %v5624_v37  ;;  %1518 = vmatpush1.bf16.msra.mxu0 %v4877_v48 }
  0x8b   : > { %1500 = vmatprep.mubr.bf16.mxu1 %v5627_v39  ;;  %1519 = vmatprep.subr.bf16.mxu0 %v4882_v49 }
  0x8d   : > { %1418 = vmatmul.mubr.bf16.gmra.mxu0 %v5624_v37 }
  0x8e   : > { %1427 = vmatprep.mubr.bf16.mxu0 %v5627_v39  ;;  %1520 = vmatpush1.bf16.msra.mxu0 %v4880_v50 }
  0x8f   : > { %1521 = vmatprep.subr.bf16.mxu0 %v4885_v51 }
  0x92   : > { %1501 = vmatmul.mubr.bf16.gmra.mxu1 %v5638_v46  ;;  %1522 = vmatpush1.bf16.msra.mxu0 %v4883_v52 }
  0x93   : > { %1523 = vmatprep.subr.bf16.mxu0 %v4888_v53 }
  0x95   : > { %1428 = vmatmul.mubr.bf16.gmra.mxu0 %v5638_v46 }
  0x96   : > { %1543 = vmatprep.mubr.bf16.mxu0 %v5557_v45  ;;  %1524 = vmatpush1.bf16.msra.mxu0 %v4886_v54  ;;  %v4901_v45 = vld [vmem:[%s5437_s19 + $0x250] ss:$24 sps:$4 sm:$0xff]  }
  0x97   : > { %1525 = vmatprep.subr.bf16.mxu0 %v4891_v55 }
  0x9a   : > { %1526 = vmatpush1.bf16.msra.mxu0 %v4889_v56 }
  0x9b   : > { %1527 = vmatprep.subr.bf16.mxu0 %v4894_v57 }
  0x9e   : > { %1528 = vmatpush2.bf16.msra.mxu0 %v4892_v58 }
  0x9f   : > { %1529 = vmatprep.subr.bf16.mxu0 %v4897_v59 }
  0xa2   : > { %1530 = vmatpush2.bf16.msra.mxu0 %v4895_v60 }
  0xa3   : > { %1531 = vmatprep.subr.bf16.mxu0 %v4900_v61 }
  0xa6   : > { %1532 = vmatpush2.bf16.msra.mxu0 %v4898_v62 }
  0xa7   : > { %1533 = vmatprep.subr.bf16.mxu0 %v4903_v63 }
  0xaa   : > { %1534 = vmatpush2.bf16.msra.mxu0 %v4901_v45 }
  0xab   : > { %1535 = vmatprep.subr.bf16.mxu0 %v4906_v0 }
  0xae   : > { %1536 = vmatpush2.bf16.msra.mxu0 %v4904_v1 }
  0xaf   : > { %1537 = vmatprep.subr.bf16.mxu0 %v4909_v2 }
  0xb2   : > { %1538 = vmatpush2.bf16.msra.mxu0 %v4907_v3 }
  0xb3   : > { %1539 = vmatprep.subr.bf16.mxu0 %v4912_v4 }
  0xb6   : > { %1540 = vmatpush2.bf16.msra.mxu0 %v4910_v5 }
  0xb7   : > { %1541 = vmatprep.subr.bf16.mxu0 %v4915_v6 }
  0xba   : > { %1542 = vmatpush2.bf16.msra.mxu0 %v4913_v7 }
  0xbd   : > { %1544 = vmatmul.mubr.bf16.vlgmr.msra.gmra.mxu0 %v5595_v16  ;;  %v5691_v16 = vsub.s32 0, %v5688_v13 }
  0xbe   : > { %1553 = vmatprep.mubr.bf16.mxu0 %v5598_v18  ;;  %v5694_v18 = vsub.s32 1, %v5688_v13 }
  0xbf   : > { %v5701_v21 = vrot.slane %v5697_v19, %v5691_v16 }
  0xc0   : > { %v5705_v24 = vrot.slane %v5697_v19, %v5694_v18 }
  0xc5   : > { %1554 = vmatmul.mubr.bf16.gmra.mxu0 %v5611_v28 }
  0xc6   : > { %1563 = vmatprep.mubr.bf16.mxu0 %v5613_v29 }
  0xcd   : > { %1564 = vmatmul.mubr.bf16.gmra.mxu0 %v5624_v37 }
  0xce   : > { %1573 = vmatprep.mubr.bf16.mxu0 %v5627_v39 }
  0xd5   : > { %1574 = vmatmul.mubr.bf16.gmra.mxu0 %v5638_v46 }
 0x13a   : > { %v5680_v8 = vpop.f32.mrf.mxu1 }
 0x13b   : > { %v1473_v7 = vadd.f32 %v5680_v8, %v866_v43 }
 0x13c   : > { %v5682_v9 = vpop.f32.mrf.mxu1 }
 0x13d   : > { %v1399_v22 = vpop.f32.mrf.mxu0 }
 0x13e   : > { %v5684_v11 = vpop.f32.mrf.mxu1  ;;  %v1400_v27 = vadd.f32 %v1399_v22, %v5701_v21 }
 0x13f   : > { %v1401_v25 = vpop.f32.mrf.mxu0  ;;  %v1477_v6 = vadd.f32 %v5684_v11, %v866_v43 }
 0x140   : > { %v5686_v12 = vpop.f32.mrf.mxu1  ;;  %v1402_v30 = vadd.f32 %v1401_v25, %v5705_v24 }
 0x141   : > { %v1403_v28 = vpop.f32.mrf.mxu0  ;;  %v1479_v10 = vadd.f32 %v5686_v12, %v870_v47 }
 0x142   : > { %v1482_v14 = vpop.f32.mrf.mxu1  ;;  %v1404_v31 = vadd.f32 %v1403_v28, %v5701_v21 }
 0x143   : > { %v1405_v32 = vpop.f32.mrf.mxu0  ;;  %v1483_v45 = vadd.f32 %v1482_v14, %v866_v43  ;;  %v1596_v14 = vpack.c.bf16 %v1477_v6, %v1473_v7 }
 0x144   : > { %v1484_v15 = vpop.f32.mrf.mxu1  ;;  %v1592_v34 = vpack.c.bf16 %v1404_v31, %v1400_v27  ;;  %v1406_v35 = vadd.f32 %v1405_v32, %v5705_v24 }
 0x145   : > { %v1409_v37 = vpop.f32.mrf.mxu0  ;;  %v1485_v2 = vadd.f32 %v1484_v15, %v870_v47 }
 0x146   : > { %v1486_v17 = vpop.f32.mrf.mxu1  ;;  %v1895_v39 = vpack.c.bf16 %v1406_v35, %v1402_v30  ;;  %4674 = vmatprep.mubr.bf16.mxu1 %v1592_v34  ;;  %v1410_v8 = vadd.f32 %v1409_v37, %v5701_v21 }
 0x147   : > { %v1411_v41 = vpop.f32.mrf.mxu0  ;;  %v1487_v63 = vadd.f32 %v1486_v17, %v866_v43  ;;  %v1475_v17 = vadd.f32 %v5682_v9, %v870_v47 }
 0x148   : > { %v1488_v20 = vpop.f32.mrf.mxu1  ;;  %4706 = vmatprep.mubr.bf16.mxu0 %v1895_v39  ;;  %v1412_v28 = vadd.f32 %v1411_v41, %v5705_v24 }
 0x149   : > { %v1413_v46 = vpop.f32.mrf.mxu0  ;;  %v1489_v0 = vadd.f32 %v1488_v20, %v870_v47  ;;  %v1597_v3 = vpack.c.bf16 %v1487_v63, %v1483_v45  ;;  %v1899_v20 = vpack.c.bf16 %v1479_v10, %v1475_v17 }
 0x14a   : > { %v1492_v23 = vpop.f32.mrf.mxu1  ;;  %v1414_v12 = vadd.f32 %v1413_v46, %v5701_v21 }
 0x14b   : > { %v1493_v51 = vadd.f32 %v1492_v23, %v866_v43  ;;  %v1415_v57 = vpop.f32.mrf.mxu0  ;;  %v1900_v4 = vpack.c.bf16 %v1489_v0, %v1485_v2 }
 0x14c   : > { %v1494_v26 = vpop.f32.mrf.mxu1  ;;  %v1593_v31 = vpack.c.bf16 %v1414_v12, %v1410_v8 }
 0x14d   : > { %v1495_v58 = vadd.f32 %v1494_v26, %v870_v47  ;;  %v1419_v62 = vpop.f32.mrf.mxu0 }
 0x14e   : > { %v1496_v29 = vpop.f32.mrf.mxu1  ;;  %v1420_v25 = vadd.f32 %v1419_v62, %v5701_v21 }
 0x14f   : > { %v1497_v48 = vadd.f32 %v1496_v29, %v866_v43  ;;  %v1421_v1 = vpop.f32.mrf.mxu0  ;;  %v1416_v29 = vadd.f32 %v1415_v57, %v5705_v24 }
 0x150   : > { %v1498_v33 = vpop.f32.mrf.mxu1  ;;  %v1422_v26 = vadd.f32 %v1421_v1, %v5705_v24 }
 0x151   : > { %v1499_v53 = vadd.f32 %v1498_v33, %v870_v47  ;;  %v1598_v59 = vpack.c.bf16 %v1497_v48, %v1493_v51  ;;  %v1423_v5 = vpop.f32.mrf.mxu0  ;;  %v1896_v34 = vpack.c.bf16 %v1416_v29, %v1412_v28 }
 0x152   : > { %v1502_v38 = vpop.f32.mrf.mxu1  ;;  %v1424_v11 = vadd.f32 %v1423_v5, %v5701_v21 }
 0x153   : > { %v1503_v49 = vadd.f32 %v1502_v38, %v866_v43  ;;  %v1901_v61 = vpack.c.bf16 %v1499_v53, %v1495_v58  ;;  %v1425_v22 = vpop.f32.mrf.mxu0  ;;  %v873_v53 = vsub.s32 4, %v5688_v13 }
 0x154   : > { %v1504_v42 = vpop.f32.mrf.mxu1  ;;  %v1426_v9 = vadd.f32 %v1425_v22, %v5705_v24  ;;  %v1594_v30 = vpack.c.bf16 %v1424_v11, %v1420_v25 }
 0x155   : > { %v1505_v54 = vadd.f32 %v1504_v42, %v870_v47  ;;  %v1429_v15 = vpop.f32.mrf.mxu0 }
 0x156   : > { %v1506_v44 = vpop.f32.mrf.mxu1  ;;  %v1897_v32 = vpack.c.bf16 %v1426_v9, %v1422_v26  ;;  %v1430_v35 = vadd.f32 %v1429_v15, %v5701_v21 }
 0x157   : > { %v1507_v50 = vadd.f32 %v1506_v44, %v866_v43  ;;  %v1431_v23 = vpop.f32.mrf.mxu0 }
 0x158   : > { %v1508_v52 = vpop.f32.mrf.mxu1  ;;  %v1432_v38 = vadd.f32 %v1431_v23, %v5705_v24 }
 0x159   : > { %v1599_v55 = vpack.c.bf16 %v1507_v50, %v1503_v49  ;;  %v1509_v56 = vadd.f32 %v1508_v52, %v870_v47  ;;  %v1433_v27 = vpop.f32.mrf.mxu0 }
 0x15a   : > { %v1434_v37 = vadd.f32 %v1433_v27, %v5701_v21  ;;  %v1586_v27 = vld [vmem:[%s6725_s21 + $0x10] sm:$0xff] }
 0x15b   : > { %v1902_v60 = vpack.c.bf16 %v1509_v56, %v1505_v54  ;;  %4666 = vmatprep.subr.bf16.mxu1 %v1599_v55  ;;  %v1435_v33 = vpop.f32.mrf.mxu0  ;;  %v874_v56 = vrot.slane %v5697_v19, %v873_v53 }
 0x15c   : > { %4667 = vmatpush3.bf16.xpose.msra.mxu1 %v1599_v55  ;;  %v1436_v39 = vadd.f32 %v1435_v33, %v5705_v24  ;;  %v1595_v41 = vpack.c.bf16 %v1434_v37, %v1430_v35  ;;  %v877_v24 = vsub.s32 5, %v5688_v13 }
 0x15d   : > { %4668 = vmatprep.subr.bf16.mxu1 %v1598_v59  ;;  %4698 = vmatprep.subr.bf16.mxu0 %v1902_v60 }
 0x15e   : > { %4699 = vmatpush3.bf16.xpose.msra.mxu0 %v1902_v60  ;;  %v1898_v42 = vpack.c.bf16 %v1436_v39, %v1432_v38  ;;  %v878_v58 = vrot.slane %v5697_v19, %v877_v24 }
 0x15f   : > { %4700 = vmatprep.subr.bf16.mxu0 %v1901_v61 }
 0x164   : > { %4669 = vmatpush3.bf16.xpose.msra.mxu1 %v1598_v59 }
 0x165   : > { %4670 = vmatprep.subr.bf16.mxu1 %v1597_v3 }
 0x166   : > { %4701 = vmatpush3.bf16.xpose.msra.mxu0 %v1901_v61 }
 0x167   : > { %4702 = vmatprep.subr.bf16.mxu0 %v1900_v4 }
 0x16c   : > { %4671 = vmatpush3.bf16.xpose.msra.mxu1 %v1597_v3 }
 0x16d   : > { %4672 = vmatprep.subr.bf16.mxu1 %v1596_v14 }
 0x16e   : > { %4703 = vmatpush3.bf16.xpose.msra.mxu0 %v1900_v4 }
 0x16f   : > { %4704 = vmatprep.subr.bf16.mxu0 %v1899_v20 }
 0x174   : > { %4673 = vmatpush3.bf16.xpose.msra.mxu1 %v1596_v14 }
 0x176   : > { %4705 = vmatpush3.bf16.xpose.msra.mxu0 %v1899_v20 }
 0x17b   : > { %4675 = vmatmul.mubr.bf16.vlgmr.msra.gmra.mxu1 %v1593_v31  ;;  %v1584_v31 = vld [vmem:[%s6725_s21] sm:$0xff] }
 0x17c   : > { %4678 = vmatprep.mubr.bf16.mxu1 %v1594_v30 }
 0x17d   : > { %4707 = vmatmul.mubr.bf16.vlgmr.msra.gmra.mxu0 %v1896_v34  ;;  %v1545_v43 = vpop.f32.mrf.mxu0 }
 0x17e   : > { %4710 = vmatprep.mubr.bf16.mxu0 %v1897_v32  ;;  %v1546_v19 = vadd.f32 %v1545_v43, %v874_v56 }
 0x17f   : > { %v1547_v44 = vpop.f32.mrf.mxu0 }
 0x180   : > { %v1548_v25 = vadd.f32 %v1547_v44, %v878_v58  ;;  %v1587_v44 = vld [vmem:[%s6725_s21 + $0x18] sm:$0xff] }
 0x181   : > { %v1549_v46 = vpop.f32.mrf.mxu0 }
 0x182   : > { %v1550_v15 = vadd.f32 %v1549_v46, %v874_v56  ;;  %v1585_v46 = vld [vmem:[%s6725_s21 + $0x8] sm:$0xff] }
 0x183   : > { %4679 = vmatmul.mubr.bf16.gmra.mxu1 %v1595_v41  ;;  %v1551_v47 = vpop.f32.mrf.mxu0 }
 0x184   : > { %v1552_v11 = vadd.f32 %v1551_v47, %v878_v58  ;;  %v1600_v12 = vpack.c.bf16 %v1550_v15, %v1546_v19 }
 0x185   : > { %4711 = vmatmul.mubr.bf16.gmra.mxu0 %v1898_v42  ;;  %v1555_v48 = vpop.f32.mrf.mxu0 }
 0x186   : > { %v1556_v3 = vadd.f32 %v1555_v48, %v874_v56  ;;  %v1903_v26 = vpack.c.bf16 %v1552_v11, %v1548_v25 }
 0x187   : > { %v1557_v49 = vpop.f32.mrf.mxu0 }
 0x188   : > { %v1558_v22 = vadd.f32 %v1557_v49, %v878_v58 }
 0x189   : > { %v1559_v50 = vpop.f32.mrf.mxu0 }
 0x18a   : > { %v1560_v5 = vadd.f32 %v1559_v50, %v874_v56 }
 0x18b   : > { %v1561_v51 = vpop.f32.mrf.mxu0 }
 0x18c   : > { %v1562_v17 = vadd.f32 %v1561_v51, %v878_v58  ;;  %v1601_v23 = vpack.c.bf16 %v1560_v5, %v1556_v3 }
 0x18d   : > { %v1565_v21 = vpop.f32.mrf.mxu0 }
 0x18e   : > { %v1566_v60 = vadd.f32 %v1565_v21, %v874_v56  ;;  %v1904_v8 = vpack.c.bf16 %v1562_v17, %v1558_v22  ;;  %v1591_v17 = vld [vmem:[%s6725_s21 + $0x38] sm:$0xff] }
 0x18f   : > { %v1567_v52 = vpop.f32.mrf.mxu0 }
 0x190   : > { %v1568_v45 = vadd.f32 %v1567_v52, %v878_v58 }
 0x191   : > { %v1569_v54 = vpop.f32.mrf.mxu0 }
 0x192   : > { %v1570_v61 = vadd.f32 %v1569_v54, %v874_v56 }
 0x193   : > { %v1571_v55 = vpop.f32.mrf.mxu0 }
 0x194   : > { %v1572_v0 = vadd.f32 %v1571_v55, %v878_v58  ;;  %v1602_v6 = vpack.c.bf16 %v1570_v61, %v1566_v60 }
 0x195   : > { %v1575_v57 = vpop.f32.mrf.mxu0 }
 0x196   : > { %v1576_v62 = vadd.f32 %v1575_v57, %v874_v56  ;;  %v1905_v14 = vpack.c.bf16 %v1572_v0, %v1568_v45 }
 0x197   : > { %v1577_v59 = vpop.f32.mrf.mxu0 }
 0x198   : > { %v1578_v1 = vadd.f32 %v1577_v59, %v878_v58  ;;  %v1590_v59 = vld [vmem:[%s6725_s21 + $0x30] sm:$0xff] }
 0x199   : > { %v1579_v63 = vpop.f32.mrf.mxu0 }
 0x19a   : > { %v1580_v2 = vadd.f32 %v1579_v63, %v874_v56 }
 0x19b   : > { %v1581_v4 = vpop.f32.mrf.mxu0 }
 0x19c   : > { %v1603_v7 = vpack.c.bf16 %v1580_v2, %v1576_v62  ;;  %v1582_v10 = vadd.f32 %v1581_v4, %v878_v58 }
 0x19e   : > { %v1906_v20 = vpack.c.bf16 %v1582_v10, %v1578_v1  ;;  %4682 = vmatprep.subr.bf16.mxu1 %v1603_v7 }
 0x19f   : > { %4683 = vmatpush3.bf16.msra.mxu1 %v1603_v7  ;;  %v1588_v7 = vld [vmem:[%s6725_s21 + $0x20] sm:$0xff] }
 0x1a0   : > { %4714 = vmatprep.subr.bf16.mxu0 %v1906_v20  ;;  %4684 = vmatprep.subr.bf16.mxu1 %v1602_v6 }
 0x1a1   : > { %4715 = vmatpush3.bf16.msra.mxu0 %v1906_v20 }
 0x1a2   : > { %4716 = vmatprep.subr.bf16.mxu0 %v1905_v14 }
 0x1a3   : > { %4685 = vmatpush3.bf16.msra.mxu1 %v1602_v6 }
 0x1a4   : > { %4686 = vmatprep.subr.bf16.mxu1 %v1601_v23 }
 0x1a5   : > { %4717 = vmatpush3.bf16.msra.mxu0 %v1905_v14 }
 0x1a6   : > { %4718 = vmatprep.subr.bf16.mxu0 %v1904_v8 }
 0x1a7   : > { %4687 = vmatpush3.bf16.msra.mxu1 %v1601_v23 }
 0x1a8   : > { %4688 = vmatprep.subr.bf16.mxu1 %v1600_v12 }
 0x1a9   : > { %4719 = vmatpush3.bf16.msra.mxu0 %v1904_v8  ;;  %v1589_v8 = vld [vmem:[%s6725_s21 + $0x28] sm:$0xff] }
 0x1aa   : > { %4720 = vmatprep.subr.bf16.mxu0 %v1903_v26 }
 0x1ab   : > { %4689 = vmatpush3.bf16.msra.mxu1 %v1600_v12 }
 0x1ad   : > { %4721 = vmatpush3.bf16.msra.mxu0 %v1903_v26 }
 0x23b   : > { %v4676_v9 = vpop.f32.mrf.mxu1 }
 0x23c   : > { %v1671_v28 = vmul.f32 0.088388346, %v4676_v9 }
 0x23d   : > { %v1638_v29 = vpop.f32.mrf.mxu1  ;;  %v4708_v30 = vpop.f32.mrf.mxu0 }
 0x23e   : > { %v1669_v32 = vmul.f32 0.088388346, %v1638_v29  ;;  %v5745_v33 = vadd.f32 %v1671_v28, %v1586_v27  ;;  %v1974_v49 = vmul.f32 0.088388346, %v4708_v30 }
 0x23f   : > { %v4677_v34 = vpop.f32.mrf.mxu1  ;;  %v1941_v35 = vpop.f32.mrf.mxu0 }
 0x240   : > { %v1672_v37 = vmul.f32 0.088388346, %v4677_v34  ;;  %v1972_v38 = vmul.f32 0.088388346, %v1941_v35  ;;  %v1692_v39 = vsel %vm1685_vm0, %v5745_v33, -inf  ;;  %v5749_v41 = vadd.f32 %v1669_v32, %v1584_v31 }
 0x241   : > { %v4709_v42 = vpop.f32.mrf.mxu0  ;;  %1693 = vmax.xlane.f32.xlu0 %v1692_v39  ;;  %v1641_v43 = vpop.f32.mrf.mxu1  ;;  %v5767_v58 = vadd.f32 %v1974_v49, %v1586_v27 }
 0x242   : > { %v1670_v47 = vmul.f32 0.088388346, %v1641_v43  ;;  %v5757_v48 = vadd.f32 %v1972_v38, %v1584_v31  ;;  %v1686_v51 = vsel %vm1685_vm0, %v5749_v41, -inf  ;;  %v5763_v54 = vadd.f32 %v1672_v37, %v1587_v44 }
 0x243   : > { %v1944_v50 = vpop.f32.mrf.mxu0  ;;  %v4680_v21 = vpop.f32.mrf.mxu1  ;;  %v1975_v60 = vmul.f32 0.088388346, %v4709_v42  ;;  %v1994_v5 = vsel %vm1685_vm0, %v5767_v58, -inf }
 0x244   : > { %v1973_v52 = vmul.f32 0.088388346, %v1944_v50  ;;  %v1988_v53 = vsel %vm1685_vm0, %v5757_v48, -inf  ;;  %v5765_v24 = vadd.f32 %v1670_v47, %v1585_v46  ;;  %v1675_v57 = vmul.f32 0.088388346, %v4680_v21 }
 0x245   : > { %1989 = vmax.xlane.f32.xlu1 %v1988_v53  ;;  %1687 = vmax.xlane.f32.xlu0 %v1686_v51  ;;  %v4712_v55 = vpop.f32.mrf.mxu0  ;;  %v1654_v56 = vpop.f32.mrf.mxu1  ;;  %v1695_v61 = vsel %vm1685_vm0, %v5763_v54, -inf  ;;  %v5784_v6 = vadd.f32 %v1975_v60, %v1587_v44 }
 0x246   : > { %v1689_v62 = vsel %vm1685_vm0, %v5765_v24, -inf  ;;  %v5776_v63 = vadd.f32 %v1973_v52, %v1585_v46  ;;  %v5778_v1 = vadd.f32 %v1675_v57, %v1590_v59  ;;  %v1673_v2 = vmul.f32 0.088388346, %v1654_v56 }
 0x247   : > { %v1957_v45 = vpop.f32.mrf.mxu0  ;;  %v4681_v0 = vpop.f32.mrf.mxu1  ;;  %v1997_v23 = vsel %vm1685_vm0, %v5784_v6, -inf  ;;  %v1978_v12 = vmul.f32 0.088388346, %v4712_v55 }
 0x248   : > { %v1676_v3 = vmul.f32 0.088388346, %v4681_v0  ;;  %v1991_v4 = vsel %vm1685_vm0, %v5776_v63, -inf  ;;  %v1704_v14 = vsel %vm1685_vm0, %v5778_v1, -inf  ;;  %v5794_v20 = vadd.f32 %v1673_v2, %v1588_v7 }
 0x249   : > { %1696 = vmax.xlane.f32.xlu1 %v1695_v61  ;;  %1690 = vmax.xlane.f32.xlu0 %v1689_v62  ;;  %v4713_v10 = vpop.f32.mrf.mxu0  ;;  %v1657_v22 = vpop.f32.mrf.mxu1  ;;  %v1976_v19 = vmul.f32 0.088388346, %v1957_v45  ;;  %v5811_v30 = vadd.f32 %v1978_v12, %v1590_v59 }
 0x24a   : > { %v1674_v15 = vmul.f32 0.088388346, %v1657_v22  ;;  %v5798_v25 = vadd.f32 %v1676_v3, %v1591_v17  ;;  %v1698_v26 = vsel %vm1685_vm0, %v5794_v20, -inf  ;;  %v1979_v31 = vmul.f32 0.088388346, %v4713_v10 }
 0x24b   : > { %v1960_v11 = vpop.f32.mrf.mxu0  ;;  %v5807_v28 = vadd.f32 %v1976_v19, %v1588_v7  ;;  %v2006_v37 = vsel %vm1685_vm0, %v5811_v30, -inf }
 0x24c   : > { %v1977_v9 = vmul.f32 0.088388346, %v1960_v11  ;;  %v1707_v27 = vsel %vm1685_vm0, %v5798_v25, -inf  ;;  %v5809_v29 = vadd.f32 %v1674_v15, %v1589_v8  ;;  %v5823_v39 = vadd.f32 %v1979_v31, %v1591_v17 }
 0x24d   : > { %1992 = vmax.xlane.f32.xlu1 %v1991_v4  ;;  %1995 = vmax.xlane.f32.xlu0 %v1994_v5  ;;  %v2000_v32 = vsel %vm1685_vm0, %v5807_v28, -inf }
 0x24e   : > { %v1701_v34 = vsel %vm1685_vm0, %v5809_v29, -inf  ;;  %v5817_v35 = vadd.f32 %v1977_v9, %v1589_v8  ;;  %v2009_v42 = vsel %vm1685_vm0, %v5823_v39, -inf }
 0x250   : > { %v2003_v38 = vsel %vm1685_vm0, %v5817_v35, -inf }
 0x251   : > { %1998 = vmax.xlane.f32.xlu1 %v1997_v23  ;;  %1705 = vmax.xlane.f32.xlu0 %v1704_v14 }
 0x255   : > { %1699 = vmax.xlane.f32.xlu0 %v1698_v26  ;;  %1708 = vmax.xlane.f32.xlu1 %v1707_v27 }
 0x259   : > { %2001 = vmax.xlane.f32.xlu0 %v2000_v32  ;;  %1702 = vmax.xlane.f32.xlu1 %v1701_v34 }
 0x25d   : > { %2007 = vmax.xlane.f32.xlu0 %v2006_v37  ;;  %2004 = vmax.xlane.f32.xlu1 %v2003_v38 }
 0x261   : > { %2010 = vmax.xlane.f32.xlu1 %v2009_v42 }
 0x2ca   : > { %v1694_v43 = vpop.xlane.xlu0 %1693 }
 0x2cb   : > { %v1712_v44 = vsub.f32 %v5745_v33, %v1694_v43 }
 0x2cd   : > { %v1722_v46 = vmul.f32 1.442695, %v1712_v44 }
 0x2ce   : > { %v1990_v47 = vpop.xlane.xlu1 %1989  ;;  %v1688_v49 = vpop.xlane.xlu0 %1687 }
 0x2cf   : > { %5168 = vpow2.f32 %v1722_v46  ;;  %v2012_v50 = vsub.f32 %v5757_v48, %v1990_v47  ;;  %v1710_v51 = vsub.f32 %v5749_v41, %v1688_v49 }
 0x2d1   : > { %v1718_v21 = vmul.f32 1.442695, %v1710_v51  ;;  %v2020_v52 = vmul.f32 1.442695, %v2012_v50 }
 0x2d2   : > { %v1697_v53 = vpop.xlane.xlu1 %1696  ;;  %v1691_v55 = vpop.xlane.xlu0 %1690 }
 0x2d3   : > { %v1713_v56 = vsub.f32 %v5763_v54, %v1697_v53  ;;  %v1711_v57 = vsub.f32 %v5765_v24, %v1691_v55  ;;  %5170 = vpow2.f32 %v1718_v21 }
 0x2d4   : > { %5172 = vpow2.f32 %v2020_v52 }
 0x2d5   : > { %v1724_v59 = vmul.f32 1.442695, %v1713_v56  ;;  %v1720_v60 = vmul.f32 1.442695, %v1711_v57 }
 0x2d6   : > { %v1993_v33 = vpop.xlane.xlu1 %1992  ;;  %v1996_v61 = vpop.xlane.xlu0 %1995 }
 0x2d7   : > { %5174 = vpow2.f32 %v1724_v59  ;;  %v2013_v62 = vsub.f32 %v5776_v63, %v1993_v33  ;;  %v2014_v48 = vsub.f32 %v5767_v58, %v1996_v61 }
 0x2d8   : > { %5176 = vpow2.f32 %v1720_v60 }
 0x2d9   : > { %v2022_v41 = vmul.f32 1.442695, %v2013_v62  ;;  %v2024_v45 = vmul.f32 1.442695, %v2014_v48 }
 0x2da   : > { %v1999_v0 = vpop.xlane.xlu1 %1998  ;;  %v1706_v2 = vpop.xlane.xlu0 %1705 }
 0x2db   : > { %v2015_v54 = vsub.f32 %v5784_v6, %v1999_v0  ;;  %v1716_v24 = vsub.f32 %v5778_v1, %v1706_v2  ;;  %5178 = vpow2.f32 %v2024_v45  ;;  %v4918_v0 = vld [vmem:[%s6726_s24 + $0x74] ss:$8 sps:$4 sm:$0xff]  }
 0x2dc   : > { %v5836_v3 = vpop.eup %5168  ;;  %5180 = vpow2.f32 %v2022_v41  ;;  %2449 = vmatprep.subr.bf16.mxu1 %v4918_v0 }
 0x2dd   : > { %v2026_v4 = vmul.f32 1.442695, %v2015_v54  ;;  %v1730_v5 = vmul.f32 1.442695, %v1716_v24  ;;  %v1740_v63 = vsel %vm1685_vm0, %v5836_v3, 0.0 }
 0x2de   : > { %1741 = vadd.xlane.f32.xlu0 %v1740_v63  ;;  %v1700_v58 = vpop.xlane.xlu0 %1699  ;;  %v1709_v7 = vpop.xlane.xlu1 %1708 }
 0x2df   : > { %v1714_v10 = vsub.f32 %v5794_v20, %v1700_v58  ;;  %v1717_v22 = vsub.f32 %v5798_v25, %v1709_v7  ;;  %5182 = vpow2.f32 %v1730_v5 }
 0x2e0   : > { %v5842_v6 = vpop.eup %5170  ;;  %5184 = vpow2.f32 %v2026_v4 }
 0x2e1   : > { %v1726_v1 = vmul.f32 1.442695, %v1714_v10  ;;  %v1732_v17 = vmul.f32 1.442695, %v1717_v22  ;;  %v1734_v14 = vsel %vm1685_vm0, %v5842_v6, 0.0  ;;  %v5846_v23 = vpop.eup %5172 }
 0x2e2   : > { %v2002_v19 = vpop.xlane.xlu0 %2001  ;;  %v1703_v15 = vpop.xlane.xlu1 %1702  ;;  %1735 = vadd.xlane.f32.xlu0 %v1734_v14  ;;  %v2036_v27 = vsel %vm1685_vm0, %v5846_v23, 0.0 }
 0x2e3   : > { %5186 = vpow2.f32 %v1726_v1  ;;  %v2016_v11 = vsub.f32 %v5807_v28, %v2002_v19  ;;  %v1715_v20 = vsub.f32 %v5809_v29, %v1703_v15 }
 0x2e4   : > { %v5850_v25 = vpop.eup %5174  ;;  %5188 = vpow2.f32 %v1732_v17 }
 0x2e5   : > { %v2028_v8 = vmul.f32 1.442695, %v2016_v11  ;;  %v1728_v12 = vmul.f32 1.442695, %v1715_v20  ;;  %v1743_v26 = vsel %vm1685_vm0, %v5850_v25, 0.0  ;;  %v5854_v9 = vpop.eup %5176 }
 0x2e6   : > { %v2008_v31 = vpop.xlane.xlu0 %2007  ;;  %1744 = vadd.xlane.f32.xlu1 %v1743_v26  ;;  %v2005_v32 = vpop.xlane.xlu1 %2004  ;;  %2037 = vadd.xlane.f32.xlu0 %v2036_v27  ;;  %v1737_v42 = vsel %vm1685_vm0, %v5854_v9, 0.0 }
 0x2e7   : > { %5190 = vpow2.f32 %v2028_v8  ;;  %v2018_v28 = vsub.f32 %v5811_v30, %v2008_v31  ;;  %v2017_v29 = vsub.f32 %v5817_v35, %v2005_v32 }
 0x2e8   : > { %v5860_v34 = vpop.eup %5178  ;;  %5192 = vpow2.f32 %v1728_v12 }
 0x2e9   : > { %v2032_v37 = vmul.f32 1.442695, %v2018_v28  ;;  %v2030_v38 = vmul.f32 1.442695, %v2017_v29  ;;  %v5864_v43 = vpop.eup %5180  ;;  %v2042_v44 = vsel %vm1685_vm0, %v5860_v34, 0.0 }
 0x2ea   : > { %1738 = vadd.xlane.f32.xlu1 %v1737_v42  ;;  %v2011_v46 = vpop.xlane.xlu1 %2010  ;;  %2043 = vadd.xlane.f32.xlu0 %v2042_v44  ;;  %v2039_v49 = vsel %vm1685_vm0, %v5864_v43, 0.0  ;;  %v4916_v28 = vld [vmem:[%s6726_s24 + $0x70] ss:$8 sps:$4 sm:$0xff]  }
 0x2eb   : > { %5194 = vpow2.f32 %v2032_v37  ;;  %v2019_v30 = vsub.f32 %v5823_v39, %v2011_v46  ;;  %v4919_v46 = vld [vmem:[%s6726_s24 + $0x60] ss:$8 sps:$4 sm:$0xff]  }
 0x2ec   : > { %v5869_v35 = vpop.eup %5182  ;;  %5196 = vpow2.f32 %v2030_v38 }
 0x2ed   : > { %v2034_v47 = vmul.f32 1.442695, %v2019_v30  ;;  %v5873_v50 = vpop.eup %5184  ;;  %v1752_v51 = vsel %vm1685_vm0, %v5869_v35, 0.0 }
 0x2ee   : > { %2040 = vadd.xlane.f32.xlu1 %v2039_v49  ;;  %1753 = vadd.xlane.f32.xlu0 %v1752_v51  ;;  %v2045_v52 = vsel %vm1685_vm0, %v5873_v50, 0.0 }
 0x2ef   : > { %5198 = vpow2.f32 %v2034_v47  ;;  %v4924_v47 = vld [vmem:[%s6726_s24 + $0x54] ss:$8 sps:$4 sm:$0xff]  }
 0x2f0   : > { %v5877_v21 = vpop.eup %5186 }
 0x2f1   : > { %v1746_v39 = vsel %vm1685_vm0, %v5877_v21, 0.0  ;;  %v5883_v53 = vpop.eup %5188 }
 0x2f2   : > { %2046 = vadd.xlane.f32.xlu1 %v2045_v52  ;;  %1747 = vadd.xlane.f32.xlu0 %v1746_v39  ;;  %v1755_v57 = vsel %vm1685_vm0, %v5883_v53, 0.0  ;;  %v4922_v39 = vld [vmem:[%s6726_s24 + $0x50] ss:$8 sps:$4 sm:$0xff]   ;;  %v4927_v52 = vld [vmem:[%s6726_s24 + $0x44] ss:$8 sps:$4 sm:$0xff]  }
 0x2f4   : > { %v5885_v55 = vpop.eup %5190 }
 0x2f5   : > { %v2048_v56 = vsel %vm1685_vm0, %v5885_v55, 0.0  ;;  %v5891_v59 = vpop.eup %5192 }
 0x2f6   : > { %1756 = vadd.xlane.f32.xlu1 %v1755_v57  ;;  %2049 = vadd.xlane.f32.xlu0 %v2048_v56  ;;  %v1749_v61 = vsel %vm1685_vm0, %v5891_v59, 0.0 }
 0x2f8   : > { %v5893_v60 = vpop.eup %5194 }
 0x2f9   : > { %v2054_v33 = vsel %vm1685_vm0, %v5893_v60, 0.0  ;;  %v5899_v62 = vpop.eup %5196 }
 0x2fa   : > { %1750 = vadd.xlane.f32.xlu1 %v1749_v61  ;;  %2055 = vadd.xlane.f32.xlu0 %v2054_v33  ;;  %v2051_v48 = vsel %vm1685_vm0, %v5899_v62, 0.0 }
 0x2fc   : > { %v5903_v41 = vpop.eup %5198 }
 0x2fd   : > { %v2057_v45 = vsel %vm1685_vm0, %v5903_v41, 0.0 }
 0x2fe   : > { %2052 = vadd.xlane.f32.xlu1 %v2051_v48  ;;  %v4930_v48 = vld [vmem:[%s6726_s24 + $0x34] ss:$8 sps:$4 sm:$0xff]  }
 0x302   : > { %2058 = vadd.xlane.f32.xlu1 %v2057_v45 }
 0x367   : > { %v1742_v2 = vpop.xlane.xlu0 %1741 }
 0x36b   : > { %v1736_v54 = vpop.xlane.xlu0 %1735 }
 0x36f   : > { %v1745_v24 = vpop.xlane.xlu1 %1744  ;;  %v2038_v4 = vpop.xlane.xlu0 %2037 }
 0x370   : > { %5200 = vrcp.f32 %v1745_v24 }
 0x371   : > { %5202 = vrcp.f32 %v1736_v54 }
 0x372   : > { %5204 = vrcp.f32 %v1742_v2 }
 0x373   : > { %v1739_v5 = vpop.xlane.xlu1 %1738  ;;  %v2044_v63 = vpop.xlane.xlu0 %2043 }
 0x374   : > { %5206 = vrcp.f32 %v1739_v5 }
 0x375   : > { %5208 = vrcp.f32 %v2038_v4  ;;  %v4928_v4 = vld [vmem:[%s6726_s24 + $0x30] ss:$8 sps:$4 sm:$0xff]  }
 0x377   : > { %v2041_v58 = vpop.xlane.xlu1 %2040  ;;  %v1754_v7 = vpop.xlane.xlu0 %1753 }
 0x378   : > { %5210 = vrcp.f32 %v2041_v58  ;;  %v4933_v58 = vld [vmem:[%s6726_s24 + $0x24] ss:$8 sps:$4 sm:$0xff]  }
 0x379   : > { %5212 = vrcp.f32 %v2044_v63 }
 0x37b   : > { %v2047_v10 = vpop.xlane.xlu1 %2046  ;;  %v1748_v22 = vpop.xlane.xlu0 %1747 }
 0x37c   : > { %5214 = vrcp.f32 %v2047_v10 }
 0x37d   : > { %v5201_v1 = vpop.eup %5200 }
 0x37e   : > { %v5203_v17 = vpop.eup %5202  ;;  %v1769_v11 = vmul.f32 %v5201_v1, %v5850_v25  ;;  %v4921_v25 = vld [vmem:[%s6726_s24 + $0x64] ss:$8 sps:$4 sm:$0xff]  }
 0x37f   : > { %v1757_v14 = vpop.xlane.xlu1 %1756  ;;  %v5205_v19 = vpop.eup %5204  ;;  %v1766_v8 = vmul.f32 %v5203_v17, %v5842_v6  ;;  %v4934_v17 = vld [vmem:[%s6726_s24 + $0x10] ss:$8 sps:$4 sm:$0xff]  }
 0x380   : > { %v2050_v20 = vpop.xlane.xlu0 %2049  ;;  %5216 = vrcp.f32 %v1757_v14  ;;  %v1768_v27 = vmul.f32 %v5205_v19, %v5836_v3  ;;  %v4939_v14 = vld [vmem:[%s6726_s24 + $0x4] ss:$8 sps:$4 sm:$0xff]   ;;  %v4937_v19 = vld [vmem:[%s6726_s24] ss:$8 sps:$4 sm:$0xff]  }
 0x381   : > { %v5207_v15 = vpop.eup %5206  ;;  %5218 = vrcp.f32 %v1748_v22  ;;  %v4936_v22 = vld [vmem:[%s6726_s24 + $0x14] ss:$8 sps:$4 sm:$0xff]  }
 0x382   : > { %v1767_v12 = vmul.f32 %v5207_v15, %v5854_v9  ;;  %v5209_v26 = vpop.eup %5208  ;;  %5220 = vrcp.f32 %v1754_v7  ;;  %v1775_v37 = vpack.c.bf16 %v1769_v11, %v1768_v27  ;;  %v4931_v7 = vld [vmem:[%s6726_s24 + $0x20] ss:$8 sps:$4 sm:$0xff]   ;;  %v4942_v15 = vld [vmem:[%s6726_s24 + $0xf4] ss:$8 sps:$4 sm:$0xff]  }
 0x383   : > { %v1751_v31 = vpop.xlane.xlu1 %1750  ;;  %v2068_v6 = vmul.f32 %v5209_v26, %v5846_v23  ;;  %v4943_v11 = vld [vmem:[%s6726_s24 + $0xe0] ss:$8 sps:$4 sm:$0xff]   ;;  %v4954_v27 = vld [vmem:[%s6726_s24 + $0xb4] ss:$8 sps:$4 sm:$0xff]  }
 0x384   : > { %5222 = vrcp.f32 %v1751_v31  ;;  %v1774_v32 = vpack.c.bf16 %v1767_v12, %v1766_v8  ;;  %v2056_v42 = vpop.xlane.xlu0 %2055  ;;  %v4946_v8 = vld [vmem:[%s6726_s24 + $0xd0] ss:$8 sps:$4 sm:$0xff]   ;;  %v4951_v12 = vld [vmem:[%s6726_s24 + $0xc4] ss:$8 sps:$4 sm:$0xff]   ;;  %v4949_v26 = vld [vmem:[%s6726_s24 + $0xc0] ss:$8 sps:$4 sm:$0xff]  }
 0x385   : > { %v5211_v29 = vpop.eup %5210  ;;  %5224 = vrcp.f32 %v2050_v20  ;;  %v4948_v20 = vld [vmem:[%s6726_s24 + $0xd4] ss:$8 sps:$4 sm:$0xff]   ;;  %v4952_v31 = vld [vmem:[%s6726_s24 + $0xb0] ss:$8 sps:$4 sm:$0xff]  }
 0x386   : > { %4690 = vmatprep.mubr.msk.bf16.mxu1 %vm1685_vm0, %v1774_v32  ;;  %v2069_v9 = vmul.f32 %v5211_v29, %v5864_v43  ;;  %v5213_v38 = vpop.eup %5212  ;;  %v4957_v32 = vld [vmem:[%s6726_s24 + $0xa4] ss:$8 sps:$4 sm:$0xff]   ;;  %v4960_v29 = vld [vmem:[%s6726_s24 + $0x94] ss:$8 sps:$4 sm:$0xff]  }
 0x387   : > { %4691 = vmatmul.mubr.msk.bf16.vlgmr.msra.gmra.mxu1 %vm1685_vm0, %v1775_v37  ;;  %v2053_v3 = vpop.xlane.xlu1 %2052  ;;  %v2070_v49 = vmul.f32 %v5213_v38, %v5860_v34  ;;  %v4958_v37 = vld [vmem:[%s6726_s24 + $0x90] ss:$8 sps:$4 sm:$0xff]  }
 0x388   : > { %5226 = vrcp.f32 %v2053_v3  ;;  %v2076_v44 = vpack.c.bf16 %v2069_v9, %v2068_v6  ;;  %2450 = vmatpush1.bf16.msra.mxu1 %v4916_v28  ;;  %v4955_v28 = vld [vmem:[%s6726_s24 + $0xa0] ss:$8 sps:$4 sm:$0xff]  }
 0x389   : > { %v5215_v30 = vpop.eup %5214  ;;  %2451 = vmatprep.subr.bf16.mxu1 %v4921_v25  ;;  %5228 = vrcp.f32 %v2056_v42  ;;  %v4963_v25 = vld [vmem:[%s6726_s24 + $0x84] ss:$8 sps:$4 sm:$0xff]   ;;  %v4961_v6 = vld [vmem:[%s6726_s24 + $0x80] ss:$8 sps:$4 sm:$0xff]  }
 0x38a   : > { %v2071_v23 = vmul.f32 %v5215_v30, %v5873_v50  ;;  %4722 = vmatprep.mubr.msk.bf16.mxu0 %vm1685_vm0, %v2076_v44  ;;  %v4925_v50 = vld [vmem:[%s6726_s24 + $0x40] ss:$8 sps:$4 sm:$0xff]  }
 0x38b   : > { %v2059_v43 = vpop.xlane.xlu1 %2058 }
 0x38c   : > { %v2077_v51 = vpack.c.bf16 %v2071_v23, %v2070_v49  ;;  %5230 = vrcp.f32 %v2059_v43  ;;  %2452 = vmatpush1.bf16.msra.mxu1 %v4919_v46 }
 0x38d   : > { %2453 = vmatprep.subr.bf16.mxu1 %v4924_v47  ;;  %v5217_v56 = vpop.eup %5216 }
 0x38e   : > { %4723 = vmatmul.mubr.msk.bf16.vlgmr.msra.gmra.mxu0 %vm1685_vm0, %v2077_v51  ;;  %v5219_v57 = vpop.eup %5218  ;;  %v1773_v61 = vmul.f32 %v5217_v56, %v5883_v53 }
 0x38f   : > { %v5221_v34 = vpop.eup %5220  ;;  %v1770_v45 = vmul.f32 %v5219_v57, %v5877_v21 }
 0x390   : > { %2454 = vmatpush1.bf16.msra.mxu1 %v4922_v39  ;;  %v1772_v54 = vmul.f32 %v5221_v34, %v5869_v35 }
 0x391   : > { %v5223_v33 = vpop.eup %5222  ;;  %2455 = vmatprep.subr.bf16.mxu1 %v4927_v52 }
 0x392   : > { %v1771_v0 = vmul.f32 %v5223_v33, %v5891_v59  ;;  %v5225_v2 = vpop.eup %5224  ;;  %v1777_v63 = vpack.c.bf16 %v1773_v61, %v1772_v54 }
 0x393   : > { %v2072_v53 = vmul.f32 %v5225_v2, %v5885_v55 }
 0x394   : > { %v1776_v24 = vpack.c.bf16 %v1771_v0, %v1770_v45  ;;  %2456 = vmatpush1.bf16.msra.mxu1 %v4925_v50 }
 0x395   : > { %v5227_v5 = vpop.eup %5226  ;;  %2457 = vmatprep.subr.bf16.mxu1 %v4930_v48 }
 0x396   : > { %4694 = vmatprep.mubr.msk.bf16.mxu1 %vm1685_vm0, %v1776_v24  ;;  %v2073_v21 = vmul.f32 %v5227_v5, %v5899_v62  ;;  %v5229_v59 = vpop.eup %5228 }
 0x397   : > { %4695 = vmatmul.mubr.msk.bf16.gmra.mxu1 %vm1685_vm0, %v1777_v63  ;;  %v2074_v55 = vmul.f32 %v5229_v59, %v5893_v60  ;;  %v4940_v60 = vld [vmem:[%s6726_s24 + $0xf0] ss:$8 sps:$4 sm:$0xff]  }
 0x398   : > { %v2078_v35 = vpack.c.bf16 %v2073_v21, %v2072_v53  ;;  %2458 = vmatpush1.bf16.msra.mxu1 %v4928_v4 }
 0x399   : > { %v5231_v10 = vpop.eup %5230  ;;  %2459 = vmatprep.subr.bf16.mxu1 %v4933_v58 }
 0x39a   : > { %4726 = vmatprep.mubr.msk.bf16.mxu0 %vm1685_vm0, %v2078_v35  ;;  %v2075_v62 = vmul.f32 %v5231_v10, %v5903_v41  ;;  %v4945_v41 = vld [vmem:[%s6726_s24 + $0xe4] ss:$8 sps:$4 sm:$0xff]  }
 0x39c   : > { %v2079_v1 = vpack.c.bf16 %v2075_v62, %v2074_v55  ;;  %2460 = vmatpush1.bf16.msra.mxu1 %v4931_v7 }
 0x39d   : > { %2461 = vmatprep.subr.bf16.mxu1 %v4936_v22 }
 0x39e   : > { %4727 = vmatmul.mubr.msk.bf16.gmra.mxu0 %vm1685_vm0, %v2079_v1 }
 0x3a0   : > { %2462 = vmatpush1.bf16.msra.mxu1 %v4934_v17  ;;  %v2237_v17 = vld [vmem:[%s6728_s28] sm:$0x3] }
 0x3a1   : > { %2463 = vmatprep.subr.bf16.mxu1 %v4939_v14  ;;  %v5969_v14 = vrot.slane %v2237_v17, %v5691_v16 }
 0x3a4   : > { %2464 = vmatpush1.bf16.msra.mxu1 %v4937_v19  ;;  %v5972_v19 = vrot.slane %v2237_v17, %v5694_v18 }
 0x3a5   : > { %2465 = vmatprep.subr.bf16.mxu1 %v4942_v15 }
 0x3a8   : > { %2466 = vmatpush2.bf16.msra.mxu1 %v4940_v60 }
 0x3a9   : > { %2467 = vmatprep.subr.bf16.mxu1 %v4945_v41 }
 0x3ac   : > { %2468 = vmatpush2.bf16.msra.mxu1 %v4943_v11 }
 0x3ad   : > { %2469 = vmatprep.subr.bf16.mxu1 %v4948_v20 }
 0x3b0   : > { %2470 = vmatpush2.bf16.msra.mxu1 %v4946_v8  ;;  %v5264_v8 = vld [vmem:[%s5493_s23] sm:$0xff] }
 0x3b1   : > { %2471 = vmatprep.subr.bf16.mxu1 %v4951_v12 }
 0x3b4   : > { %2472 = vmatpush2.bf16.msra.mxu1 %v4949_v26  ;;  %v5265_v26 = vld [vmem:[%s5493_s23 + $0x8] sm:$0xff] }
 0x3b5   : > { %2473 = vmatprep.subr.bf16.mxu1 %v4954_v27 }
 0x3b8   : > { %2474 = vmatpush2.bf16.msra.mxu1 %v4952_v31 }
 0x3b9   : > { %2475 = vmatprep.subr.bf16.mxu1 %v4957_v32 }
 0x3bc   : > { %2476 = vmatpush2.bf16.msra.mxu1 %v4955_v28 }
 0x3bd   : > { %2477 = vmatprep.subr.bf16.mxu1 %v4960_v29 }
 0x3c0   : > { %2478 = vmatpush2.bf16.msra.mxu1 %v4958_v37 }
 0x3c1   : > { %2479 = vmatprep.subr.bf16.mxu1 %v4963_v25  ;;  %v5266_v25 = vld [vmem:[%s5493_s23 + $0x10] sm:$0xff] }
 0x3c4   : > { %2480 = vmatpush2.bf16.msra.mxu1 %v4961_v6 }
 0x447   : > { %v4692_v9 = vpop.f32.mrf.mxu1 }
 0x448   : > { %v4620_v38 = vpack.c.bf16 %v4692_v9, %v4692_v9  ;;  %v5267_v9 = vld [vmem:[%s5493_s23 + $0x18] sm:$0xff] }
 0x449   : > { %v1824_v42 = vpop.f32.mrf.mxu1 }
 0x44a   : > { %1889 = vst [vmem:[#allocation2 + $0x10] sm:$0xf] %v4620_v38  ;;  %v4618_v3 = vpack.c.bf16 %v1824_v42, %v1824_v42 }
 0x44b   : > { %v4693_v44 = vpop.f32.mrf.mxu1 }
 0x44c   : > { %1887 = vst [vmem:[#allocation2] sm:$0xf] %v4618_v3  ;;  %v4621_v46 = vpack.c.bf16 %v4693_v44, %v4693_v44 }
 0x44d   : > { %v1827_v30 = vpop.f32.mrf.mxu1 }
 0x44e   : > { %1890 = vst [vmem:[#allocation2 + $0x18] sm:$0xf] %v4621_v46  ;;  %v4619_v47 = vpack.c.bf16 %v1827_v30, %v1827_v30  ;;  %v4724_v49 = vpop.f32.mrf.mxu0 }
 0x44f   : > { %v4628_v23 = vpack.c.bf16 %v4724_v49, %v4724_v49 }
 0x450   : > { %1888 = vst [vmem:[#allocation2 + $0x8] sm:$0xf] %v4619_v47  ;;  %v2126_v43 = vpop.f32.mrf.mxu0  ;;  %v5268_v47 = vld [vmem:[%s5493_s23 + $0x20] sm:$0xff] }
 0x451   : > { %2191 = vst [vmem:[#allocation2 + $0x14] sm:$0xf] %v4628_v23  ;;  %v4626_v51 = vpack.c.bf16 %v2126_v43, %v2126_v43  ;;  %v5269_v23 = vld [vmem:[%s5493_s23 + $0x28] sm:$0xff] }
 0x452   : > { %v4725_v39 = vpop.f32.mrf.mxu0 }
 0x453   : > { %2189 = vst [vmem:[#allocation2 + $0x4] sm:$0xf] %v4626_v51  ;;  %v4629_v52 = vpack.c.bf16 %v4725_v39, %v4725_v39 }
 0x454   : > { %v2129_v56 = vpop.f32.mrf.mxu0 }
 0x455   : > { %2192 = vst [vmem:[#allocation2 + $0x1c] sm:$0xf] %v4629_v52  ;;  %v4627_v57 = vpack.c.bf16 %v2129_v56, %v2129_v56  ;;  %v4969_v10 = vld [vmem:[#allocation2 + $0x10] ss:$8 sps:$4 sm:$0xff]  }
 0x457   : > { %2190 = vst [vmem:[#allocation2 + $0xc] sm:$0xf] %v4627_v57  ;;  %v4696_v34 = vpop.f32.mrf.mxu1  ;;  %v4964_v24 = vld [vmem:[#allocation2] ss:$8 sps:$4 sm:$0xff]  }
 0x458   : > { %v4624_v50 = vpack.c.bf16 %v4696_v34, %v4696_v34  ;;  %v5270_v34 = vld [vmem:[%s5493_s23 + $0x30] sm:$0xff] }
 0x459   : > { %v1840_v33 = vpop.f32.mrf.mxu1 }
 0x45a   : > { %1893 = vst [vmem:[#allocation2 + $0x30] sm:$0xf] %v4624_v50  ;;  %v4622_v61 = vpack.c.bf16 %v1840_v33, %v1840_v33  ;;  %v5271_v33 = vld [vmem:[%s5493_s23 + $0x38] sm:$0xff] }
 0x45b   : > { %v4697_v48 = vpop.f32.mrf.mxu1 }
 0x45c   : > { %1891 = vst [vmem:[#allocation2 + $0x20] sm:$0xf] %v4622_v61  ;;  %v4625_v45 = vpack.c.bf16 %v4697_v48, %v4697_v48  ;;  %v4967_v58 = vld [vmem:[#allocation2 + $0x14] ss:$8 sps:$4 sm:$0xff]  }
 0x45d   : > { %v1843_v0 = vpop.f32.mrf.mxu1 }
 0x45e   : > { %1894 = vst [vmem:[#allocation2 + $0x38] sm:$0xf] %v4625_v45  ;;  %v4623_v2 = vpack.c.bf16 %v1843_v0, %v1843_v0  ;;  %v4728_v54 = vpop.f32.mrf.mxu0  ;;  %v4966_v4 = vld [vmem:[#allocation2 + $0x4] ss:$8 sps:$4 sm:$0xff]  }
 0x45f   : > { %v4632_v5 = vpack.c.bf16 %v4728_v54, %v4728_v54  ;;  %2481 = vmatprep.mubr.bf16.mxu1 %v4966_v4 }
 0x460   : > { %1892 = vst [vmem:[#allocation2 + $0x28] sm:$0xf] %v4623_v2  ;;  %v2142_v63 = vpop.f32.mrf.mxu0  ;;  %2482 = vmatmul.mubr.bf16.vlgmr.msra.gmra.mxu1 %v4964_v24  ;;  %v5272_v24 = vld [vmem:[%s5493_s23 + $0x40] sm:$0xff] }
 0x461   : > { %2195 = vst [vmem:[#allocation2 + $0x34] sm:$0xf] %v4632_v5  ;;  %v4630_v53 = vpack.c.bf16 %v2142_v63, %v2142_v63  ;;  %2491 = vmatprep.mubr.bf16.mxu1 %v4967_v58  ;;  %v5273_v5 = vld [vmem:[%s5493_s23 + $0x48] sm:$0xff] }
 0x462   : > { %v4729_v21 = vpop.f32.mrf.mxu0 }
 0x463   : > { %2193 = vst [vmem:[#allocation2 + $0x24] sm:$0xf] %v4630_v53  ;;  %v4633_v59 = vpack.c.bf16 %v4729_v21, %v4729_v21 }
 0x464   : > { %v2145_v35 = vpop.f32.mrf.mxu0 }
 0x465   : > { %2196 = vst [vmem:[#allocation2 + $0x3c] sm:$0xf] %v4633_v59  ;;  %v4631_v7 = vpack.c.bf16 %v2145_v35, %v2145_v35  ;;  %v4975_v1 = vld [vmem:[#allocation2 + $0x30] ss:$8 sps:$4 sm:$0xff]  }
 0x467   : > { %2194 = vst [vmem:[#allocation2 + $0x2c] sm:$0xf] %v4631_v7  ;;  %v4972_v55 = vld [vmem:[#allocation2 + $0x20] ss:$8 sps:$4 sm:$0xff]   ;;  %v5274_v7 = vld [vmem:[%s5493_s23 + $0x50] sm:$0xff] }
 0x468   : > { %2492 = vmatmul.mubr.bf16.gmra.mxu1 %v4969_v10 }
 0x46c   : > { %v4973_v62 = vld [vmem:[#allocation2 + $0x34] ss:$8 sps:$4 sm:$0xff]  }
 0x46e   : > { %v4970_v22 = vld [vmem:[#allocation2 + $0x24] ss:$8 sps:$4 sm:$0xff]  }
 0x46f   : > { %2501 = vmatprep.mubr.bf16.mxu1 %v4970_v22  ;;  %v5275_v22 = vld [vmem:[%s5493_s23 + $0x58] sm:$0xff] }
 0x470   : > { %2502 = vmatmul.mubr.bf16.gmra.mxu1 %v4972_v55 }
 0x471   : > { %2511 = vmatprep.mubr.bf16.mxu1 %v4973_v62 }
 0x478   : > { %2512 = vmatmul.mubr.bf16.gmra.mxu1 %v4975_v1 }
 0x520   : > { %v2483_v15 = vpop.f32.mrf.mxu1 }
 0x521   : > { %v2484_v60 = vadd.f32 %v2483_v15, %v5969_v14 }
 0x522   : > { %v2485_v41 = vpop.f32.mrf.mxu1 }
 0x523   : > { %v2486_v11 = vadd.f32 %v2485_v41, %v5972_v19  ;;  %v5977_v12 = vadd.f32 %v5264_v8, %v2484_v60  ;;  %v5276_v41 = vld [vmem:[%s5493_s23 + $0x60] sm:$0xff] }
 0x524   : > { %v2487_v20 = vpop.f32.mrf.mxu1 }
 0x525   : > { %v5980_v27 = vadd.f32 %v5265_v26, %v2486_v11  ;;  %v2488_v31 = vadd.f32 %v2487_v20, %v5969_v14  ;;  %v5277_v20 = vld [vmem:[%s5493_s23 + $0x68] sm:$0xff] }
 0x526   : > { %v2489_v32 = vpop.f32.mrf.mxu1 }
 0x527   : > { %v2490_v28 = vadd.f32 %v2489_v32, %v5972_v19  ;;  %v2540_v29 = vadd.f32 %v5980_v27, %v5977_v12  ;;  %v5987_v6 = vadd.f32 %v5266_v25, %v2488_v31  ;;  %v5279_v25 = vld [vmem:[%s5493_s23 + $0x78] sm:$0xff] }
 0x528   : > { %v2493_v37 = vpop.f32.mrf.mxu1 }
 0x529   : > { %v5990_v38 = vadd.f32 %v5267_v9, %v2490_v28  ;;  %v2494_v42 = vadd.f32 %v2493_v37, %v5969_v14  ;;  %2541 = vadd.xlane.f32.xlu0 %v2540_v29  ;;  %v5278_v29 = vld [vmem:[%s5493_s23 + $0x70] sm:$0xff] }
 0x52a   : > { %v2495_v3 = vpop.f32.mrf.mxu1 }
 0x52b   : > { %v2496_v44 = vadd.f32 %v2495_v3, %v5972_v19  ;;  %v2543_v46 = vadd.f32 %v5990_v38, %v5987_v6  ;;  %v5997_v49 = vadd.f32 %v5268_v47, %v2494_v42  ;;  %v4976_v42 = vld [vmem:[%s5466_s3 + $0xe0] ss:$16 sps:$4 sm:$0xff]   ;;  %v4979_v3 = vld [vmem:[%s5466_s3 + $0xe8] ss:$16 sps:$4 sm:$0xff]  }
 0x52c   : > { %v2497_v30 = vpop.f32.mrf.mxu1  ;;  %v4982_v47 = vld [vmem:[%s5466_s3 + $0xc0] ss:$16 sps:$4 sm:$0xff]  }
 0x52d   : > { %v6000_v43 = vadd.f32 %v5269_v23, %v2496_v44  ;;  %v2498_v51 = vadd.f32 %v2497_v30, %v5969_v14  ;;  %2544 = vadd.xlane.f32.xlu1 %v2543_v46  ;;  %v4981_v44 = vld [vmem:[%s5466_s3 + $0xec] ss:$16 sps:$4 sm:$0xff]   ;;  %v4984_v46 = vld [vmem:[%s5466_s3 + $0xc4] ss:$16 sps:$4 sm:$0xff]   ;;  %v4985_v23 = vld [vmem:[%s5466_s3 + $0xc8] ss:$16 sps:$4 sm:$0xff]  }
 0x52e   : > { %v2499_v39 = vpop.f32.mrf.mxu1  ;;  %v4987_v30 = vld [vmem:[%s5466_s3 + $0xcc] ss:$16 sps:$4 sm:$0xff]   ;;  %3210 = vmatprep.subr.bf16.mxu1 %v4981_v44 }
 0x52f   : > { %v2500_v52 = vadd.f32 %v2499_v39, %v5972_v19  ;;  %v2546_v56 = vadd.f32 %v6000_v43, %v5997_v49  ;;  %v6007_v50 = vadd.f32 %v5270_v34, %v2498_v51  ;;  %3211 = vmatpush1.bf16.msra.mxu1 %v4979_v3  ;;  %v4990_v51 = vld [vmem:[%s5466_s3 + $0xa4] ss:$16 sps:$4 sm:$0xff]   ;;  %v4993_v39 = vld [vmem:[%s5466_s3 + $0xac] ss:$16 sps:$4 sm:$0xff]  }
 0x530   : > { %v2503_v57 = vpop.f32.mrf.mxu1  ;;  %3212 = vmatprep.subr.bf16.mxu1 %v4987_v30  ;;  %v4999_v34 = vld [vmem:[%s5466_s3 + $0x8c] ss:$16 sps:$4 sm:$0xff]  }
 0x531   : > { %v6010_v61 = vadd.f32 %v5271_v33, %v2500_v52  ;;  %v2504_v48 = vadd.f32 %v2503_v57, %v5969_v14  ;;  %2547 = vadd.xlane.f32.xlu0 %v2546_v56  ;;  %v4988_v52 = vld [vmem:[%s5466_s3 + $0xa0] ss:$16 sps:$4 sm:$0xff]   ;;  %v4991_v56 = vld [vmem:[%s5466_s3 + $0xa8] ss:$16 sps:$4 sm:$0xff]   ;;  %v4996_v57 = vld [vmem:[%s5466_s3 + $0x84] ss:$16 sps:$4 sm:$0xff]  }
 0x532   : > { %v2505_v45 = vpop.f32.mrf.mxu1  ;;  %v4994_v33 = vld [vmem:[%s5466_s3 + $0x80] ss:$16 sps:$4 sm:$0xff]  }
 0x533   : > { %v2506_v0 = vadd.f32 %v2505_v45, %v5972_v19  ;;  %v2549_v2 = vadd.f32 %v6010_v61, %v6007_v50  ;;  %v6017_v4 = vadd.f32 %v5272_v24, %v2504_v48  ;;  %3213 = vmatpush1.bf16.msra.mxu1 %v4985_v23  ;;  %v4997_v48 = vld [vmem:[%s5466_s3 + $0x88] ss:$16 sps:$4 sm:$0xff]   ;;  %v5002_v45 = vld [vmem:[%s5466_s3 + $0x64] ss:$16 sps:$4 sm:$0xff]  }
 0x534   : > { %v2507_v54 = vpop.f32.mrf.mxu1  ;;  %3214 = vmatprep.subr.bf16.mxu1 %v4993_v39  ;;  %v5008_v24 = vld [vmem:[%s5466_s3 + $0x44] ss:$16 sps:$4 sm:$0xff]  }
 0x535   : > { %v6020_v63 = vadd.f32 %v5273_v5, %v2506_v0  ;;  %v2508_v58 = vadd.f32 %v2507_v54, %v5969_v14  ;;  %2550 = vadd.xlane.f32.xlu1 %v2549_v2  ;;  %v5005_v0 = vld [vmem:[%s5466_s3 + $0x6c] ss:$16 sps:$4 sm:$0xff]   ;;  %v5000_v2 = vld [vmem:[%s5466_s3 + $0x60] ss:$16 sps:$4 sm:$0xff]   ;;  %v5003_v54 = vld [vmem:[%s5466_s3 + $0x68] ss:$16 sps:$4 sm:$0xff]  }
 0x536   : > { %v2509_v53 = vpop.f32.mrf.mxu1  ;;  %v5011_v5 = vld [vmem:[%s5466_s3 + $0x4c] ss:$16 sps:$4 sm:$0xff]  }
 0x537   : > { %v2510_v21 = vadd.f32 %v2509_v53, %v5972_v19  ;;  %v2552_v59 = vadd.f32 %v6020_v63, %v6017_v4  ;;  %v6027_v10 = vadd.f32 %v5274_v7, %v2508_v58  ;;  %3215 = vmatpush1.bf16.msra.mxu1 %v4991_v56  ;;  %v5006_v58 = vld [vmem:[%s5466_s3 + $0x40] ss:$16 sps:$4 sm:$0xff]   ;;  %v5009_v53 = vld [vmem:[%s5466_s3 + $0x48] ss:$16 sps:$4 sm:$0xff]  }
 0x538   : > { %v2513_v35 = vpop.f32.mrf.mxu1  ;;  %3216 = vmatprep.subr.bf16.mxu1 %v4999_v34  ;;  %v5015_v7 = vld [vmem:[%s5466_s3 + $0x28] ss:$16 sps:$4 sm:$0xff]  }
 0x539   : > { %v6030_v55 = vadd.f32 %v5275_v22, %v2510_v21  ;;  %v2514_v62 = vadd.f32 %v2513_v35, %v5969_v14  ;;  %2553 = vadd.xlane.f32.xlu0 %v2552_v59  ;;  %v5014_v21 = vld [vmem:[%s5466_s3 + $0x24] ss:$16 sps:$4 sm:$0xff]   ;;  %v5017_v59 = vld [vmem:[%s5466_s3 + $0x2c] ss:$16 sps:$4 sm:$0xff]   ;;  %v5012_v35 = vld [vmem:[%s5466_s3 + $0x20] ss:$16 sps:$4 sm:$0xff]  }
 0x53a   : > { %v2515_v1 = vpop.f32.mrf.mxu1  ;;  %v5020_v22 = vld [vmem:[%s5466_s3 + $0x4] ss:$16 sps:$4 sm:$0xff]  }
 0x53b   : > { %v2516_v17 = vadd.f32 %v2515_v1, %v5972_v19  ;;  %v2555_v15 = vadd.f32 %v6030_v55, %v6027_v10  ;;  %v6037_v11 = vadd.f32 %v5276_v41, %v2514_v62  ;;  %3217 = vmatpush1.bf16.msra.mxu1 %v4997_v48  ;;  %v5023_v62 = vld [vmem:[%s5466_s3 + $0xc] ss:$16 sps:$4 sm:$0xff]   ;;  %v5018_v1 = vld [vmem:[%s5466_s3] ss:$16 sps:$4 sm:$0xff]  }
 0x53c   : > { %v2517_v60 = vpop.f32.mrf.mxu1  ;;  %3218 = vmatprep.subr.bf16.mxu1 %v5005_v0  ;;  %v5024_v41 = vld [vmem:[%s5466_s3 + $0x1e0] ss:$16 sps:$4 sm:$0xff]  }
 0x53d   : > { %v6040_v8 = vadd.f32 %v5277_v20, %v2516_v17  ;;  %v2518_v26 = vadd.f32 %v2517_v60, %v5969_v14  ;;  %2556 = vadd.xlane.f32.xlu1 %v2555_v15  ;;  %v5021_v17 = vld [vmem:[%s5466_s3 + $0x8] ss:$16 sps:$4 sm:$0xff]   ;;  %v5026_v15 = vld [vmem:[%s5466_s3 + $0x1e4] ss:$16 sps:$4 sm:$0xff]   ;;  %v5029_v60 = vld [vmem:[%s5466_s3 + $0x1ec] ss:$16 sps:$4 sm:$0xff]  }
 0x53e   : > { %v2519_v31 = vpop.f32.mrf.mxu1  ;;  %v5027_v20 = vld [vmem:[%s5466_s3 + $0x1e8] ss:$16 sps:$4 sm:$0xff]  }
 0x53f   : > { %v2520_v32 = vadd.f32 %v2519_v31, %v5972_v19  ;;  %v2558_v28 = vadd.f32 %v6040_v8, %v6037_v11  ;;  %v6047_v37 = vadd.f32 %v5278_v29, %v2518_v26  ;;  %v4978_v19 = vld [vmem:[%s5466_s3 + $0xe4] ss:$16 sps:$4 sm:$0xff]   ;;  %3219 = vmatpush1.bf16.msra.mxu1 %v5003_v54 }
 0x540   : > { %3137 = vmatprep.subr.bf16.mxu0 %v4978_v19  ;;  %3220 = vmatprep.subr.bf16.mxu1 %v5011_v5  ;;  %v5032_v5 = vld [vmem:[%s5466_s3 + $0x1c4] ss:$16 sps:$4 sm:$0xff]  }
 0x541   : > { %v6050_v9 = vadd.f32 %v5279_v25, %v2520_v32  ;;  %2559 = vadd.xlane.f32.xlu0 %v2558_v28  ;;  %3138 = vmatpush1.bf16.msra.mxu0 %v4976_v42 }
 0x542   : > { %3139 = vmatprep.subr.bf16.mxu0 %v4984_v46 }
 0x543   : > { %v2561_v14 = vadd.f32 %v6050_v9, %v6047_v37  ;;  %3221 = vmatpush1.bf16.msra.mxu1 %v5009_v53  ;;  %v5030_v53 = vld [vmem:[%s5466_s3 + $0x1c0] ss:$16 sps:$4 sm:$0xff]  }
 0x544   : > { %3222 = vmatprep.subr.bf16.mxu1 %v5017_v59 }
 0x545   : > { %2562 = vadd.xlane.f32.xlu1 %v2561_v14  ;;  %3140 = vmatpush1.bf16.msra.mxu0 %v4982_v47 }
 0x546   : > { %3141 = vmatprep.subr.bf16.mxu0 %v4990_v51 }
 0x547   : > { %3223 = vmatpush1.bf16.msra.mxu1 %v5015_v7 }
 0x548   : > { %3224 = vmatprep.subr.bf16.mxu1 %v5023_v62 }
 0x549   : > { %3142 = vmatpush1.bf16.msra.mxu0 %v4988_v52 }
 0x54a   : > { %3143 = vmatprep.subr.bf16.mxu0 %v4996_v57 }
 0x54b   : > { %3225 = vmatpush1.bf16.msra.mxu1 %v5021_v17  ;;  %v5039_v17 = vld [vmem:[%s5466_s3 + $0x1a8] ss:$16 sps:$4 sm:$0xff]  }
 0x54c   : > { %3226 = vmatprep.subr.bf16.mxu1 %v5029_v60 }
 0x54d   : > { %3144 = vmatpush1.bf16.msra.mxu0 %v4994_v33 }
 0x54e   : > { %3145 = vmatprep.subr.bf16.mxu0 %v5002_v45 }
 0x54f   : > { %3227 = vmatpush2.bf16.msra.mxu1 %v5027_v20 }
 0x551   : > { %3146 = vmatpush1.bf16.msra.mxu0 %v5000_v2 }
 0x552   : > { %3147 = vmatprep.subr.bf16.mxu0 %v5008_v24 }
 0x555   : > { %3148 = vmatpush1.bf16.msra.mxu0 %v5006_v58  ;;  %v5035_v58 = vld [vmem:[%s5466_s3 + $0x1cc] ss:$16 sps:$4 sm:$0xff]  }
 0x556   : > { %3149 = vmatprep.subr.bf16.mxu0 %v5014_v21  ;;  %3228 = vmatprep.subr.bf16.mxu1 %v5035_v58 }
 0x559   : > { %3150 = vmatpush1.bf16.msra.mxu0 %v5012_v35 }
 0x55a   : > { %3151 = vmatprep.subr.bf16.mxu0 %v5020_v22 }
 0x55d   : > { %3152 = vmatpush1.bf16.msra.mxu0 %v5018_v1  ;;  %v5038_v1 = vld [vmem:[%s5466_s3 + $0x1a4] ss:$16 sps:$4 sm:$0xff]  }
 0x55e   : > { %3153 = vmatprep.subr.bf16.mxu0 %v5026_v15 }
 0x561   : > { %3154 = vmatpush2.bf16.msra.mxu0 %v5024_v41 }
 0x562   : > { %3155 = vmatprep.subr.bf16.mxu0 %v5032_v5  ;;  %v5077_v5 = vld [vmem:[%s5476_s15 + $0x174] ss:$8 sps:$4 sm:$0xff]  }
 0x565   : > { %3156 = vmatpush2.bf16.msra.mxu0 %v5030_v53 }
 0x566   : > { %3157 = vmatprep.subr.bf16.mxu0 %v5038_v1 }
 0x5b2   : > { %v2542_v26 = vpop.xlane.xlu0 %2541 }
 0x5b3   : > { %v2565_v31 = vmul.f32 0.00390625, %v2542_v26 }
 0x5b5   : > { %v6091_v32 = vsub.f32 %v5977_v12, %v2565_v31  ;;  %v6094_v28 = vsub.f32 %v5980_v27, %v2565_v31 }
 0x5b6   : > { %v2545_v29 = vpop.xlane.xlu1 %2544 }
 0x5b7   : > { %v2566_v25 = vmul.f32 0.00390625, %v2545_v29  ;;  %v2589_v14 = vmul.f32 %v6091_v32, %v6091_v32  ;;  %v2590_v42 = vmul.f32 %v6094_v28, %v6094_v28 }
 0x5b9   : > { %v6101_v19 = vsub.f32 %v5987_v6, %v2566_v25  ;;  %v6104_v3 = vsub.f32 %v5990_v38, %v2566_v25  ;;  %v2605_v44 = vadd.f32 %v2590_v42, %v2589_v14  ;;  %v5042_v25 = vld [vmem:[%s5466_s3 + $0x180] ss:$16 sps:$4 sm:$0xff]   ;;  %v5045_v14 = vld [vmem:[%s5466_s3 + $0x188] ss:$16 sps:$4 sm:$0xff]  }
 0x5ba   : > { %v2548_v12 = vpop.xlane.xlu0 %2547 }
 0x5bb   : > { %v2567_v46 = vmul.f32 0.00390625, %v2548_v12  ;;  %2606 = vadd.xlane.f32.xlu0 %v2605_v44  ;;  %v2591_v27 = vmul.f32 %v6101_v19, %v6101_v19  ;;  %v2592_v30 = vmul.f32 %v6104_v3, %v6104_v3 }
 0x5bd   : > { %v6111_v47 = vsub.f32 %v5997_v49, %v2567_v46  ;;  %v6114_v23 = vsub.f32 %v6000_v43, %v2567_v46  ;;  %v2608_v6 = vadd.f32 %v2592_v30, %v2591_v27  ;;  %v5050_v27 = vld [vmem:[%s5466_s3 + $0x164] ss:$16 sps:$4 sm:$0xff]   ;;  %v5053_v30 = vld [vmem:[%s5466_s3 + $0x16c] ss:$16 sps:$4 sm:$0xff]  }
 0x5be   : > { %v2551_v51 = vpop.xlane.xlu1 %2550 }
 0x5bf   : > { %v2568_v38 = vmul.f32 0.00390625, %v2551_v51  ;;  %2609 = vadd.xlane.f32.xlu1 %v2608_v6  ;;  %v2593_v39 = vmul.f32 %v6111_v47, %v6111_v47  ;;  %v2594_v52 = vmul.f32 %v6114_v23, %v6114_v23  ;;  %v5051_v6 = vld [vmem:[%s5466_s3 + $0x168] ss:$16 sps:$4 sm:$0xff]  }
 0x5c1   : > { %v6121_v56 = vsub.f32 %v6007_v50, %v2568_v38  ;;  %v6124_v49 = vsub.f32 %v6010_v61, %v2568_v38  ;;  %v2611_v43 = vadd.f32 %v2594_v52, %v2593_v39  ;;  %v5056_v38 = vld [vmem:[%s5466_s3 + $0x144] ss:$16 sps:$4 sm:$0xff]   ;;  %v5059_v39 = vld [vmem:[%s5466_s3 + $0x14c] ss:$16 sps:$4 sm:$0xff]   ;;  %v5054_v52 = vld [vmem:[%s5466_s3 + $0x140] ss:$16 sps:$4 sm:$0xff]  }
 0x5c2   : > { %v2554_v57 = vpop.xlane.xlu0 %2553 }
 0x5c3   : > { %v2569_v34 = vmul.f32 0.00390625, %v2554_v57  ;;  %2612 = vadd.xlane.f32.xlu0 %v2611_v43  ;;  %v2595_v33 = vmul.f32 %v6121_v56, %v6121_v56  ;;  %v2596_v48 = vmul.f32 %v6124_v49, %v6124_v49  ;;  %v5057_v43 = vld [vmem:[%s5466_s3 + $0x148] ss:$16 sps:$4 sm:$0xff]   ;;  %v5062_v57 = vld [vmem:[%s5466_s3 + $0x124] ss:$16 sps:$4 sm:$0xff]  }
 0x5c5   : > { %v6131_v50 = vsub.f32 %v6017_v4, %v2569_v34  ;;  %v6134_v45 = vsub.f32 %v6020_v63, %v2569_v34  ;;  %v2614_v61 = vadd.f32 %v2596_v48, %v2595_v33  ;;  %v5033_v4 = vld [vmem:[%s5466_s3 + $0x1c8] ss:$16 sps:$4 sm:$0xff]   ;;  %v5065_v34 = vld [vmem:[%s5466_s3 + $0x12c] ss:$16 sps:$4 sm:$0xff]   ;;  %v5060_v33 = vld [vmem:[%s5466_s3 + $0x120] ss:$16 sps:$4 sm:$0xff]  }
 0x5c6   : > { %v2557_v0 = vpop.xlane.xlu1 %2556  ;;  %3229 = vmatpush2.bf16.msra.mxu1 %v5033_v4  ;;  %v5063_v48 = vld [vmem:[%s5466_s3 + $0x128] ss:$16 sps:$4 sm:$0xff]  }
 0x5c7   : > { %v2570_v2 = vmul.f32 0.00390625, %v2557_v0  ;;  %2615 = vadd.xlane.f32.xlu1 %v2614_v61  ;;  %v2597_v54 = vmul.f32 %v6131_v50, %v6131_v50  ;;  %v2598_v24 = vmul.f32 %v6134_v45, %v6134_v45  ;;  %v5068_v61 = vld [vmem:[%s5466_s3 + $0x104] ss:$16 sps:$4 sm:$0xff]   ;;  %v5071_v0 = vld [vmem:[%s5466_s3 + $0x10c] ss:$16 sps:$4 sm:$0xff]  }
 0x5c9   : > { %v6145_v63 = vsub.f32 %v6027_v10, %v2570_v2  ;;  %v6148_v21 = vsub.f32 %v6030_v55, %v2570_v2  ;;  %v2617_v59 = vadd.f32 %v2598_v24, %v2597_v54  ;;  %v5041_v10 = vld [vmem:[%s5466_s3 + $0x1ac] ss:$16 sps:$4 sm:$0xff]   ;;  %v5036_v55 = vld [vmem:[%s5466_s3 + $0x1a0] ss:$16 sps:$4 sm:$0xff]   ;;  %v5069_v54 = vld [vmem:[%s5466_s3 + $0x108] ss:$16 sps:$4 sm:$0xff]  }
 0x5ca   : > { %v2560_v35 = vpop.xlane.xlu0 %2559  ;;  %3230 = vmatprep.subr.bf16.mxu1 %v5041_v10  ;;  %3158 = vmatpush2.bf16.msra.mxu0 %v5036_v55  ;;  %v5066_v2 = vld [vmem:[%s5466_s3 + $0x100] ss:$16 sps:$4 sm:$0xff]   ;;  %v5074_v24 = vld [vmem:[%s5476_s15 + $0x74] ss:$8 sps:$4 sm:$0xff]  }
 0x5cb   : > { %v2571_v7 = vmul.f32 0.00390625, %v2560_v35  ;;  %2618 = vadd.xlane.f32.xlu0 %v2617_v59  ;;  %v2599_v22 = vmul.f32 %v6145_v63, %v6145_v63  ;;  %v2600_v62 = vmul.f32 %v6148_v21, %v6148_v21  ;;  %3231 = vmatpush2.bf16.msra.mxu1 %v5039_v17 }
 0x5cd   : > { %v6159_v15 = vsub.f32 %v6037_v11, %v2571_v7  ;;  %v6162_v60 = vsub.f32 %v6040_v8, %v2571_v7  ;;  %v2620_v41 = vadd.f32 %v2600_v62, %v2599_v22  ;;  %v5044_v11 = vld [vmem:[%s5466_s3 + $0x184] ss:$16 sps:$4 sm:$0xff]   ;;  %v5047_v8 = vld [vmem:[%s5466_s3 + $0x18c] ss:$16 sps:$4 sm:$0xff]  }
 0x5ce   : > { %v2563_v20 = vpop.xlane.xlu1 %2562  ;;  %3159 = vmatprep.subr.bf16.mxu0 %v5044_v11  ;;  %3232 = vmatprep.subr.bf16.mxu1 %v5047_v8 }
 0x5cf   : > { %v2572_v26 = vmul.f32 0.00390625, %v2563_v20  ;;  %2621 = vadd.xlane.f32.xlu1 %v2620_v41  ;;  %v2601_v31 = vmul.f32 %v6159_v15, %v6159_v15  ;;  %v2602_v29 = vmul.f32 %v6162_v60, %v6162_v60  ;;  %3160 = vmatpush2.bf16.msra.mxu0 %v5042_v25  ;;  %v2538_v41 = vld [vmem:[%s6729_s27] sm:$0x3] }
 0x5d0   : > { %3233 = vmatpush2.bf16.msra.mxu1 %v5045_v14  ;;  %3161 = vmatprep.subr.bf16.mxu0 %v5050_v27  ;;  %v6209_v11 = vrot.slane %v2538_v41, %v5694_v18  ;;  %v2539_v14 = vld [vmem:[%s6730_s4] sm:$0x3] }
 0x5d1   : > { %v6173_v42 = vsub.f32 %v6047_v37, %v2572_v26  ;;  %v6176_v44 = vsub.f32 %v6050_v9, %v2572_v26  ;;  %v2623_v12 = vadd.f32 %v2602_v29, %v2601_v31  ;;  %v5048_v9 = vld [vmem:[%s5466_s3 + $0x160] ss:$16 sps:$4 sm:$0xff]   ;;  %3234 = vmatprep.subr.bf16.mxu1 %v5053_v30  ;;  %v6206_v29 = vrot.slane %v2538_v41, %v5691_v16 }
 0x5d3   : > { %2624 = vadd.xlane.f32.xlu0 %v2623_v12  ;;  %v2603_v46 = vmul.f32 %v6173_v42, %v6173_v42  ;;  %v2604_v37 = vmul.f32 %v6176_v44, %v6176_v44  ;;  %3162 = vmatpush2.bf16.msra.mxu0 %v5048_v9  ;;  %v6220_v9 = vrot.slane %v2539_v14, %v5691_v16 }
 0x5d4   : > { %3235 = vmatpush2.bf16.msra.mxu1 %v5051_v6  ;;  %3163 = vmatprep.subr.bf16.mxu0 %v5056_v38  ;;  %v6223_v6 = vrot.slane %v2539_v14, %v5694_v18 }
 0x5d5   : > { %v2626_v51 = vadd.f32 %v2604_v37, %v2603_v46  ;;  %3236 = vmatprep.subr.bf16.mxu1 %v5059_v39 }
 0x5d7   : > { %2627 = vadd.xlane.f32.xlu1 %v2626_v51  ;;  %3164 = vmatpush2.bf16.msra.mxu0 %v5054_v52 }
 0x5d8   : > { %3237 = vmatpush2.bf16.msra.mxu1 %v5057_v43  ;;  %3165 = vmatprep.subr.bf16.mxu0 %v5062_v57 }
 0x5d9   : > { %3238 = vmatprep.subr.bf16.mxu1 %v5065_v34 }
 0x5db   : > { %3166 = vmatpush2.bf16.msra.mxu0 %v5060_v33 }
 0x5dc   : > { %3239 = vmatpush2.bf16.msra.mxu1 %v5063_v48  ;;  %3167 = vmatprep.subr.bf16.mxu0 %v5068_v61 }
 0x5dd   : > { %3240 = vmatprep.subr.bf16.mxu1 %v5071_v0 }
 0x5df   : > { %3168 = vmatpush2.bf16.msra.mxu0 %v5066_v2 }
 0x5e0   : > { %3241 = vmatpush2.bf16.msra.mxu1 %v5069_v54  ;;  %3727 = vmatprep.subr.bf16.mxu0 %v5074_v24 }
 0x5e1   : > { %3800 = vmatprep.subr.bf16.mxu1 %v5077_v5 }
 0x644   : > { %v2607_v58 = vpop.xlane.xlu0 %2606 }
 0x645   : > { %v2629_v53 = vmul.f32 0.00390625, %v2607_v58 }
 0x647   : > { %v2637_v4 = vadd.f32 1e-05, %v2629_v53  ;;  %v5072_v53 = vld [vmem:[%s5476_s15 + $0x70] ss:$8 sps:$4 sm:$0xff]  }
 0x648   : > { %v2610_v59 = vpop.xlane.xlu1 %2609 }
 0x649   : > { %5232 = vrsqrt.f32 %v2637_v4  ;;  %v2630_v35 = vmul.f32 0.00390625, %v2610_v59  ;;  %v5075_v4 = vld [vmem:[%s5476_s15 + $0x170] ss:$8 sps:$4 sm:$0xff]  }
 0x64b   : > { %v2638_v7 = vadd.f32 1e-05, %v2630_v35 }
 0x64c   : > { %v2613_v22 = vpop.xlane.xlu0 %2612 }
 0x64d   : > { %5234 = vrsqrt.f32 %v2638_v7  ;;  %v2631_v62 = vmul.f32 0.00390625, %v2613_v22  ;;  %v5083_v22 = vld [vmem:[%s5476_s15 + $0x164] ss:$8 sps:$4 sm:$0xff]  }
 0x64f   : > { %v2639_v1 = vadd.f32 1e-05, %v2631_v62 }
 0x650   : > { %v2616_v10 = vpop.xlane.xlu1 %2615 }
 0x651   : > { %5236 = vrsqrt.f32 %v2639_v1  ;;  %v2632_v55 = vmul.f32 0.00390625, %v2616_v10 }
 0x653   : > { %v2640_v17 = vadd.f32 1e-05, %v2632_v55 }
 0x654   : > { %v2619_v20 = vpop.xlane.xlu0 %2618 }
 0x655   : > { %5238 = vrsqrt.f32 %v2640_v17  ;;  %v2633_v26 = vmul.f32 0.00390625, %v2619_v20  ;;  %v5078_v17 = vld [vmem:[%s5476_s15 + $0x60] ss:$8 sps:$4 sm:$0xff]  }
 0x656   : > { %v5233_v31 = vpop.eup %5232 }
 0x657   : > { %v2653_v8 = vmul.f32 %v5233_v31, %v6091_v32  ;;  %v2641_v25 = vadd.f32 1e-05, %v2633_v26  ;;  %v2654_v12 = vmul.f32 %v5233_v31, %v6094_v28  ;;  %v5086_v26 = vld [vmem:[%s5476_s15 + $0x54] ss:$8 sps:$4 sm:$0xff]  }
 0x658   : > { %v2622_v46 = vpop.xlane.xlu1 %2621 }
 0x659   : > { %5240 = vrsqrt.f32 %v2641_v25  ;;  %v2634_v37 = vmul.f32 0.00390625, %v2622_v46  ;;  %v2681_v30 = vmul.f32 %v6209_v11, %v2654_v12  ;;  %v2680_v32 = vmul.f32 %v6206_v29, %v2653_v8 }
 0x65a   : > { %v5235_v27 = vpop.eup %5234 }
 0x65b   : > { %v2655_v51 = vmul.f32 %v5235_v27, %v6101_v19  ;;  %v2642_v38 = vadd.f32 1e-05, %v2634_v37  ;;  %v2656_v39 = vmul.f32 %v5235_v27, %v6104_v3  ;;  %v6231_v33 = vadd.f32 %v6223_v6, %v2681_v30  ;;  %v5084_v37 = vld [vmem:[%s5476_s15 + $0x50] ss:$8 sps:$4 sm:$0xff]   ;;  %v5089_v27 = vld [vmem:[%s5476_s15 + $0x154] ss:$8 sps:$4 sm:$0xff]  }
 0x65c   : > { %v2625_v28 = vpop.xlane.xlu0 %2624  ;;  %v6234_v48 = vadd.f32 %v6220_v9, %v2680_v32 }
 0x65d   : > { %5242 = vrsqrt.f32 %v2642_v38  ;;  %v2635_v52 = vmul.f32 0.00390625, %v2625_v28  ;;  %v2683_v43 = vmul.f32 %v6209_v11, %v2656_v39  ;;  %v2682_v57 = vmul.f32 %v6206_v29, %v2655_v51  ;;  %v5095_v28 = vld [vmem:[%s5476_s15 + $0x144] ss:$8 sps:$4 sm:$0xff]  }
 0x65e   : > { %v5237_v34 = vpop.eup %5236 }
 0x65f   : > { %v2643_v19 = vadd.f32 1e-05, %v2635_v52  ;;  %v6237_v3 = vadd.f32 %v6223_v6, %v2683_v43  ;;  %v6240_v61 = vadd.f32 %v6220_v9, %v2682_v57  ;;  %v2658_v0 = vmul.f32 %v5237_v34, %v6114_v23  ;;  %v5080_v23 = vld [vmem:[%s5476_s15 + $0x64] ss:$8 sps:$4 sm:$0xff]   ;;  %v5090_v57 = vld [vmem:[%s5476_s15 + $0x40] ss:$8 sps:$4 sm:$0xff]  }
 0x660   : > { %v2628_v2 = vpop.xlane.xlu1 %2627  ;;  %v2657_v54 = vmul.f32 %v5237_v34, %v6111_v47 }
 0x661   : > { %5244 = vrsqrt.f32 %v2643_v19  ;;  %v2636_v24 = vmul.f32 0.00390625, %v2628_v2  ;;  %v2724_v5 = vpack.c.bf16 %v6237_v3, %v6231_v33  ;;  %v2723_v58 = vpack.c.bf16 %v6240_v61, %v6234_v48 }
 0x662   : > { %v5239_v59 = vpop.eup %5238  ;;  %v2685_v35 = vmul.f32 %v6209_v11, %v2658_v0  ;;  %v2684_v7 = vmul.f32 %v6206_v29, %v2657_v54  ;;  %v5098_v0 = vld [vmem:[%s5476_s15 + $0x34] ss:$8 sps:$4 sm:$0xff]  }
 0x663   : > { %v2644_v62 = vadd.f32 1e-05, %v2636_v24  ;;  %3169 = vmatprep.mubr.bf16.mxu0 %v2724_v5  ;;  %3242 = vmatprep.mubr.bf16.mxu1 %v2724_v5  ;;  %v2660_v47 = vmul.f32 %v5239_v59, %v6124_v49  ;;  %v2659_v1 = vmul.f32 %v5239_v59, %v6121_v56  ;;  %v5081_v56 = vld [vmem:[%s5476_s15 + $0x160] ss:$8 sps:$4 sm:$0xff]   ;;  %v5101_v59 = vld [vmem:[%s5476_s15 + $0x134] ss:$8 sps:$4 sm:$0xff]  }
 0x664   : > { %3170 = vmatmul.mubr.bf16.vlgmr.msra.gmra.mxu0 %v2723_v58  ;;  %3243 = vmatmul.mubr.bf16.vlgmr.msra.gmra.mxu1 %v2723_v58  ;;  %v6260_v20 = vadd.f32 %v6223_v6, %v2685_v35  ;;  %v6263_v49 = vadd.f32 %v6220_v9, %v2684_v7 }
 0x665   : > { %5246 = vrsqrt.f32 %v2644_v62  ;;  %v2687_v10 = vmul.f32 %v6209_v11, %v2660_v47  ;;  %v2686_v55 = vmul.f32 %v6206_v29, %v2659_v1  ;;  %3728 = vmatpush1.bf16.msra.mxu0 %v5072_v53  ;;  %3801 = vmatpush1.bf16.msra.mxu1 %v5075_v4  ;;  %v5096_v4 = vld [vmem:[%s5476_s15 + $0x30] ss:$8 sps:$4 sm:$0xff]   ;;  %v5107_v47 = vld [vmem:[%s5476_s15 + $0x124] ss:$8 sps:$4 sm:$0xff]  }
 0x666   : > { %v5241_v41 = vpop.eup %5240  ;;  %3729 = vmatprep.subr.bf16.mxu0 %v5080_v23  ;;  %3802 = vmatprep.subr.bf16.mxu1 %v5083_v22  ;;  %v5104_v23 = vld [vmem:[%s5476_s15 + $0x24] ss:$8 sps:$4 sm:$0xff]  }
 0x667   : > { %v6268_v31 = vadd.f32 %v6223_v6, %v2687_v10  ;;  %v6271_v8 = vadd.f32 %v6220_v9, %v2686_v55  ;;  %v2662_v25 = vmul.f32 %v5241_v41, %v6134_v45  ;;  %v2661_v14 = vmul.f32 %v5241_v41, %v6131_v50  ;;  %v5087_v45 = vld [vmem:[%s5476_s15 + $0x150] ss:$8 sps:$4 sm:$0xff]   ;;  %v5092_v50 = vld [vmem:[%s5476_s15 + $0x44] ss:$8 sps:$4 sm:$0xff]   ;;  %v5102_v55 = vld [vmem:[%s5476_s15 + $0x20] ss:$8 sps:$4 sm:$0xff]  }
 0x669   : > { %v2726_v12 = vpack.c.bf16 %v6268_v31, %v6260_v20  ;;  %v2725_v46 = vpack.c.bf16 %v6271_v8, %v6263_v49  ;;  %3730 = vmatpush1.bf16.msra.mxu0 %v5078_v17  ;;  %v2689_v32 = vmul.f32 %v6209_v11, %v2662_v25  ;;  %v2688_v51 = vmul.f32 %v6206_v29, %v2661_v14  ;;  %v5108_v25 = vld [vmem:[%s5476_s15 + $0x10] ss:$8 sps:$4 sm:$0xff]   ;;  %v5113_v14 = vld [vmem:[%s5476_s15 + $0x114] ss:$8 sps:$4 sm:$0xff]  }
 0x66a   : > { %v5243_v30 = vpop.eup %5242  ;;  %3803 = vmatpush1.bf16.msra.mxu1 %v5081_v56  ;;  %3731 = vmatprep.subr.bf16.mxu0 %v5086_v26 }
 0x66b   : > { %3179 = vmatprep.mubr.bf16.mxu0 %v2726_v12  ;;  %3252 = vmatprep.mubr.bf16.mxu1 %v2726_v12  ;;  %v2664_v38 = vmul.f32 %v5243_v30, %v6148_v21  ;;  %v2663_v39 = vmul.f32 %v5243_v30, %v6145_v63  ;;  %v6292_v19 = vadd.f32 %v6223_v6, %v2689_v32  ;;  %v5093_v63 = vld [vmem:[%s5476_s15 + $0x140] ss:$8 sps:$4 sm:$0xff]   ;;  %v5116_v12 = vld [vmem:[%s5476_s15 + $0x4] ss:$8 sps:$4 sm:$0xff]   ;;  %v5125_v30 = vld [vmem:[%s5476_s15 + $0x1f4] ss:$8 sps:$4 sm:$0xff]  }
 0x66c   : > { %3180 = vmatmul.mubr.bf16.gmra.mxu0 %v2725_v46  ;;  %3253 = vmatmul.mubr.bf16.gmra.mxu1 %v2725_v46  ;;  %v6295_v21 = vadd.f32 %v6220_v9, %v2688_v51  ;;  %v5114_v46 = vld [vmem:[%s5476_s15] ss:$8 sps:$4 sm:$0xff]   ;;  %v5120_v32 = vld [vmem:[%s5476_s15 + $0xf0] ss:$8 sps:$4 sm:$0xff]  }
 0x66d   : > { %v2691_v52 = vmul.f32 %v6209_v11, %v2664_v38  ;;  %v2690_v43 = vmul.f32 %v6206_v29, %v2663_v39  ;;  %3804 = vmatprep.subr.bf16.mxu1 %v5089_v27  ;;  %3732 = vmatpush1.bf16.msra.mxu0 %v5084_v37  ;;  %v5117_v37 = vld [vmem:[%s5476_s15 + $0x100] ss:$8 sps:$4 sm:$0xff]   ;;  %v5122_v27 = vld [vmem:[%s5476_s15 + $0xf4] ss:$8 sps:$4 sm:$0xff]   ;;  %v5123_v51 = vld [vmem:[%s5476_s15 + $0x1f0] ss:$8 sps:$4 sm:$0xff]  }
 0x66e   : > { %v5245_v34 = vpop.eup %5244  ;;  %3805 = vmatpush1.bf16.msra.mxu1 %v5087_v45  ;;  %3733 = vmatprep.subr.bf16.mxu0 %v5092_v50  ;;  %v5128_v45 = vld [vmem:[%s5476_s15 + $0xe4] ss:$8 sps:$4 sm:$0xff]   ;;  %v5126_v38 = vld [vmem:[%s5476_s15 + $0xe0] ss:$8 sps:$4 sm:$0xff]  }
 0x66f   : > { %v6300_v2 = vadd.f32 %v6223_v6, %v2691_v52  ;;  %v6303_v54 = vadd.f32 %v6220_v9, %v2690_v43  ;;  %v2666_v24 = vmul.f32 %v5245_v34, %v6162_v60  ;;  %v2665_v5 = vmul.f32 %v5245_v34, %v6159_v15  ;;  %3806 = vmatprep.subr.bf16.mxu1 %v5095_v28  ;;  %v5099_v60 = vld [vmem:[%s5476_s15 + $0x130] ss:$8 sps:$4 sm:$0xff]   ;;  %v5131_v50 = vld [vmem:[%s5476_s15 + $0x1e4] ss:$8 sps:$4 sm:$0xff]   ;;  %v5129_v39 = vld [vmem:[%s5476_s15 + $0x1e0] ss:$8 sps:$4 sm:$0xff]  }
 0x670   : > { %v5134_v28 = vld [vmem:[%s5476_s15 + $0xd4] ss:$8 sps:$4 sm:$0xff]   ;;  %v5132_v43 = vld [vmem:[%s5476_s15 + $0xd0] ss:$8 sps:$4 sm:$0xff]   ;;  %v5140_v34 = vld [vmem:[%s5476_s15 + $0xc4] ss:$8 sps:$4 sm:$0xff]  }
 0x671   : > { %v2728_v58 = vpack.c.bf16 %v6300_v2, %v6292_v19  ;;  %v2727_v53 = vpack.c.bf16 %v6303_v54, %v6295_v21  ;;  %3734 = vmatpush1.bf16.msra.mxu0 %v5090_v57  ;;  %v2693_v7 = vmul.f32 %v6209_v11, %v2666_v24  ;;  %v2692_v62 = vmul.f32 %v6206_v29, %v2665_v5  ;;  %v5137_v52 = vld [vmem:[%s5476_s15 + $0x1d4] ss:$8 sps:$4 sm:$0xff]   ;;  %v5135_v57 = vld [vmem:[%s5476_s15 + $0x1d0] ss:$8 sps:$4 sm:$0xff]   ;;  %v5141_v24 = vld [vmem:[%s5476_s15 + $0x1c0] ss:$8 sps:$4 sm:$0xff]  }
 0x672   : > { %v5247_v35 = vpop.eup %5246  ;;  %3807 = vmatpush1.bf16.msra.mxu1 %v5093_v63  ;;  %3735 = vmatprep.subr.bf16.mxu0 %v5098_v0  ;;  %v5143_v63 = vld [vmem:[%s5476_s15 + $0x1c4] ss:$8 sps:$4 sm:$0xff]   ;;  %v5138_v0 = vld [vmem:[%s5476_s15 + $0xc0] ss:$8 sps:$4 sm:$0xff]   ;;  %v5146_v5 = vld [vmem:[%s5476_s15 + $0xb4] ss:$8 sps:$4 sm:$0xff]  }
 0x673   : > { %3189 = vmatprep.mubr.bf16.mxu0 %v2728_v58  ;;  %3262 = vmatprep.mubr.bf16.mxu1 %v2728_v58  ;;  %v2668_v15 = vmul.f32 %v5247_v35, %v6176_v44  ;;  %v2667_v22 = vmul.f32 %v5247_v35, %v6173_v42  ;;  %v5105_v44 = vld [vmem:[%s5476_s15 + $0x120] ss:$8 sps:$4 sm:$0xff]   ;;  %v5110_v42 = vld [vmem:[%s5476_s15 + $0x14] ss:$8 sps:$4 sm:$0xff]   ;;  %v6326_v17 = vadd.f32 %v6223_v6, %v2693_v7  ;;  %v5155_v35 = vld [vmem:[%s5476_s15 + $0x1a4] ss:$8 sps:$4 sm:$0xff]  }
 0x674   : > { %3190 = vmatmul.mubr.bf16.gmra.mxu0 %v2727_v53  ;;  %3263 = vmatmul.mubr.bf16.gmra.mxu1 %v2727_v53  ;;  %v5149_v58 = vld [vmem:[%s5476_s15 + $0x1b4] ss:$8 sps:$4 sm:$0xff]   ;;  %v5144_v53 = vld [vmem:[%s5476_s15 + $0xb0] ss:$8 sps:$4 sm:$0xff]   ;;  %v5150_v7 = vld [vmem:[%s5476_s15 + $0xa0] ss:$8 sps:$4 sm:$0xff]  }
 0x675   : > { %v2695_v1 = vmul.f32 %v6209_v11, %v2668_v15  ;;  %v2694_v10 = vmul.f32 %v6206_v29, %v2667_v22  ;;  %3808 = vmatprep.subr.bf16.mxu1 %v5101_v59  ;;  %3736 = vmatpush1.bf16.msra.mxu0 %v5096_v4  ;;  %v6332_v29 = vadd.f32 %v6220_v9, %v2692_v62  ;;  %v5147_v4 = vld [vmem:[%s5476_s15 + $0x1b0] ss:$8 sps:$4 sm:$0xff]   ;;  %v5152_v59 = vld [vmem:[%s5476_s15 + $0xa4] ss:$8 sps:$4 sm:$0xff]   ;;  %v5161_v15 = vld [vmem:[%s5476_s15 + $0x194] ss:$8 sps:$4 sm:$0xff]  }
 0x676   : > { %3809 = vmatpush1.bf16.msra.mxu1 %v5099_v60  ;;  %3737 = vmatprep.subr.bf16.mxu0 %v5104_v23  ;;  %v5153_v60 = vld [vmem:[%s5476_s15 + $0x1a0] ss:$8 sps:$4 sm:$0xff]   ;;  %v5158_v23 = vld [vmem:[%s5476_s15 + $0x94] ss:$8 sps:$4 sm:$0xff]   ;;  %v5156_v22 = vld [vmem:[%s5476_s15 + $0x90] ss:$8 sps:$4 sm:$0xff]  }
 0x677   : > { %v6329_v41 = vadd.f32 %v6223_v6, %v2695_v1  ;;  %v6335_v11 = vadd.f32 %v6220_v9, %v2694_v10  ;;  %3810 = vmatprep.subr.bf16.mxu1 %v5107_v47  ;;  %v5111_v6 = vld [vmem:[%s5476_s15 + $0x110] ss:$8 sps:$4 sm:$0xff]   ;;  %v5119_v9 = vld [vmem:[%s5476_s15 + $0x104] ss:$8 sps:$4 sm:$0xff]   ;;  %v5162_v10 = vld [vmem:[%s5476_s15 + $0x80] ss:$8 sps:$4 sm:$0xff]  }
 0x678   : > { %v5159_v62 = vld [vmem:[%s5476_s15 + $0x190] ss:$8 sps:$4 sm:$0xff]   ;;  %v5164_v47 = vld [vmem:[%s5476_s15 + $0x84] ss:$8 sps:$4 sm:$0xff]  }
 0x679   : > { %v2730_v56 = vpack.c.bf16 %v6329_v41, %v6326_v17  ;;  %v2729_v26 = vpack.c.bf16 %v6335_v11, %v6332_v29  ;;  %3738 = vmatpush1.bf16.msra.mxu0 %v5102_v55  ;;  %v5167_v1 = vld [vmem:[%s5476_s15 + $0x184] ss:$8 sps:$4 sm:$0xff]   ;;  %v5165_v55 = vld [vmem:[%s5476_s15 + $0x180] ss:$8 sps:$4 sm:$0xff]  }
 0x67a   : > { %3811 = vmatpush1.bf16.msra.mxu1 %v5105_v44  ;;  %3739 = vmatprep.subr.bf16.mxu0 %v5110_v42  ;;  %v2795_v44 = vld [vmem:[%s5471_s17] sm:$0xf] }
 0x67b   : > { %3199 = vmatprep.mubr.bf16.mxu0 %v2730_v56  ;;  %3272 = vmatprep.mubr.bf16.mxu1 %v2730_v56 }
 0x67c   : > { %3200 = vmatmul.mubr.bf16.gmra.mxu0 %v2729_v26  ;;  %3273 = vmatmul.mubr.bf16.gmra.mxu1 %v2729_v26  ;;  %v6382_v26 = vrot.slane %v2795_v44, %v5694_v18 }
 0x67d   : > { %3812 = vmatprep.subr.bf16.mxu1 %v5113_v14  ;;  %3740 = vmatpush1.bf16.msra.mxu0 %v5108_v25  ;;  %v6386_v25 = vrot.slane %v2795_v44, %v869_v40  ;;  %v6389_v14 = vrot.slane %v2795_v44, %v5691_v16 }
 0x67e   : > { %3813 = vmatpush1.bf16.msra.mxu1 %v5111_v6  ;;  %3741 = vmatprep.subr.bf16.mxu0 %v5116_v12  ;;  %v6393_v6 = vrot.slane %v2795_v44, %v865_v36 }
 0x67f   : > { %3814 = vmatprep.subr.bf16.mxu1 %v5119_v9 }
 0x681   : > { %3742 = vmatpush1.bf16.msra.mxu0 %v5114_v46 }
 0x682   : > { %3815 = vmatpush1.bf16.msra.mxu1 %v5117_v37  ;;  %3743 = vmatprep.subr.bf16.mxu0 %v5122_v27 }
 0x683   : > { %3816 = vmatprep.subr.bf16.mxu1 %v5125_v30 }
 0x685   : > { %3744 = vmatpush2.bf16.msra.mxu0 %v5120_v32 }
 0x686   : > { %3817 = vmatpush2.bf16.msra.mxu1 %v5123_v51  ;;  %3745 = vmatprep.subr.bf16.mxu0 %v5128_v45 }
 0x687   : > { %3818 = vmatprep.subr.bf16.mxu1 %v5131_v50 }
 0x689   : > { %3746 = vmatpush2.bf16.msra.mxu0 %v5126_v38 }
 0x68a   : > { %3819 = vmatpush2.bf16.msra.mxu1 %v5129_v39  ;;  %3747 = vmatprep.subr.bf16.mxu0 %v5134_v28 }
 0x68b   : > { %3820 = vmatprep.subr.bf16.mxu1 %v5137_v52 }
 0x68d   : > { %3748 = vmatpush2.bf16.msra.mxu0 %v5132_v43 }
 0x68e   : > { %3821 = vmatpush2.bf16.msra.mxu1 %v5135_v57  ;;  %3749 = vmatprep.subr.bf16.mxu0 %v5140_v34 }
 0x68f   : > { %3822 = vmatprep.subr.bf16.mxu1 %v5143_v63 }
 0x691   : > { %3750 = vmatpush2.bf16.msra.mxu0 %v5138_v0 }
 0x692   : > { %3823 = vmatpush2.bf16.msra.mxu1 %v5141_v24  ;;  %3751 = vmatprep.subr.bf16.mxu0 %v5146_v5 }
 0x693   : > { %3824 = vmatprep.subr.bf16.mxu1 %v5149_v58 }
 0x695   : > { %3752 = vmatpush2.bf16.msra.mxu0 %v5144_v53 }
 0x696   : > { %3825 = vmatpush2.bf16.msra.mxu1 %v5147_v4  ;;  %3753 = vmatprep.subr.bf16.mxu0 %v5152_v59 }
 0x697   : > { %3826 = vmatprep.subr.bf16.mxu1 %v5155_v35 }
 0x699   : > { %3754 = vmatpush2.bf16.msra.mxu0 %v5150_v7 }
 0x69a   : > { %3827 = vmatpush2.bf16.msra.mxu1 %v5153_v60  ;;  %3755 = vmatprep.subr.bf16.mxu0 %v5158_v23 }
 0x69b   : > { %3828 = vmatprep.subr.bf16.mxu1 %v5161_v15 }
 0x69d   : > { %3756 = vmatpush2.bf16.msra.mxu0 %v5156_v22 }
 0x69e   : > { %3829 = vmatpush2.bf16.msra.mxu1 %v5159_v62  ;;  %3757 = vmatprep.subr.bf16.mxu0 %v5164_v47 }
 0x69f   : > { %3830 = vmatprep.subr.bf16.mxu1 %v5167_v1 }
 0x6a1   : > { %3758 = vmatpush2.bf16.msra.mxu0 %v5162_v10 }
 0x6a2   : > { %3831 = vmatpush2.bf16.msra.mxu1 %v5165_v55 }
 0x724   : > { %v3171_v42 = vpop.f32.mrf.mxu0  ;;  %v3244_v56 = vpop.f32.mrf.mxu1 }
 0x725   : > { %v3172_v51 = vadd.f32 %v3171_v42, %v6389_v14  ;;  %v3245_v45 = vadd.f32 %v3244_v56, %v6393_v6 }
 0x726   : > { %v3173_v12 = vpop.f32.mrf.mxu0  ;;  %v3246_v9 = vpop.f32.mrf.mxu1 }
 0x727   : > { %v3174_v27 = vadd.f32 %v3173_v12, %v6382_v26  ;;  %v3247_v30 = vadd.f32 %v3246_v9, %v6386_v25  ;;  %v3283_v24 = vmax.f32 %v3172_v51, 0.0  ;;  %v3285_v5 = vmax.f32 %v3245_v45, 0.0 }
 0x728   : > { %v3175_v46 = vpop.f32.mrf.mxu0  ;;  %v3248_v37 = vpop.f32.mrf.mxu1 }
 0x729   : > { %v3176_v32 = vadd.f32 %v3175_v46, %v6389_v14  ;;  %v3249_v40 = vadd.f32 %v3248_v37, %v6393_v6  ;;  %v3284_v57 = vmax.f32 %v3174_v27, 0.0  ;;  %v3286_v34 = vmax.f32 %v3247_v30, 0.0 }
 0x72a   : > { %v3177_v50 = vpop.f32.mrf.mxu0  ;;  %v3250_v13 = vpop.f32.mrf.mxu1 }
 0x72b   : > { %v3178_v36 = vadd.f32 %v3177_v50, %v6382_v26  ;;  %v3251_v38 = vadd.f32 %v3250_v13, %v6386_v25  ;;  %v3287_v39 = vmax.f32 %v3176_v32, 0.0  ;;  %v3289_v28 = vmax.f32 %v3249_v40, 0.0 }
 0x72c   : > { %v3181_v52 = vpop.f32.mrf.mxu0  ;;  %v3254_v43 = vpop.f32.mrf.mxu1 }
 0x72d   : > { %v3288_v63 = vmax.f32 %v3178_v36, 0.0  ;;  %v3290_v0 = vmax.f32 %v3251_v38, 0.0  ;;  %v3315_v35 = vpack.c.bf16 %v3287_v39, %v3283_v24  ;;  %v3317_v7 = vpack.c.bf16 %v3289_v28, %v3285_v5 }
 0x72e   : > { %v3183_v58 = vpop.f32.mrf.mxu0  ;;  %v3256_v53 = vpop.f32.mrf.mxu1  ;;  %v3182_v1 = vadd.f32 %v3181_v52, %v6389_v14  ;;  %v3255_v10 = vadd.f32 %v3254_v43, %v6393_v6 }
 0x72f   : > { %v3316_v4 = vpack.c.bf16 %v3288_v63, %v3284_v57  ;;  %v3318_v59 = vpack.c.bf16 %v3290_v0, %v3286_v34  ;;  %v3184_v60 = vadd.f32 %v3183_v58, %v6382_v26  ;;  %v3257_v22 = vadd.f32 %v3256_v53, %v6386_v25 }
 0x730   : > { %v3185_v23 = vpop.f32.mrf.mxu0  ;;  %v3258_v15 = vpop.f32.mrf.mxu1  ;;  %v3291_v51 = vmax.f32 %v3182_v1, 0.0  ;;  %v3293_v45 = vmax.f32 %v3255_v10, 0.0 }
 0x731   : > { %v3186_v62 = vadd.f32 %v3185_v23, %v6389_v14  ;;  %v3259_v47 = vadd.f32 %v3258_v15, %v6393_v6  ;;  %3759 = vmatprep.mubr.bf16.mxu0 %v3316_v4  ;;  %3832 = vmatprep.mubr.bf16.mxu1 %v3318_v59  ;;  %v3292_v27 = vmax.f32 %v3184_v60, 0.0  ;;  %v3294_v30 = vmax.f32 %v3257_v22, 0.0 }
 0x732   : > { %v3187_v55 = vpop.f32.mrf.mxu0  ;;  %v3260_v44 = vpop.f32.mrf.mxu1  ;;  %3760 = vmatmul.mubr.bf16.vlgmr.msra.gmra.mxu0 %v3315_v35  ;;  %3833 = vmatmul.mubr.bf16.vlgmr.msra.gmra.mxu1 %v3317_v7 }
 0x733   : > { %v3188_v42 = vadd.f32 %v3187_v55, %v6382_v26  ;;  %v3261_v56 = vadd.f32 %v3260_v44, %v6386_v25  ;;  %v3295_v12 = vmax.f32 %v3186_v62, 0.0  ;;  %v3297_v9 = vmax.f32 %v3259_v47, 0.0 }
 0x734   : > { %v3191_v46 = vpop.f32.mrf.mxu0  ;;  %v3264_v37 = vpop.f32.mrf.mxu1 }
 0x735   : > { %v3296_v32 = vmax.f32 %v3188_v42, 0.0  ;;  %v3298_v40 = vmax.f32 %v3261_v56, 0.0  ;;  %v3319_v39 = vpack.c.bf16 %v3295_v12, %v3291_v51  ;;  %v3321_v28 = vpack.c.bf16 %v3297_v9, %v3293_v45 }
 0x736   : > { %v3193_v50 = vpop.f32.mrf.mxu0  ;;  %v3266_v13 = vpop.f32.mrf.mxu1  ;;  %v3192_v24 = vadd.f32 %v3191_v46, %v6389_v14  ;;  %v3265_v5 = vadd.f32 %v3264_v37, %v6393_v6 }
 0x737   : > { %v3320_v36 = vpack.c.bf16 %v3296_v32, %v3292_v27  ;;  %v3322_v38 = vpack.c.bf16 %v3298_v40, %v3294_v30  ;;  %v3194_v52 = vadd.f32 %v3193_v50, %v6382_v26  ;;  %v3267_v34 = vadd.f32 %v3266_v13, %v6386_v25 }
 0x738   : > { %v3195_v43 = vpop.f32.mrf.mxu0  ;;  %v3268_v57 = vpop.f32.mrf.mxu1  ;;  %v3299_v1 = vmax.f32 %v3192_v24, 0.0  ;;  %v3301_v10 = vmax.f32 %v3265_v5, 0.0 }
 0x739   : > { %v3196_v63 = vadd.f32 %v3195_v43, %v6389_v14  ;;  %v3269_v0 = vadd.f32 %v3268_v57, %v6393_v6  ;;  %3769 = vmatprep.mubr.bf16.mxu0 %v3320_v36  ;;  %3842 = vmatprep.mubr.bf16.mxu1 %v3322_v38  ;;  %v3300_v15 = vmax.f32 %v3194_v52, 0.0  ;;  %v3302_v22 = vmax.f32 %v3267_v34, 0.0 }
 0x73a   : > { %v3197_v58 = vpop.f32.mrf.mxu0  ;;  %v3270_v53 = vpop.f32.mrf.mxu1  ;;  %3770 = vmatmul.mubr.bf16.gmra.mxu0 %v3319_v39  ;;  %3843 = vmatmul.mubr.bf16.gmra.mxu1 %v3321_v28 }
 0x73b   : > { %v3198_v4 = vadd.f32 %v3197_v58, %v6382_v26  ;;  %v3271_v59 = vadd.f32 %v3270_v53, %v6386_v25  ;;  %v3303_v35 = vmax.f32 %v3196_v63, 0.0  ;;  %v3305_v7 = vmax.f32 %v3269_v0, 0.0 }
 0x73c   : > { %v3201_v60 = vpop.f32.mrf.mxu0  ;;  %v3274_v23 = vpop.f32.mrf.mxu1 }
 0x73d   : > { %v3304_v62 = vmax.f32 %v3198_v4, 0.0  ;;  %v3306_v47 = vmax.f32 %v3271_v59, 0.0  ;;  %v3323_v12 = vpack.c.bf16 %v3303_v35, %v3299_v1  ;;  %v3325_v9 = vpack.c.bf16 %v3305_v7, %v3301_v10 }
 0x73e   : > { %v3203_v55 = vpop.f32.mrf.mxu0  ;;  %v3276_v44 = vpop.f32.mrf.mxu1  ;;  %v3202_v51 = vadd.f32 %v3201_v60, %v6389_v14  ;;  %v3275_v45 = vadd.f32 %v3274_v23, %v6393_v6 }
 0x73f   : > { %v3324_v42 = vpack.c.bf16 %v3304_v62, %v3300_v15  ;;  %v3326_v56 = vpack.c.bf16 %v3306_v47, %v3302_v22  ;;  %v3204_v46 = vadd.f32 %v3203_v55, %v6382_v26  ;;  %v3277_v30 = vadd.f32 %v3276_v44, %v6386_v25 }
 0x740   : > { %v3205_v37 = vpop.f32.mrf.mxu0  ;;  %v3278_v27 = vpop.f32.mrf.mxu1  ;;  %v3307_v63 = vmax.f32 %v3202_v51, 0.0  ;;  %v3309_v0 = vmax.f32 %v3275_v45, 0.0 }
 0x741   : > { %v3206_v32 = vadd.f32 %v3205_v37, %v6389_v14  ;;  %v3279_v40 = vadd.f32 %v3278_v27, %v6393_v6  ;;  %3779 = vmatprep.mubr.bf16.mxu0 %v3324_v42  ;;  %3852 = vmatprep.mubr.bf16.mxu1 %v3326_v56  ;;  %v3308_v52 = vmax.f32 %v3204_v46, 0.0  ;;  %v3310_v43 = vmax.f32 %v3277_v30, 0.0 }
 0x742   : > { %v3207_v50 = vpop.f32.mrf.mxu0  ;;  %v3280_v13 = vpop.f32.mrf.mxu1  ;;  %3780 = vmatmul.mubr.bf16.gmra.mxu0 %v3323_v12  ;;  %3853 = vmatmul.mubr.bf16.gmra.mxu1 %v3325_v9 }
 0x743   : > { %v3208_v36 = vadd.f32 %v3207_v50, %v6382_v26  ;;  %v3281_v38 = vadd.f32 %v3280_v13, %v6386_v25  ;;  %v3311_v39 = vmax.f32 %v3206_v32, 0.0  ;;  %v3313_v28 = vmax.f32 %v3279_v40, 0.0  ;;  %v3395_v26 = vld [vmem:[%s682_s0] sm:$0x3] }
 0x744   : > { %v6433_v25 = vrot.slane %v3395_v26, %v5691_v16  ;;  %v6436_v58 = vrot.slane %v3395_v26, %v5694_v18 }
 0x745   : > { %v3312_v57 = vmax.f32 %v3208_v36, 0.0  ;;  %v3314_v34 = vmax.f32 %v3281_v38, 0.0  ;;  %v3327_v6 = vpack.c.bf16 %v3311_v39, %v3307_v63  ;;  %v3329_v5 = vpack.c.bf16 %v3313_v28, %v3309_v0 }
 0x747   : > { %v3328_v14 = vpack.c.bf16 %v3312_v57, %v3308_v52  ;;  %v3330_v24 = vpack.c.bf16 %v3314_v34, %v3310_v43 }
 0x749   : > { %3789 = vmatprep.mubr.bf16.mxu0 %v3328_v14  ;;  %3862 = vmatprep.mubr.bf16.mxu1 %v3330_v24 }
 0x74a   : > { %3790 = vmatmul.mubr.bf16.gmra.mxu0 %v3327_v6  ;;  %3863 = vmatmul.mubr.bf16.gmra.mxu1 %v3329_v5 }
 0x7f2   : > { %v3761_v53 = vpop.f32.mrf.mxu0  ;;  %v3834_v4 = vpop.f32.mrf.mxu1 }
 0x7f3   : > { %v3762_v59 = vadd.f32 %v3761_v53, %v6433_v25 }
 0x7f4   : > { %v3763_v35 = vpop.f32.mrf.mxu0  ;;  %v3836_v7 = vpop.f32.mrf.mxu1 }
 0x7f5   : > { %v3835_v60 = vadd.f32 %v3834_v4, %v3762_v59  ;;  %v3764_v23 = vadd.f32 %v3763_v35, %v6436_v58 }
 0x7f6   : > { %v3765_v15 = vpop.f32.mrf.mxu0  ;;  %v3838_v22 = vpop.f32.mrf.mxu1 }
 0x7f7   : > { %v3837_v62 = vadd.f32 %v3836_v7, %v3764_v23  ;;  %v3766_v47 = vadd.f32 %v3765_v15, %v6433_v25  ;;  %v6442_v55 = vadd.f32 %v3835_v60, %v6234_v48 }
 0x7f8   : > { %v3767_v1 = vpop.f32.mrf.mxu0  ;;  %v3840_v10 = vpop.f32.mrf.mxu1 }
 0x7f9   : > { %v6445_v44 = vadd.f32 %v3837_v62, %v6231_v33  ;;  %v3839_v42 = vadd.f32 %v3838_v22, %v3766_v47  ;;  %v3768_v56 = vadd.f32 %v3767_v1, %v6436_v58 }
 0x7fa   : > { %v3771_v12 = vpop.f32.mrf.mxu0  ;;  %v3844_v9 = vpop.f32.mrf.mxu1 }
 0x7fb   : > { %v3841_v46 = vadd.f32 %v3840_v10, %v3768_v56  ;;  %v3772_v37 = vadd.f32 %v3771_v12, %v6433_v25  ;;  %v3891_v27 = vadd.f32 %v6445_v44, %v6442_v55  ;;  %v6452_v40 = vadd.f32 %v3839_v42, %v6240_v61 }
 0x7fc   : > { %v3773_v30 = vpop.f32.mrf.mxu0  ;;  %v3846_v32 = vpop.f32.mrf.mxu1 }
 0x7fd   : > { %v6455_v48 = vadd.f32 %v3841_v46, %v6237_v3  ;;  %v3845_v33 = vadd.f32 %v3844_v9, %v3772_v37  ;;  %v3774_v51 = vadd.f32 %v3773_v30, %v6436_v58  ;;  %3892 = vadd.xlane.f32.xlu0 %v3891_v27 }
 0x7fe   : > { %v3775_v45 = vpop.f32.mrf.mxu0  ;;  %v3848_v50 = vpop.f32.mrf.mxu1 }
 0x7ff   : > { %v3847_v13 = vadd.f32 %v3846_v32, %v3774_v51  ;;  %v3776_v36 = vadd.f32 %v3775_v45, %v6433_v25  ;;  %v3894_v38 = vadd.f32 %v6455_v48, %v6452_v40  ;;  %v6462_v61 = vadd.f32 %v3845_v33, %v6263_v49 }
 0x800   : > { %v3777_v39 = vpop.f32.mrf.mxu0  ;;  %v3850_v28 = vpop.f32.mrf.mxu1 }
 0x801   : > { %v6465_v3 = vadd.f32 %v3847_v13, %v6260_v20  ;;  %v3849_v52 = vadd.f32 %v3848_v50, %v3776_v36  ;;  %v3778_v43 = vadd.f32 %v3777_v39, %v6436_v58  ;;  %3895 = vadd.xlane.f32.xlu1 %v3894_v38 }
 0x802   : > { %v3781_v57 = vpop.f32.mrf.mxu0  ;;  %v3854_v34 = vpop.f32.mrf.mxu1 }
 0x803   : > { %v3851_v63 = vadd.f32 %v3850_v28, %v3778_v43  ;;  %v3782_v0 = vadd.f32 %v3781_v57, %v6433_v25  ;;  %v3897_v14 = vadd.f32 %v6465_v3, %v6462_v61  ;;  %v6472_v49 = vadd.f32 %v3849_v52, %v6271_v8 }
 0x804   : > { %v3783_v24 = vpop.f32.mrf.mxu0  ;;  %v3856_v6 = vpop.f32.mrf.mxu1 }
 0x805   : > { %v6475_v20 = vadd.f32 %v3851_v63, %v6268_v31  ;;  %v3855_v5 = vadd.f32 %v3854_v34, %v3782_v0  ;;  %v3784_v26 = vadd.f32 %v3783_v24, %v6436_v58  ;;  %3898 = vadd.xlane.f32.xlu0 %v3897_v14 }
 0x806   : > { %v3785_v53 = vpop.f32.mrf.mxu0  ;;  %v3858_v4 = vpop.f32.mrf.mxu1 }
 0x807   : > { %v3857_v59 = vadd.f32 %v3856_v6, %v3784_v26  ;;  %v3786_v35 = vadd.f32 %v3785_v53, %v6433_v25  ;;  %v3900_v7 = vadd.f32 %v6475_v20, %v6472_v49  ;;  %v6482_v8 = vadd.f32 %v3855_v5, %v6295_v21 }
 0x808   : > { %v3787_v60 = vpop.f32.mrf.mxu0  ;;  %v3860_v23 = vpop.f32.mrf.mxu1 }
 0x809   : > { %v6485_v31 = vadd.f32 %v3857_v59, %v6292_v19  ;;  %v3859_v15 = vadd.f32 %v3858_v4, %v3786_v35  ;;  %v3788_v22 = vadd.f32 %v3787_v60, %v6436_v58  ;;  %3901 = vadd.xlane.f32.xlu1 %v3900_v7 }
 0x80a   : > { %v3791_v62 = vpop.f32.mrf.mxu0  ;;  %v3864_v47 = vpop.f32.mrf.mxu1 }
 0x80b   : > { %v3861_v1 = vadd.f32 %v3860_v23, %v3788_v22  ;;  %v3792_v10 = vadd.f32 %v3791_v62, %v6433_v25  ;;  %v3903_v42 = vadd.f32 %v6485_v31, %v6482_v8  ;;  %v6492_v21 = vadd.f32 %v3859_v15, %v6303_v54 }
 0x80c   : > { %v3793_v56 = vpop.f32.mrf.mxu0  ;;  %v3866_v12 = vpop.f32.mrf.mxu1 }
 0x80d   : > { %v6495_v19 = vadd.f32 %v3861_v1, %v6300_v2  ;;  %v3865_v9 = vadd.f32 %v3864_v47, %v3792_v10  ;;  %v3794_v46 = vadd.f32 %v3793_v56, %v6436_v58  ;;  %3904 = vadd.xlane.f32.xlu0 %v3903_v42 }
 0x80e   : > { %v3795_v37 = vpop.f32.mrf.mxu0  ;;  %v3868_v27 = vpop.f32.mrf.mxu1 }
 0x80f   : > { %v3867_v30 = vadd.f32 %v3866_v12, %v3794_v46  ;;  %v3796_v32 = vadd.f32 %v3795_v37, %v6433_v25  ;;  %v3906_v33 = vadd.f32 %v6495_v19, %v6492_v21  ;;  %v3885_v45 = vadd.f32 %v3865_v9, %v6332_v29 }
 0x810   : > { %v3797_v51 = vpop.f32.mrf.mxu0  ;;  %v3870_v13 = vpop.f32.mrf.mxu1 }
 0x811   : > { %v3886_v54 = vadd.f32 %v3867_v30, %v6326_v17  ;;  %v3869_v50 = vadd.f32 %v3868_v27, %v3796_v32  ;;  %v3798_v2 = vadd.f32 %v3797_v51, %v6436_v58  ;;  %3907 = vadd.xlane.f32.xlu1 %v3906_v33 }
 0x813   : > { %v3871_v36 = vadd.f32 %v3870_v13, %v3798_v2  ;;  %v3909_v38 = vadd.f32 %v3886_v54, %v3885_v45  ;;  %v3887_v39 = vadd.f32 %v3869_v50, %v6335_v11 }
 0x815   : > { %v3888_v28 = vadd.f32 %v3871_v36, %v6329_v41  ;;  %3910 = vadd.xlane.f32.xlu0 %v3909_v38 }
 0x817   : > { %v3912_v25 = vadd.f32 %v3888_v28, %v3887_v39 }
 0x819   : > { %3913 = vadd.xlane.f32.xlu1 %v3912_v25 }
 0x886   : > { %v3893_v52 = vpop.xlane.xlu0 %3892 }
 0x887   : > { %v3915_v43 = vmul.f32 0.00390625, %v3893_v52 }
 0x889   : > { %v6507_v29 = vsub.f32 %v6442_v55, %v3915_v43  ;;  %v6510_v17 = vsub.f32 %v6445_v44, %v3915_v43 }
 0x88a   : > { %v3896_v58 = vpop.xlane.xlu1 %3895 }
 0x88b   : > { %v3916_v57 = vmul.f32 0.00390625, %v3896_v58  ;;  %v3939_v34 = vmul.f32 %v6507_v29, %v6507_v29  ;;  %v3940_v11 = vmul.f32 %v6510_v17, %v6510_v17 }
 0x88d   : > { %v6517_v41 = vsub.f32 %v6452_v40, %v3916_v57  ;;  %v6520_v63 = vsub.f32 %v6455_v48, %v3916_v57  ;;  %v3955_v0 = vadd.f32 %v3940_v11, %v3939_v34  ;;  %v3889_v11 = vld [vmem:[%s686_s2] sm:$0x3] }
 0x88e   : > { %v3899_v55 = vpop.xlane.xlu0 %3898 }
 0x88f   : > { %v3917_v14 = vmul.f32 0.00390625, %v3899_v55  ;;  %3956 = vadd.xlane.f32.xlu0 %v3955_v0  ;;  %v3941_v44 = vmul.f32 %v6517_v41, %v6517_v41  ;;  %v3942_v24 = vmul.f32 %v6520_v63, %v6520_v63  ;;  %v3890_v0 = vld [vmem:[%s690_s8] sm:$0x3] }
 0x891   : > { %v6527_v6 = vsub.f32 %v6462_v61, %v3917_v14  ;;  %v6530_v5 = vsub.f32 %v6465_v3, %v3917_v14  ;;  %v3958_v40 = vadd.f32 %v3942_v24, %v3941_v44  ;;  %v6593_v44 = vrot.slane %v3889_v11, %v5691_v16 }
 0x892   : > { %v3902_v26 = vpop.xlane.xlu1 %3901  ;;  %v6596_v24 = vrot.slane %v3889_v11, %v5694_v18 }
 0x893   : > { %v3918_v48 = vmul.f32 0.00390625, %v3902_v26  ;;  %3959 = vadd.xlane.f32.xlu1 %v3958_v40  ;;  %v3943_v53 = vmul.f32 %v6527_v6, %v6527_v6  ;;  %v3944_v4 = vmul.f32 %v6530_v5, %v6530_v5 }
 0x895   : > { %v6537_v59 = vsub.f32 %v6472_v49, %v3918_v48  ;;  %v6540_v35 = vsub.f32 %v6475_v20, %v3918_v48  ;;  %v3961_v61 = vadd.f32 %v3944_v4, %v3943_v53  ;;  %v6599_v48 = vrot.slane %v3890_v0, %v5691_v16 }
 0x896   : > { %v3905_v7 = vpop.xlane.xlu0 %3904  ;;  %v6602_v53 = vrot.slane %v3890_v0, %v5694_v18 }
 0x897   : > { %v3919_v3 = vmul.f32 0.00390625, %v3905_v7  ;;  %3962 = vadd.xlane.f32.xlu0 %v3961_v61  ;;  %v3945_v60 = vmul.f32 %v6537_v59, %v6537_v59  ;;  %v3946_v23 = vmul.f32 %v6540_v35, %v6540_v35 }
 0x899   : > { %v6547_v15 = vsub.f32 %v6482_v8, %v3919_v3  ;;  %v6550_v22 = vsub.f32 %v6485_v31, %v3919_v3  ;;  %v3964_v49 = vadd.f32 %v3946_v23, %v3945_v60 }
 0x89a   : > { %v3908_v62 = vpop.xlane.xlu1 %3907 }
 0x89b   : > { %v3920_v20 = vmul.f32 0.00390625, %v3908_v62  ;;  %3965 = vadd.xlane.f32.xlu1 %v3964_v49  ;;  %v3947_v47 = vmul.f32 %v6547_v15, %v6547_v15  ;;  %v3948_v1 = vmul.f32 %v6550_v22, %v6550_v22 }
 0x89d   : > { %v6557_v10 = vsub.f32 %v6492_v21, %v3920_v20  ;;  %v6560_v42 = vsub.f32 %v6495_v19, %v3920_v20  ;;  %v3967_v8 = vadd.f32 %v3948_v1, %v3947_v47 }
 0x89e   : > { %v3911_v56 = vpop.xlane.xlu0 %3910 }
 0x89f   : > { %v3921_v31 = vmul.f32 0.00390625, %v3911_v56  ;;  %3968 = vadd.xlane.f32.xlu0 %v3967_v8  ;;  %v3949_v12 = vmul.f32 %v6557_v10, %v6557_v10  ;;  %v3950_v9 = vmul.f32 %v6560_v42, %v6560_v42 }
 0x8a1   : > { %v6566_v46 = vsub.f32 %v3885_v45, %v3921_v31  ;;  %v6568_v37 = vsub.f32 %v3886_v54, %v3921_v31  ;;  %v3970_v27 = vadd.f32 %v3950_v9, %v3949_v12 }
 0x8a2   : > { %v3914_v21 = vpop.xlane.xlu1 %3913 }
 0x8a3   : > { %v3922_v30 = vmul.f32 0.00390625, %v3914_v21  ;;  %3971 = vadd.xlane.f32.xlu1 %v3970_v27  ;;  %v3951_v19 = vmul.f32 %v6566_v46, %v6566_v46  ;;  %v3952_v32 = vmul.f32 %v6568_v37, %v6568_v37 }
 0x8a5   : > { %v6574_v33 = vsub.f32 %v3887_v39, %v3922_v30  ;;  %v6576_v51 = vsub.f32 %v3888_v28, %v3922_v30  ;;  %v3973_v50 = vadd.f32 %v3952_v32, %v3951_v19 }
 0x8a7   : > { %3974 = vadd.xlane.f32.xlu0 %v3973_v50  ;;  %v3953_v45 = vmul.f32 %v6574_v33, %v6574_v33  ;;  %v3954_v54 = vmul.f32 %v6576_v51, %v6576_v51 }
 0x8a9   : > { %v3976_v2 = vadd.f32 %v3954_v54, %v3953_v45 }
 0x8ab   : > { %3977 = vadd.xlane.f32.xlu1 %v3976_v2 }
 0x918   : > { %v3957_v13 = vpop.xlane.xlu0 %3956 }
 0x919   : > { %v3979_v36 = vmul.f32 0.00390625, %v3957_v13 }
 0x91b   : > { %v3987_v38 = vadd.f32 1e-05, %v3979_v36 }
 0x91c   : > { %v3960_v25 = vpop.xlane.xlu1 %3959 }
 0x91d   : > { %5248 = vrsqrt.f32 %v3987_v38  ;;  %v3980_v39 = vmul.f32 0.00390625, %v3960_v25 }
 0x91f   : > { %v3988_v28 = vadd.f32 1e-05, %v3980_v39 }
 0x920   : > { %v3963_v52 = vpop.xlane.xlu0 %3962 }
 0x921   : > { %5250 = vrsqrt.f32 %v3988_v28  ;;  %v3981_v43 = vmul.f32 0.00390625, %v3963_v52 }
 0x923   : > { %v3989_v58 = vadd.f32 1e-05, %v3981_v43 }
 0x924   : > { %v3966_v57 = vpop.xlane.xlu1 %3965 }
 0x925   : > { %5252 = vrsqrt.f32 %v3989_v58  ;;  %v3982_v34 = vmul.f32 0.00390625, %v3966_v57 }
 0x927   : > { %v3990_v55 = vadd.f32 1e-05, %v3982_v34 }
 0x928   : > { %v3969_v14 = vpop.xlane.xlu0 %3968 }
 0x929   : > { %5254 = vrsqrt.f32 %v3990_v55  ;;  %v3983_v40 = vmul.f32 0.00390625, %v3969_v14 }
 0x92a   : > { %v5249_v26 = vpop.eup %5248 }
 0x92b   : > { %v4003_v4 = vmul.f32 %v5249_v26, %v6507_v29  ;;  %v4004_v61 = vmul.f32 %v5249_v26, %v6510_v17  ;;  %v3991_v7 = vadd.f32 1e-05, %v3983_v40 }
 0x92c   : > { %v3972_v3 = vpop.xlane.xlu1 %3971 }
 0x92d   : > { %v4030_v60 = vmul.f32 %v6593_v44, %v4003_v4  ;;  %v4031_v23 = vmul.f32 %v6596_v24, %v4004_v61  ;;  %5256 = vrsqrt.f32 %v3991_v7  ;;  %v3984_v49 = vmul.f32 0.00390625, %v3972_v3 }
 0x92e   : > { %v5251_v62 = vpop.eup %5250 }
 0x92f   : > { %v4057_v16 = vadd.f32 %v6599_v48, %v4030_v60  ;;  %v4058_v18 = vadd.f32 %v6602_v53, %v4031_v23  ;;  %v4005_v20 = vmul.f32 %v5251_v62, %v6517_v41  ;;  %v4006_v29 = vmul.f32 %v5251_v62, %v6520_v63 }
 0x930   : > { %v3992_v47 = vadd.f32 1e-05, %v3984_v49  ;;  %v3975_v17 = vpop.xlane.xlu0 %3974 }
 0x931   : > { %4073 = vst [vmem:[%s5493_s23] sm:$0xff] %v4057_v16  ;;  %4074 = vst [vmem:[%s5493_s23 + $0x8] sm:$0xff] %v4058_v18  ;;  %v4032_v1 = vmul.f32 %v6593_v44, %v4005_v20  ;;  %v4033_v8 = vmul.f32 %v6596_v24, %v4006_v29  ;;  %v3985_v56 = vmul.f32 0.00390625, %v3975_v17 }
 0x932   : > { %v5253_v31 = vpop.eup %5252  ;;  %5258 = vrsqrt.f32 %v3992_v47 }
 0x933   : > { %v4059_v12 = vadd.f32 %v6599_v48, %v4032_v1  ;;  %v4060_v9 = vadd.f32 %v6602_v53, %v4033_v8  ;;  %v4007_v41 = vmul.f32 %v5253_v31, %v6527_v6  ;;  %v4008_v63 = vmul.f32 %v5253_v31, %v6530_v5 }
 0x934   : > { %v3993_v27 = vadd.f32 1e-05, %v3985_v56  ;;  %v3978_v21 = vpop.xlane.xlu1 %3977 }
 0x935   : > { %4075 = vst [vmem:[%s5493_s23 + $0x10] sm:$0xff] %v4059_v12  ;;  %4076 = vst [vmem:[%s5493_s23 + $0x18] sm:$0xff] %v4060_v9  ;;  %v4034_v30 = vmul.f32 %v6593_v44, %v4007_v41  ;;  %v4035_v19 = vmul.f32 %v6596_v24, %v4008_v63  ;;  %v3986_v32 = vmul.f32 0.00390625, %v3978_v21 }
 0x936   : > { %v5255_v50 = vpop.eup %5254  ;;  %5260 = vrsqrt.f32 %v3993_v27 }
 0x937   : > { %v4061_v45 = vadd.f32 %v6599_v48, %v4034_v30  ;;  %v4062_v6 = vadd.f32 %v6602_v53, %v4035_v19  ;;  %v4009_v5 = vmul.f32 %v5255_v50, %v6537_v59  ;;  %v4010_v54 = vmul.f32 %v5255_v50, %v6540_v35 }
 0x938   : > { %v3994_v2 = vadd.f32 1e-05, %v3986_v32 }
 0x939   : > { %4077 = vst [vmem:[%s5493_s23 + $0x20] sm:$0xff] %v4061_v45  ;;  %4078 = vst [vmem:[%s5493_s23 + $0x28] sm:$0xff] %v4062_v6  ;;  %v4036_v13 = vmul.f32 %v6593_v44, %v4009_v5  ;;  %v4037_v36 = vmul.f32 %v6596_v24, %v4010_v54 }
 0x93a   : > { %v5257_v38 = vpop.eup %5256  ;;  %5262 = vrsqrt.f32 %v3994_v2 }
 0x93b   : > { %v4063_v25 = vadd.f32 %v6599_v48, %v4036_v13  ;;  %v4064_v39 = vadd.f32 %v6602_v53, %v4037_v36  ;;  %v4011_v28 = vmul.f32 %v5257_v38, %v6547_v15  ;;  %v4012_v59 = vmul.f32 %v5257_v38, %v6550_v22 }
 0x93d   : > { %4079 = vst [vmem:[%s5493_s23 + $0x30] sm:$0xff] %v4063_v25  ;;  %4080 = vst [vmem:[%s5493_s23 + $0x38] sm:$0xff] %v4064_v39  ;;  %v4038_v35 = vmul.f32 %v6593_v44, %v4011_v28  ;;  %v4039_v52 = vmul.f32 %v6596_v24, %v4012_v59 }
 0x93f   : > { %v5259_v43 = vpop.eup %5258  ;;  %v4065_v58 = vadd.f32 %v6599_v48, %v4038_v35  ;;  %v4066_v57 = vadd.f32 %v6602_v53, %v4039_v52 }
 0x940   : > { %v4013_v34 = vmul.f32 %v5259_v43, %v6557_v10  ;;  %v4014_v11 = vmul.f32 %v5259_v43, %v6560_v42 }
 0x941   : > { %4081 = vst [vmem:[%s5493_s23 + $0x40] sm:$0xff] %v4065_v58  ;;  %4082 = vst [vmem:[%s5493_s23 + $0x48] sm:$0xff] %v4066_v57 }
 0x942   : > { %v4040_v15 = vmul.f32 %v6593_v44, %v4013_v34  ;;  %v4041_v22 = vmul.f32 %v6596_v24, %v4014_v11 }
 0x943   : > { %v5261_v0 = vpop.eup %5260 }
 0x944   : > { %v4067_v55 = vadd.f32 %v6599_v48, %v4040_v15  ;;  %v4068_v14 = vadd.f32 %v6602_v53, %v4041_v22  ;;  %v4015_v40 = vmul.f32 %v5261_v0, %v6566_v46  ;;  %v4016_v26 = vmul.f32 %v5261_v0, %v6568_v37 }
 0x946   : > { %4083 = vst [vmem:[%s5493_s23 + $0x50] sm:$0xff] %v4067_v55  ;;  %4084 = vst [vmem:[%s5493_s23 + $0x58] sm:$0xff] %v4068_v14  ;;  %v4042_v10 = vmul.f32 %v6593_v44, %v4015_v40  ;;  %v4043_v42 = vmul.f32 %v6596_v24, %v4016_v26 }
 0x947   : > { %v5263_v4 = vpop.eup %5262 }
 0x948   : > { %v4069_v61 = vadd.f32 %v6599_v48, %v4042_v10  ;;  %v4070_v7 = vadd.f32 %v6602_v53, %v4043_v42  ;;  %v4017_v3 = vmul.f32 %v5263_v4, %v6574_v33  ;;  %v4018_v60 = vmul.f32 %v5263_v4, %v6576_v51 }
 0x94a   : > { %4085 = vst [vmem:[%s5493_s23 + $0x60] sm:$0xff] %v4069_v61  ;;  %4086 = vst [vmem:[%s5493_s23 + $0x68] sm:$0xff] %v4070_v7  ;;  %v4044_v46 = vmul.f32 %v6593_v44, %v4017_v3  ;;  %v4045_v37 = vmul.f32 %v6596_v24, %v4018_v60 }
 0x94c   : > { %v4071_v23 = vadd.f32 %v6599_v48, %v4044_v46  ;;  %v4072_v49 = vadd.f32 %v6602_v53, %v4045_v37 }
 0x94e   : > { %4087 = vst [vmem:[%s5493_s23 + $0x70] sm:$0xff] %v4071_v23  ;;  %4088 = vst [vmem:[%s5493_s23 + $0x78] sm:$0xff] %v4072_v49 }
 0x94f PF: > { %s6731_s8 = sld [smem:[#allocation6_spill]] }
 0x950   : > { %s6732_s29 = sld [smem:[#allocation4_spill]] }
 0x951   : > { %s6733_s30 = sld [smem:[#allocation5_spill]] }
 0x952   : > { %s6734_s15 = sld [smem:[#allocation7_spill]] }
 0x953   : > { %s6735_s16 = sld [smem:[#allocation8_spill]] }
 0x955   : > { %s24_s17 = sadd.s32 1, %s6731_s8  }
 0x956   : > { %p21_p8 = scmp.ge.s32.totalorder %s24_s17, 6  }
 0x958   :  { %23 = sbr.rel (!%p21_p8) target bundleno = 8 (0x8), region = 146 }

</bundles_post_ra>
